<compile_context>
chip_gen: v7x
topology: tpu7x:2x2x1
jax: 0.10.0
libtpu: 0.0.40
codegen_flags: <defaults>
</compile_context>

<pallas_src>
import jax
import jax.numpy as jnp
from jax.experimental import pallas as pl
from jax.experimental.pallas import tpu as pltpu

N = 300          # matches `n = 300` in the reference script
EPS = 1e-6       # torch.nn.PairwiseDistance default eps


def _pdist_nodiag_kernel(x_col_ref, y_col_ref,
                         x_row_ref, y_row_ref,
                         x_row_sh_ref, y_row_sh_ref,
                         out_ref):
    """out[i, j] = || p[i] - p[j'] + eps ||_2  with  j' = j if j < i else j+1.

    x_col / y_col        : (n_sub, 1)   coords with +eps already folded in
    x_row / y_row        : (1, n_lane)  coords, lane-padded to a multiple of 128
    x_row_sh / y_row_sh  : (1, n_lane)  same, shifted left by one (p[j+1] at lane j)
    out                  : (n_sub, n_lane)  only [0:n, 0:n-1] is meaningful
    """
    n_sub, n_lane = out_ref.shape
    col_ids = jax.lax.broadcasted_iota(jnp.int32, (n_sub, n_lane), 1)
    row_ids = jax.lax.broadcasted_iota(jnp.int32, (n_sub, n_lane), 0)
    skip_diag = col_ids >= row_ids            # on/after the diagonal -> use j+1

    x_row = jnp.where(skip_diag, x_row_sh_ref[...], x_row_ref[...])
    y_row = jnp.where(skip_diag, y_row_sh_ref[...], y_row_ref[...])

    dx = x_col_ref[...] - x_row               # (n_sub, 1) - (n_sub, n_lane) broadcast
    dy = y_col_ref[...] - y_row
    out_ref[...] = jnp.sqrt(dx * dx + dy * dy)


def pairwise_distances_no_diag(proj: jax.Array) -> jax.Array:
    """(n, n-1) pairwise distances with the diagonal removed, via a single
    grid-less Pallas call (n=300 trivially fits VMEM on every generation)."""
    n = proj.shape[0]
    n_lane = pl.cdiv(n - 1, 128) * 128        # 384: lane-dense, unmasked stores
    n_sub = pl.cdiv(n, 8) * 8                 # 304: sublane-aligned rows

    pts = proj.astype(jnp.float32)
    x = pts[:, 0]
    y = pts[:, 1]

    # Column operands, eps folded in, padded to a sublane multiple.
    x_col = jnp.zeros((n_sub, 1), jnp.float32).at[:n, 0].set(x + EPS)
    y_col = jnp.zeros((n_sub, 1), jnp.float32).at[:n, 0].set(y + EPS)

    # Lane-dense row operands + their shift-by-one versions (p[j+1] at lane j).
    zrow = jnp.zeros((1, n_lane), jnp.float32)
    x_row = zrow.at[0, :n].set(x)
    y_row = zrow.at[0, :n].set(y)
    x_row_sh = zrow.at[0, :n - 1].set(x[1:])
    y_row_sh = zrow.at[0, :n - 1].set(y[1:])

    vmem = pl.BlockSpec(memory_space=pltpu.MemorySpace.VMEM)
    out = pl.pallas_call(
        _pdist_nodiag_kernel,
        out_shape=jax.ShapeDtypeStruct((n_sub, n_lane), jnp.float32),
        in_specs=[vmem] * 6,
        out_specs=vmem,
    )(x_col, y_col, x_row, y_row, x_row_sh, y_row_sh)
    return out[:n, :n - 1]


def forward(proj: jax.Array) -> jax.Array:
    """Reproduces M.forward(): pairwise distances with the diagonal removed,
    shape (n, n-1). The shear is fused into the kernel."""
    return pairwise_distances_no_diag(proj)


if __name__ == "__main__":
    key = jax.random.PRNGKey(0)
    # deterministic stand-in for torch.nn.init.uniform_(proj, -1, 1.0)
    proj = jax.random.uniform(key, (N, 2), dtype=jnp.float32,
                              minval=-1.0, maxval=1.0)

    out = forward(proj)
    jax.block_until_ready(out)

    assert out.shape == (N, N - 1), out.shape
    assert out.dtype == jnp.float32, out.dtype

    # plain-JAX reference: dense matrix + the same shear as the PyTorch code
    diff = proj[:, None, :] - proj[None, :, :] + EPS
    dense = jnp.sqrt(jnp.sum(diff * diff, axis=-1))
    ref = dense.reshape(-1)[1:].reshape(N - 1, N + 1)[:, :-1].reshape(N, N - 1)
    max_err = float(jnp.max(jnp.abs(out - ref)))
    assert max_err < 1e-4, max_err

    print("KERNEL_OK")
</pallas_src>

<mosaic_0001>
module attributes {stable_mosaic.version = 11 : i64} {
  func.func @_pdist_nodiag_kernel(%arg0: memref<304x1xf32, #tpu.memory_space<vmem>>, %arg1: memref<304x1xf32, #tpu.memory_space<vmem>>, %arg2: memref<1x384xf32, #tpu.memory_space<vmem>>, %arg3: memref<1x384xf32, #tpu.memory_space<vmem>>, %arg4: memref<1x384xf32, #tpu.memory_space<vmem>>, %arg5: memref<1x384xf32, #tpu.memory_space<vmem>>, %arg6: memref<304x384xf32, #tpu.memory_space<vmem>>) attributes {dimension_semantics = [], scalar_prefetch = 0 : i64, scratch_operands = 0 : i64, tpu.core_type = #tpu.core_type<tc>} {
    %0 = tpu.iota {dimensions = array<i32: 1>} : vector<304x384xi32>
    %1 = tpu.iota {dimensions = array<i32: 0>} : vector<304x384xi32>
    %2 = arith.cmpi sge, %0, %1 : vector<304x384xi32>
    %c0 = arith.constant 0 : index
    %c0_0 = arith.constant 0 : index
    %3 = vector.load %arg4[%c0, %c0_0] : memref<1x384xf32, #tpu.memory_space<vmem>>, vector<1x384xf32>
    %c0_1 = arith.constant 0 : index
    %c0_2 = arith.constant 0 : index
    %4 = vector.load %arg2[%c0_1, %c0_2] : memref<1x384xf32, #tpu.memory_space<vmem>>, vector<1x384xf32>
    %5 = vector.shape_cast %3 : vector<1x384xf32> to vector<1x384xf32>
    %6 = vector.broadcast %5 : vector<1x384xf32> to vector<304x384xf32>
    %7 = vector.shape_cast %4 : vector<1x384xf32> to vector<1x384xf32>
    %8 = vector.broadcast %7 : vector<1x384xf32> to vector<304x384xf32>
    %9 = arith.select %2, %6, %8 : vector<304x384xi1>, vector<304x384xf32>
    %c0_3 = arith.constant 0 : index
    %c0_4 = arith.constant 0 : index
    %10 = vector.load %arg5[%c0_3, %c0_4] : memref<1x384xf32, #tpu.memory_space<vmem>>, vector<1x384xf32>
    %c0_5 = arith.constant 0 : index
    %c0_6 = arith.constant 0 : index
    %11 = vector.load %arg3[%c0_5, %c0_6] : memref<1x384xf32, #tpu.memory_space<vmem>>, vector<1x384xf32>
    %12 = vector.shape_cast %10 : vector<1x384xf32> to vector<1x384xf32>
    %13 = vector.broadcast %12 : vector<1x384xf32> to vector<304x384xf32>
    %14 = vector.shape_cast %11 : vector<1x384xf32> to vector<1x384xf32>
    %15 = vector.broadcast %14 : vector<1x384xf32> to vector<304x384xf32>
    %16 = arith.select %2, %13, %15 : vector<304x384xi1>, vector<304x384xf32>
    %c0_7 = arith.constant 0 : index
    %c0_8 = arith.constant 0 : index
    %17 = vector.load %arg0[%c0_7, %c0_8] : memref<304x1xf32, #tpu.memory_space<vmem>>, vector<304x1xf32>
    %18 = vector.broadcast %17 : vector<304x1xf32> to vector<304x384xf32>
    %19 = arith.subf %18, %9 : vector<304x384xf32>
    %c0_9 = arith.constant 0 : index
    %c0_10 = arith.constant 0 : index
    %20 = vector.load %arg1[%c0_9, %c0_10] : memref<304x1xf32, #tpu.memory_space<vmem>>, vector<304x1xf32>
    %21 = vector.broadcast %20 : vector<304x1xf32> to vector<304x384xf32>
    %22 = arith.subf %21, %16 : vector<304x384xf32>
    %23 = arith.mulf %19, %19 : vector<304x384xf32>
    %24 = arith.mulf %22, %22 : vector<304x384xf32>
    %25 = arith.addf %23, %24 : vector<304x384xf32>
    %26 = math.sqrt %25 : vector<304x384xf32>
    %c0_11 = arith.constant 0 : index
    %c0_12 = arith.constant 0 : index
    %27 = vector.load %arg6[%c0_11, %c0_12] : memref<304x384xf32, #tpu.memory_space<vmem>>, vector<304x384xf32>
    tpu.vector_store %arg6[%c0_11, %c0_12], %26 {strides = array<i32>} : memref<304x384xf32, #tpu.memory_space<vmem>>, vector<304x384xf32>,
    return
  }
}

</mosaic_0001>

<bundles_post_ra>
// kernel: tpu_custom_call.1
= control target key start
LH: loop header
LB: loop body
LE: loop exit
PB: predicated region body
PF: predicated region fallthrough
CT: control target
= control target key end

     0   :  { %v2690_v2 = vmov 0   ;;  %v24_v9 = vlaneseq  ;;  %s5687_s0 = inlined_call_operand.vmem [shape: f32[304,1], index: 0, kind: input, shape index: {}]   ;;  %s5688_s1 = inlined_call_operand.vmem [shape: f32[304,1], index: 1, kind: input, shape index: {}]   ;;  %s5689_s2 = inlined_call_operand.vmem [shape: f32[1,384], index: 2, kind: input, shape index: {}]   ;;  %s5690_s3 = inlined_call_operand.vmem [shape: f32[1,384], index: 3, kind: input, shape index: {}]   ;;  %s5691_s4 = inlined_call_operand.vmem [shape: f32[1,384], index: 4, kind: input, shape index: {}]   ;;  %s5692_s5 = inlined_call_operand.vmem [shape: f32[1,384], index: 5, kind: input, shape index: {}]   ;;  %s5693_s6 = inlined_call_operand.hbm [shape: f32[304,384], index: 6, kind: output, shape index: {}]  }
   0x1   :  { %v479_v0 = vld [vmem:[%s5687_s0 + $0x10] sm:$0xff]  ;;  %v477_v1 = vld [vmem:[%s5687_s0] sm:$0xff]  ;;  %2436 = vset.pattern.permute.xlu1 %v2690_v2  ;;  %2435 = vset.pattern.permute.xlu0 %v2690_v2  ;;  %v480_v3 = vld [vmem:[%s5687_s0 + $0x18] sm:$0xff] }
   0x2   :  { %527 = vperm.xlu1 %2436, %v479_v0   ;;  %517 = vperm.xlu0 %2435, %v477_v1   ;;  %v478_v4 = vld [vmem:[%s5687_s0 + $0x8] sm:$0xff]  ;;  %v481_v6 = vld [vmem:[%s5687_s0 + $0x20] sm:$0xff]  ;;  %v484_v7 = vld [vmem:[%s5687_s0 + $0x38] sm:$0xff]  ;;  %v2759_v12 = vshrl.u32 %v24_v9, 7  ;;  %v2779_v19 = vand.u32 127, %v24_v9 }
   0x3   :  { %v482_v5 = vld [vmem:[%s5687_s0 + $0x28] sm:$0xff]  ;;  %v483_v8 = vld [vmem:[%s5687_s0 + $0x30] sm:$0xff]  ;;  %v485_v11 = vld [vmem:[%s5687_s0 + $0x40] sm:$0xff] }
   0x4   :  { %v486_v10 = vld [vmem:[%s5687_s0 + $0x48] sm:$0xff]  ;;  %v488_v13 = vld [vmem:[%s5687_s0 + $0x58] sm:$0xff]  ;;  %v487_v14 = vld [vmem:[%s5687_s0 + $0x50] sm:$0xff]  ;;  %v2768_v15 = vadd.s32 64, %v2759_v12  ;;  %v2771_v16 = vadd.s32 88, %v2759_v12  ;;  %v2774_v17 = vsub.s32 0, %v2759_v12 }
   0x5   :  { %v2777_v18 = vadd.s32 80, %v2759_v12  ;;  %v2784_v20 = vld [vmem:[%s5691_s4] sm:$0x7]  ;;  %v490_v22 = vld [vmem:[%s5687_s0 + $0x68] sm:$0xff]  ;;  %v2802_v24 = vadd.s32 104, %v2759_v12  ;;  %v2805_v25 = vadd.s32 96, %v2759_v12 }
   0x6   :  { %532 = vperm.xlu1 %2436, %v480_v3   ;;  %522 = vperm.xlu0 %2435, %v478_v4   ;;  %5757 = vst [vmem:[#allocation5_spill] sm:$0xff] %v2771_v16  ;;  %v2789_v21 = vld [vmem:[%s5689_s2] sm:$0x7]  ;;  %vm5714_vm0 = vcmp.ge.s32.totalorder %v2779_v19, %v2768_v15  ;;  %vm5713_vm1 = vcmp.ge.s32.totalorder %v2779_v19, %v2771_v16 }
   0x7   :  { %5758 = vst [vmem:[#allocation6_spill] sm:$0xff] %v2777_v18  ;;  %v489_v23 = vld [vmem:[%s5687_s0 + $0x60] sm:$0xff]  ;;  %5759 = vst [vmem:[#allocation7_spill] sm:$0xff] %v2802_v24  ;;  %v2809_v26 = vrot.slane %v2784_v20, %v2774_v17  ;;  %v2813_v27 = vrot.slane %v2789_v21, %v2774_v17  ;;  %vm5712_vm2 = vcmp.ge.s32.totalorder %v2779_v19, %v2777_v18 }
   0x8   :  { %5760 = vst [vmem:[#allocation8_spill] sm:$0xff] %v2805_v25 }
   0x9   :  { %5761 = vst [vmem:[#allocation9_spill] sm:$0xff] %v2813_v27 }
   0xa   :  { %542 = vperm.xlu1 %2436, %v482_v5   ;;  %537 = vperm.xlu0 %2435, %v481_v6  }
   0xe   :  { %552 = vperm.xlu1 %2436, %v484_v7   ;;  %547 = vperm.xlu0 %2435, %v483_v8  }
  0x12   :  { %562 = vperm.xlu1 %2436, %v486_v10   ;;  %557 = vperm.xlu0 %2435, %v485_v11  }
  0x16   :  { %572 = vperm.xlu1 %2436, %v488_v13   ;;  %567 = vperm.xlu0 %2435, %v487_v14  }
  0x1a   :  { %582 = vperm.xlu1 %2436, %v490_v22   ;;  %577 = vperm.xlu0 %2435, %v489_v23  }
  0x1b   :  { %11 = vsyncpa [#allocation3], 0  ;;  %v492_v28 = vld [vmem:[%s5687_s0 + $0x78] sm:$0xff]  ;;  %v491_v29 = vld [vmem:[%s5687_s0 + $0x70] sm:$0xff]  ;;  %v2828_v30 = vsel %vm5714_vm0, %v2809_v26, %v2813_v27  ;;  %v2835_v31 = vsel %vm5713_vm1, %v2809_v26, %v2813_v27  ;;  %v2842_v32 = vsel %vm5712_vm2, %v2809_v26, %v2813_v27  ;;  %vm5711_vm3 = vcmp.ge.s32.totalorder %v2779_v19, %v2802_v24 }
  0x1c   :  { %vm5710_vm4 = vcmp.ge.s32.totalorder %v2779_v19, %v2805_v25  ;;  %v2849_v33 = vadd.s32 120, %v2759_v12  ;;  %v2856_v34 = vsel %vm5711_vm3, %v2809_v26, %v2813_v27  ;;  %v2866_v36 = vadd.s32 112, %v2759_v12  ;;  %v494_v37 = vld [vmem:[%s5687_s0 + $0x88] sm:$0xff]  ;;  %v493_v38 = vld [vmem:[%s5687_s0 + $0x80] sm:$0xff]  ;;  %v496_v41 = vld [vmem:[%s5687_s0 + $0x98] sm:$0xff] }
  0x1d   :  { %v2863_v35 = vsel %vm5710_vm4, %v2809_v26, %v2813_v27  ;;  %v495_v42 = vld [vmem:[%s5687_s0 + $0x90] sm:$0xff]  ;;  %v498_v43 = vld [vmem:[%s5687_s0 + $0xa8] sm:$0xff]  ;;  %v497_v44 = vld [vmem:[%s5687_s0 + $0xa0] sm:$0xff]  ;;  %v2935_v55 = vsub.s32 2, %v2759_v12  ;;  %v2944_v58 = vadd.s32 256, %v2779_v19  ;;  %v2947_v59 = vadd.s32 264, %v2759_v12 }
  0x1e   :  { %5762 = vst [vmem:[#allocation10_spill] sm:$0xff] %v2849_v33  ;;  %5763 = vst [vmem:[#allocation11_spill] sm:$0xff] %v2866_v36  ;;  %592 = vperm.xlu1 %2436, %v492_v28   ;;  %587 = vperm.xlu0 %2435, %v491_v29   ;;  %vm5709_vm5 = vcmp.ge.s32.totalorder %v2779_v19, %v2849_v33  ;;  %vm5708_vm6 = vcmp.ge.s32.totalorder %v2779_v19, %v2866_v36  ;;  %v500_v45 = vld [vmem:[%s5687_s0 + $0xb8] sm:$0xff]  ;;  %v499_v46 = vld [vmem:[%s5687_s0 + $0xb0] sm:$0xff]  ;;  %v2950_v60 = vadd.s32 256, %v2759_v12 }
  0x1f   :  { %v2881_v39 = vsel %vm5709_vm5, %v2809_v26, %v2813_v27  ;;  %v2890_v40 = vsel %vm5708_vm6, %v2809_v26, %v2813_v27  ;;  %v502_v47 = vld [vmem:[%s5687_s0 + $0xc8] sm:$0xff]  ;;  %v501_v48 = vld [vmem:[%s5687_s0 + $0xc0] sm:$0xff]  ;;  %v504_v49 = vld [vmem:[%s5687_s0 + $0xd8] sm:$0xff]  ;;  %5764 = vst [vmem:[#allocation12_spill] sm:$0xff] %v2935_v55  ;;  %v2954_v61 = vrot.slane %v2784_v20, %v2935_v55  ;;  %v211_v62 = vrot.slane %v2789_v21, %v2935_v55 }
  0x20   :  { %v503_v50 = vld [vmem:[%s5687_s0 + $0xd0] sm:$0xff]  ;;  %v506_v51 = vld [vmem:[%s5687_s0 + $0xe8] sm:$0xff]  ;;  %v505_v52 = vld [vmem:[%s5687_s0 + $0xe0] sm:$0xff]  ;;  %5765 = vst [vmem:[#allocation13_spill] sm:$0xff] %v2944_v58  ;;  %vm5699_vm7 = vcmp.ge.s32.totalorder %v2944_v58, %v2947_v59  ;;  %vm5698_vm8 = vcmp.ge.s32.totalorder %v2944_v58, %v2950_v60  ;;  %v2981_v3 = vadd.s32 280, %v2759_v12  ;;  %v2984_v4 = vadd.s32 272, %v2759_v12 }
  0x21   :  { %v508_v53 = vld [vmem:[%s5687_s0 + $0xf8] sm:$0xff]  ;;  %v507_v54 = vld [vmem:[%s5687_s0 + $0xf0] sm:$0xff]  ;;  %v510_v56 = vld [vmem:[%s5687_s0 + $0x108] sm:$0xff]  ;;  %5766 = vst [vmem:[#allocation14_spill] sm:$0xff] %v2947_v59  ;;  %v2966_v63 = vsel %vm5699_vm7, %v2954_v61, %v211_v62  ;;  %v2972_v0 = vsel %vm5698_vm8, %v2954_v61, %v211_v62  ;;  %v3009_v9 = vadd.s32 296, %v2759_v12  ;;  %v3012_v10 = vadd.s32 288, %v2759_v12 }
  0x22   :  { %602 = vperm.xlu1 %2436, %v494_v37   ;;  %597 = vperm.xlu0 %2435, %v493_v38   ;;  %v509_v57 = vld [vmem:[%s5687_s0 + $0x100] sm:$0xff]  ;;  %5767 = vst [vmem:[#allocation15_spill] sm:$0xff] %v2950_v60  ;;  %5768 = vst [vmem:[#allocation16_spill] sm:$0xff] %v2966_v63  ;;  %v512_v1 = vld [vmem:[%s5687_s0 + $0x118] sm:$0xff]  ;;  %vm5697_vm9 = vcmp.ge.s32.totalorder %v2944_v58, %v2981_v3  ;;  %vm5696_vm10 = vcmp.ge.s32.totalorder %v2944_v58, %v2984_v4  ;;  %v3321_v63 = vadd.s32 224, %v2759_v12 }
  0x23   :  { %5769 = vst [vmem:[#allocation17_spill] sm:$0xff] %v2972_v0  ;;  %v511_v2 = vld [vmem:[%s5687_s0 + $0x110] sm:$0xff]  ;;  %5770 = vst [vmem:[#allocation18_spill] sm:$0xff] %v2981_v3  ;;  %v2994_v5 = vsel %vm5697_vm9, %v2954_v61, %v211_v62  ;;  %v3000_v6 = vsel %vm5696_vm10, %v2954_v61, %v211_v62  ;;  %v514_v7 = vld [vmem:[%s5687_s0 + $0x128] sm:$0xff]  ;;  %vm5695_vm11 = vcmp.ge.s32.totalorder %v2944_v58, %v3009_v9  ;;  %v3318_v0 = vadd.s32 232, %v2759_v12 }
  0x24   :  { %5771 = vst [vmem:[#allocation19_spill] sm:$0xff] %v2984_v4  ;;  %5772 = vst [vmem:[#allocation20_spill] sm:$0xff] %v2994_v5  ;;  %v513_v8 = vld [vmem:[%s5687_s0 + $0x120] sm:$0xff]  ;;  %vm5694_vm12 = vcmp.ge.s32.totalorder %v2944_v58, %v3012_v10  ;;  %v3022_v11 = vsel %vm5695_vm11, %v2954_v61, %v211_v62  ;;  %v820_v14 = vld [vmem:[%s5688_s1 + $0x8] sm:$0xff]  ;;  %vm67_vm14 = vcmp.ge.s32.totalorder %v2779_v19, %v2759_v12  ;;  %v3324_v33 = vadd.s32 248, %v2759_v12 }
  0x25   :  { %5773 = vst [vmem:[#allocation21_spill] sm:$0xff] %v3000_v6  ;;  %5774 = vst [vmem:[#allocation22_spill] sm:$0xff] %v3009_v9  ;;  %v3028_v13 = vsel %vm5694_vm12, %v2954_v61, %v211_v62  ;;  %v819_v22 = vld [vmem:[%s5688_s1] sm:$0xff]  ;;  %v822_v23 = vld [vmem:[%s5688_s1 + $0x18] sm:$0xff]  ;;  %v3311_v6 = vadd.s32 208, %v2759_v12  ;;  %v3327_v25 = vadd.s32 240, %v2759_v12 }
  0x26   :  { %612 = vperm.xlu1 %2436, %v496_v41   ;;  %607 = vperm.xlu0 %2435, %v495_v42   ;;  %5775 = vst [vmem:[#allocation23_spill] sm:$0xff] %v3012_v10  ;;  %5776 = vst [vmem:[#allocation24_spill] sm:$0xff] %v3022_v11  ;;  %v821_v28 = vld [vmem:[%s5688_s1 + $0x10] sm:$0xff]  ;;  %v824_v29 = vld [vmem:[%s5688_s1 + $0x28] sm:$0xff]  ;;  %v3308_v11 = vadd.s32 216, %v2759_v12 }
  0x27   :  { %5777 = vst [vmem:[#allocation25_spill] sm:$0xff] %v3028_v13  ;;  %v823_v37 = vld [vmem:[%s5688_s1 + $0x20] sm:$0xff]  ;;  %v826_v38 = vld [vmem:[%s5688_s1 + $0x38] sm:$0xff]  ;;  %v825_v41 = vld [vmem:[%s5688_s1 + $0x30] sm:$0xff]  ;;  %v3305_v13 = vadd.s32 192, %v2759_v12 }
  0x28   :  { %v828_v42 = vld [vmem:[%s5688_s1 + $0x48] sm:$0xff]  ;;  %v841_v62 = vld [vmem:[%s5688_s1 + $0xb0] sm:$0xff]  ;;  %5789 = vst [vmem:[#allocation37_spill] sm:$0xff] %v3308_v11  ;;  %5790 = vst [vmem:[#allocation38_spill] sm:$0xff] %v3311_v6 }
  0x29   :  { %v849_v10 = vld [vmem:[%s5688_s1 + $0xf0] sm:$0xff]  ;;  %5788 = vst [vmem:[#allocation36_spill] sm:$0xff] %v3305_v13  ;;  %5791 = vst [vmem:[#allocation39_spill] sm:$0xff] %v3318_v0 }
  0x2a   :  { %622 = vperm.xlu1 %2436, %v498_v43   ;;  %617 = vperm.xlu0 %2435, %v497_v44   ;;  %v827_v43 = vld [vmem:[%s5688_s1 + $0x40] sm:$0xff]  ;;  %v830_v44 = vld [vmem:[%s5688_s1 + $0x58] sm:$0xff]  ;;  %5792 = vst [vmem:[#allocation40_spill] sm:$0xff] %v3321_v63  ;;  %5793 = vst [vmem:[#allocation41_spill] sm:$0xff] %v3324_v33 }
  0x2b   :  { %5794 = vst [vmem:[#allocation42_spill] sm:$0xff] %v3327_v25  ;;  %v853_v18 = vld [vmem:[%s5688_s1 + $0x110] sm:$0xff] }
  0x2e   :  { %632 = vperm.xlu1 %2436, %v500_v45   ;;  %627 = vperm.xlu0 %2435, %v499_v46   ;;  %v829_v45 = vld [vmem:[%s5688_s1 + $0x50] sm:$0xff]  ;;  %v832_v46 = vld [vmem:[%s5688_s1 + $0x68] sm:$0xff] }
  0x32   :  { %642 = vperm.xlu1 %2436, %v502_v47   ;;  %637 = vperm.xlu0 %2435, %v501_v48   ;;  %v831_v47 = vld [vmem:[%s5688_s1 + $0x60] sm:$0xff]  ;;  %v834_v48 = vld [vmem:[%s5688_s1 + $0x78] sm:$0xff] }
  0x36   :  { %652 = vperm.xlu1 %2436, %v504_v49   ;;  %647 = vperm.xlu0 %2435, %v503_v50   ;;  %v833_v49 = vld [vmem:[%s5688_s1 + $0x70] sm:$0xff]  ;;  %v836_v50 = vld [vmem:[%s5688_s1 + $0x88] sm:$0xff] }
  0x3a   :  { %662 = vperm.xlu1 %2436, %v506_v51   ;;  %657 = vperm.xlu0 %2435, %v505_v52   ;;  %v835_v51 = vld [vmem:[%s5688_s1 + $0x80] sm:$0xff]  ;;  %v838_v52 = vld [vmem:[%s5688_s1 + $0x98] sm:$0xff] }
  0x3e   :  { %672 = vperm.xlu1 %2436, %v508_v53   ;;  %667 = vperm.xlu0 %2435, %v507_v54   ;;  %v837_v53 = vld [vmem:[%s5688_s1 + $0x90] sm:$0xff]  ;;  %v840_v54 = vld [vmem:[%s5688_s1 + $0xa8] sm:$0xff] }
  0x42   :  { %682 = vperm.xlu1 %2436, %v510_v56   ;;  %677 = vperm.xlu0 %2435, %v509_v57   ;;  %v839_v56 = vld [vmem:[%s5688_s1 + $0xa0] sm:$0xff]  ;;  %v842_v57 = vld [vmem:[%s5688_s1 + $0xb8] sm:$0xff] }
  0x46   :  { %692 = vperm.xlu1 %2436, %v512_v1   ;;  %687 = vperm.xlu0 %2435, %v511_v2   ;;  %v844_v1 = vld [vmem:[%s5688_s1 + $0xc8] sm:$0xff]  ;;  %v843_v2 = vld [vmem:[%s5688_s1 + $0xc0] sm:$0xff] }
  0x4a   :  { %702 = vperm.xlu1 %2436, %v514_v7   ;;  %697 = vperm.xlu0 %2435, %v513_v8   ;;  %v3109_v7 = vadd.s32 16, %v2759_v12  ;;  %v846_v8 = vld [vmem:[%s5688_s1 + $0xd8] sm:$0xff] }
  0x4c   :  { %vm73_vm13 = vcmp.ge.s32.totalorder %v2779_v19, %v3109_v7 }
  0x4e   :  { %864 = vperm.xlu1 %2436, %v820_v14   ;;  %859 = vperm.xlu0 %2435, %v819_v22   ;;  %v3115_v14 = vadd.s32 24, %v2759_v12  ;;  %v3118_v22 = vadd.s32 8, %v2759_v12 }
  0x50   :  { %vm76_vm15 = vcmp.ge.s32.totalorder %v2779_v19, %v3115_v14  ;;  %vm70_vm12 = vcmp.ge.s32.totalorder %v2779_v19, %v3118_v22 }
  0x52   :  { %874 = vperm.xlu1 %2436, %v822_v23   ;;  %869 = vperm.xlu0 %2435, %v821_v28   ;;  %v845_v23 = vld [vmem:[%s5688_s1 + $0xd0] sm:$0xff]  ;;  %v3124_v28 = vadd.s32 40, %v2759_v12 }
  0x54   :  { %vm82_vm11 = vcmp.ge.s32.totalorder %v2779_v19, %v3124_v28 }
  0x56   :  { %884 = vperm.xlu1 %2436, %v824_v29   ;;  %879 = vperm.xlu0 %2435, %v823_v37   ;;  %v3127_v29 = vadd.s32 32, %v2759_v12  ;;  %v3130_v37 = vadd.s32 56, %v2759_v12 }
  0x58   :  { %vm79_vm10 = vcmp.ge.s32.totalorder %v2779_v19, %v3127_v29  ;;  %vm88_vm9 = vcmp.ge.s32.totalorder %v2779_v19, %v3130_v37 }
  0x59   :  { %v3258_v3 = vsel %vm88_vm9, %v2809_v26, %v2813_v27 }
  0x5a   :  { %894 = vperm.xlu1 %2436, %v826_v38   ;;  %889 = vperm.xlu0 %2435, %v825_v41   ;;  %v3133_v38 = vadd.s32 48, %v2759_v12 }
  0x5c   :  { %vm5737_vm8 = vcmp.ge.s32.totalorder %v2779_v19, %v3133_v38 }
  0x5d   :  { %v3265_v60 = vsel %vm5737_vm8, %v2809_v26, %v2813_v27 }
  0x5e   :  { %904 = vperm.xlu1 %2436, %v828_v42   ;;  %899 = vperm.xlu0 %2435, %v827_v43   ;;  %v3138_v42 = vsub.s32 1, %v2759_v12 }
  0x60   :  { %v3276_v58 = vrot.slane %v2789_v21, %v3138_v42  ;;  %v3296_v21 = vadd.s32 176, %v2759_v12 }
  0x62   :  { %914 = vperm.xlu1 %2436, %v830_v44   ;;  %909 = vperm.xlu0 %2435, %v829_v45   ;;  %v3143_v44 = vadd.s32 72, %v2759_v12  ;;  %v848_v45 = vld [vmem:[%s5688_s1 + $0xe8] sm:$0xff]  ;;  %5786 = vst [vmem:[#allocation34_spill] sm:$0xff] %v3296_v21 }
  0x64   :  { %vm5736_vm7 = vcmp.ge.s32.totalorder %v2779_v19, %v3143_v44 }
  0x65   :  { %v3272_v59 = vsel %vm5736_vm7, %v2809_v26, %v2813_v27 }
  0x66   :  { %924 = vperm.xlu1 %2436, %v832_v46   ;;  %919 = vperm.xlu0 %2435, %v831_v47   ;;  %v847_v46 = vld [vmem:[%s5688_s1 + $0xe0] sm:$0xff]  ;;  %v3169_v47 = vrot.slane %v2784_v20, %v3138_v42  ;;  %v3188_v20 = vadd.s32 136, %v2759_v12 }
  0x68   :  { %5779 = vst [vmem:[#allocation27_spill] sm:$0xff] %v3188_v20 }
  0x6a   :  { %934 = vperm.xlu1 %2436, %v834_v48   ;;  %929 = vperm.xlu0 %2435, %v833_v49   ;;  %v3176_v48 = vsel %vm73_vm13, %v2809_v26, %v2813_v27 }
  0x6e   :  { %944 = vperm.xlu1 %2436, %v836_v50   ;;  %939 = vperm.xlu0 %2435, %v835_v51   ;;  %v3185_v51 = vadd.s32 128, %v2779_v19 }
  0x70   :  { %5778 = vst [vmem:[#allocation26_spill] sm:$0xff] %v3185_v51  ;;  %vm5735_vm6 = vcmp.ge.s32.totalorder %v3185_v51, %v3188_v20  ;;  %vm5753_vm7 = vcmp.ge.s32.totalorder %v3185_v51, %v3324_v33  ;;  %vm5752_vm8 = vcmp.ge.s32.totalorder %v3185_v51, %v3327_v25 }
  0x71   :  { %v3334_v24 = vsel %vm5735_vm6, %v3169_v47, %v3276_v58  ;;  %vm5754_vm6 = vcmp.ge.s32.totalorder %v3185_v51, %v3321_v63 }
  0x72   :  { %954 = vperm.xlu1 %2436, %v838_v52   ;;  %949 = vperm.xlu0 %2435, %v837_v53   ;;  %v3191_v52 = vadd.s32 128, %v2759_v12  ;;  %v3194_v53 = vadd.s32 152, %v2759_v12 }
  0x74   :  { %5780 = vst [vmem:[#allocation28_spill] sm:$0xff] %v3191_v52  ;;  %5781 = vst [vmem:[#allocation29_spill] sm:$0xff] %v3194_v53  ;;  %vm5734_vm5 = vcmp.ge.s32.totalorder %v3185_v51, %v3191_v52  ;;  %vm5732_vm4 = vcmp.ge.s32.totalorder %v3185_v51, %v3194_v53  ;;  %v854_v52 = vld [vmem:[%s5688_s1 + $0x118] sm:$0xff] }
  0x76   :  { %964 = vperm.xlu1 %2436, %v840_v54   ;;  %959 = vperm.xlu0 %2435, %v839_v56   ;;  %v3197_v54 = vadd.s32 144, %v2759_v12  ;;  %v3204_v56 = vsel %vm67_vm14, %v2809_v26, %v2813_v27 }
  0x78   :  { %5782 = vst [vmem:[#allocation30_spill] sm:$0xff] %v3197_v54  ;;  %vm5725_vm3 = vcmp.ge.s32.totalorder %v3185_v51, %v3197_v54 }
  0x79   :  { %v3355_v20 = vsel %vm5725_vm3, %v3169_v47, %v3276_v58  ;;  %vm134_vm3 = vcmp.ge.s32.totalorder %v3185_v51, %v3296_v21 }
  0x7a   :  { %974 = vperm.xlu1 %2436, %v842_v57   ;;  %969 = vperm.xlu0 %2435, %v841_v62   ;;  %v850_v57 = vld [vmem:[%s5688_s1 + $0xf8] sm:$0xff]  ;;  %v3210_v62 = vadd.s32 168, %v2759_v12  ;;  %5795 = vst [vmem:[#allocation43_spill] sm:$0xff] %v3355_v20  ;;  %v3423_v16 = vsel %vm134_vm3, %v3169_v47, %v3276_v58 }
  0x7c   :  { %5783 = vst [vmem:[#allocation31_spill] sm:$0xff] %v3210_v62  ;;  %vm5731_vm2 = vcmp.ge.s32.totalorder %v3185_v51, %v3210_v62  ;;  %v329_v62 = vld [vmem:[%s5692_s5] sm:$0x7] }
  0x7d   :  { %v3365_v53 = vsel %vm5731_vm2, %v3169_v47, %v3276_v58  ;;  %vm149_vm2 = vcmp.ge.s32.totalorder %v3185_v51, %v3308_v11  ;;  %v3478_v11 = vsel %vm5754_vm6, %v3169_v47, %v3276_v58  ;;  %v3503_v33 = vrot.slane %v329_v62, %v2935_v55 }
  0x7e   :  { %984 = vperm.xlu1 %2436, %v844_v1   ;;  %979 = vperm.xlu0 %2435, %v843_v2   ;;  %v3213_v1 = vadd.s32 160, %v2759_v12  ;;  %v3216_v2 = vadd.s32 184, %v2759_v12  ;;  %5796 = vst [vmem:[#allocation44_spill] sm:$0xff] %v3365_v53  ;;  %v3426_v53 = vrot.slane %v329_v62, %v2774_v17  ;;  %5801 = vst [vmem:[#allocation49_spill] sm:$0xff] %v3478_v11 }
  0x80   :  { %5784 = vst [vmem:[#allocation32_spill] sm:$0xff] %v3213_v1  ;;  %5785 = vst [vmem:[#allocation33_spill] sm:$0xff] %v3216_v2  ;;  %vm5730_vm1 = vcmp.ge.s32.totalorder %v3185_v51, %v3213_v1  ;;  %vm5729_vm0 = vcmp.ge.s32.totalorder %v3185_v51, %v3216_v2  ;;  %v3389_v1 = vld [vmem:[%s5690_s3] sm:$0x7] }
  0x81   :  { %v3135_v41 = vpop.permute.xlu1 %527  ;;  %v3140_v43 = vpop.permute.xlu0 %517  ;;  %v3372_v54 = vsel %vm5730_vm1, %v3169_v47, %v3276_v58  ;;  %5799 = vst [vmem:[#allocation47_spill] sm:$0xff] %v3389_v1  ;;  %vm140_vm1 = vcmp.ge.s32.totalorder %v3185_v51, %v3305_v13  ;;  %v3430_v20 = vrot.slane %v3389_v1, %v2774_v17  ;;  %v3454_v17 = vsel %vm149_vm2, %v3169_v47, %v3276_v58  ;;  %v855_v13 = vld [vmem:[%s5688_s1 + $0x120] sm:$0xff] }
  0x82   :  { %994 = vperm.xlu1 %2436, %v846_v8   ;;  %989 = vperm.xlu0 %2435, %v845_v23   ;;  %v3223_v8 = vsel %vm76_vm15, %v2809_v26, %v2813_v27  ;;  %v3230_v23 = vsel %vm70_vm12, %v2809_v26, %v2813_v27  ;;  %5797 = vst [vmem:[#allocation45_spill] sm:$0xff] %v3372_v54 }
  0x83   :  { %v3447_v21 = vsel %vm140_vm1, %v3169_v47, %v3276_v58  ;;  %v711_v1 = vsub.f32 %v3135_v41, %v3176_v48  ;;  %v712_v63 = vsub.f32 %v3135_v41, %v3169_v47  ;;  %v713_v25 = vsub.f32 %v3135_v41, %v2954_v61 }
  0x84   :  { %v3523_v55 = vsel %vm70_vm12, %v3426_v53, %v3430_v20  ;;  %v705_v22 = vsub.f32 %v3140_v43, %v3204_v56  ;;  %v706_v14 = vsub.f32 %v3140_v43, %v3169_v47  ;;  %v707_v41 = vsub.f32 %v3140_v43, %v2954_v61 }
  0x85   :  { %v3178_v49 = vpop.permute.xlu1 %532  ;;  %v3180_v50 = vpop.permute.xlu0 %522  ;;  %v3564_v7 = vsel %vm79_vm10, %v3426_v53, %v3430_v20  ;;  %v3568_v28 = vmul.f32 %v712_v63, %v712_v63  ;;  %v3579_v43 = vsel %vm88_vm9, %v3426_v53, %v3430_v20  ;;  %v3588_v63 = vmul.f32 %v713_v25, %v713_v25 }
  0x86   :  { %1004 = vperm.xlu1 %2436, %v848_v45   ;;  %999 = vperm.xlu0 %2435, %v847_v46   ;;  %v3237_v45 = vsel %vm82_vm11, %v2809_v26, %v2813_v27  ;;  %v3244_v46 = vsel %vm79_vm10, %v2809_v26, %v2813_v27  ;;  %v852_v26 = vld [vmem:[%s5688_s1 + $0x108] sm:$0xff]  ;;  %v3341_v27 = vsel %vm5734_vm5, %v3169_v47, %v3276_v58 }
  0x87   :  { %vm5755_vm5 = vcmp.ge.s32.totalorder %v3185_v51, %v3318_v0  ;;  %v3492_v0 = vsel %vm5752_vm8, %v3169_v47, %v3276_v58  ;;  %5804 = vst [vmem:[#allocation52_spill] sm:$0xff] %v3564_v7  ;;  %5806 = vst [vmem:[#allocation54_spill] sm:$0xff] %v3568_v28  ;;  %vm5808_vm10 = vcmp.ge.s32.totalorder %v2779_v19, %v3133_v38 }
  0x88   :  { %5807 = vst [vmem:[#allocation55_spill] sm:$0xff] %v3579_v43  ;;  %v3586_v29 = vsel %vm5808_vm10, %v3426_v53, %v3430_v20  ;;  %5810 = vst [vmem:[#allocation57_spill] sm:$0xff] %v3588_v63  ;;  %v715_v43 = vsub.f32 %v3178_v49, %v3169_v47  ;;  %v716_v38 = vsub.f32 %v3178_v49, %v2954_v61 }
  0x89   :  { %v3249_v9 = vpop.permute.xlu1 %542  ;;  %v3251_v4 = vpop.permute.xlu0 %537  ;;  %5809 = vst [vmem:[#allocation56_spill] sm:$0xff] %v3586_v29  ;;  %v708_v25 = vsub.f32 %v3180_v50, %v3230_v23  ;;  %v3608_v29 = vmul.f32 %v705_v22, %v705_v22  ;;  %v3612_v63 = vmul.f32 %v707_v41, %v707_v41  ;;  %vm5811_vm9 = vcmp.ge.s32.totalorder %v2779_v19, %v3143_v44 }
  0x8a   :  { %1014 = vperm.xlu1 %2436, %v850_v57   ;;  %1009 = vperm.xlu0 %2435, %v849_v10   ;;  %v851_v10 = vld [vmem:[%s5688_s1 + $0x100] sm:$0xff]  ;;  %v3302_v57 = vadd.s32 200, %v2759_v12  ;;  %v3551_v12 = vsel %vm82_vm11, %v3426_v53, %v3430_v20  ;;  %v720_v28 = vsub.f32 %v3249_v9, %v3237_v45  ;;  %v3629_v22 = vsel %vm5811_vm9, %v3426_v53, %v3430_v20 }
  0x8b   :  { %5803 = vst [vmem:[#allocation51_spill] sm:$0xff] %v3551_v12  ;;  %5812 = vst [vmem:[#allocation58_spill] sm:$0xff] %v3629_v22  ;;  %vm5813_vm11 = vcmp.ge.s32.totalorder %v2779_v19, %v2768_v15  ;;  %v3650_v22 = vmul.f32 %v715_v43, %v715_v43  ;;  %v3652_v12 = vmul.f32 %v716_v38, %v716_v38 }
  0x8c   :  { %5787 = vst [vmem:[#allocation35_spill] sm:$0xff] %v3302_v57  ;;  %v3654_v15 = vmul.f32 %v708_v25, %v708_v25 }
  0x8d   :  { %v3313_v5 = vpop.permute.xlu1 %552  ;;  %v3315_v36 = vpop.permute.xlu0 %547  ;;  %5816 = vst [vmem:[#allocation61_spill] sm:$0xff] %v3650_v22  ;;  %5817 = vst [vmem:[#allocation62_spill] sm:$0xff] %v3652_v12 }
  0x8e   :  { %1024 = vperm.xlu1 %2436, %v852_v26   ;;  %v3348_v26 = vsel %vm5732_vm4, %v3169_v47, %v3276_v58  ;;  %1019 = vperm.xlu0 %2435, %v851_v10   ;;  %v3379_v10 = vsel %vm5729_vm0, %v3169_v47, %v3276_v58  ;;  %vm143_vm0 = vcmp.ge.s32.totalorder %v3185_v51, %v3302_v57 }
  0x8f   :  { %5798 = vst [vmem:[#allocation46_spill] sm:$0xff] %v3379_v10  ;;  %vm5756_vm4 = vcmp.ge.s32.totalorder %v3185_v51, %v3311_v6  ;;  %v3471_v57 = vsel %vm5755_vm5, %v3169_v47, %v3276_v58  ;;  %v3485_v6 = vsel %vm5753_vm7, %v3169_v47, %v3276_v58  ;;  %v726_v38 = vsub.f32 %v3313_v5, %v3258_v3 }
  0x90   :  { %5800 = vst [vmem:[#allocation48_spill] sm:$0xff] %v3471_v57  ;;  %5802 = vst [vmem:[#allocation50_spill] sm:$0xff] %v3485_v6  ;;  %v3506_v6 = vrot.slane %v329_v62, %v3138_v42  ;;  %v3566_v62 = vmul.f32 %v711_v1, %v711_v1  ;;  %v714_v1 = vsub.f32 %v3178_v49, %v3223_v8 }
  0x91   :  { %v3402_v2 = vpop.permute.xlu1 %562  ;;  %v3404_v10 = vpop.permute.xlu0 %557  ;;  %v709_v8 = vsub.f32 %v3180_v50, %v3169_v47  ;;  %v721_v49 = vsub.f32 %v3249_v9, %v3169_v47  ;;  %v727_v25 = vsub.f32 %v3313_v5, %v3169_v47  ;;  %v728_v12 = vsub.f32 %v3313_v5, %v2954_v61 }
  0x92   :  { %v3416_v54 = vsub.f32 %v3404_v10, %v2828_v30  ;;  %1034 = vperm.xlu1 %2436, %v854_v52   ;;  %1029 = vperm.xlu0 %2435, %v853_v18   ;;  %v856_v30 = vld [vmem:[%s5688_s1 + $0x128] sm:$0xff]  ;;  %v3440_v52 = vsel %vm143_vm0, %v3169_v47, %v3276_v58  ;;  %v3461_v18 = vsel %vm5756_vm4, %v3169_v47, %v3276_v58 }
  0x93   :  { %5805 = vst [vmem:[#allocation53_spill] sm:$0xff] %v3566_v62  ;;  %v3638_v45 = vmul.f32 %v714_v1, %v714_v1  ;;  %v3668_v43 = vmul.f32 %v721_v49, %v721_v49  ;;  %v724_v3 = vsub.f32 %v3315_v36, %v3169_v47  ;;  %v725_v49 = vsub.f32 %v3315_v36, %v2954_v61 }
  0x94   :  { %v3710_v22 = vmul.f32 %v727_v25, %v727_v25 }
  0x95   :  { %v3498_v11 = vpop.permute.xlu1 %572  ;;  %v3500_v57 = vpop.permute.xlu0 %567  ;;  %5815 = vst [vmem:[#allocation60_spill] sm:$0xff] %v3638_v45  ;;  %v3666_v45 = vmul.f32 %v720_v28, %v720_v28  ;;  %5819 = vst [vmem:[#allocation64_spill] sm:$0xff] %v3668_v43  ;;  %v734_v43 = vsub.f32 %v3402_v2, %v2954_v61  ;;  %v3730_v25 = vmul.f32 %v725_v49, %v725_v49 }
  0x96   :  { %v3512_v51 = vsub.f32 %v3498_v11, %v2835_v31  ;;  %v3516_v48 = vsub.f32 %v3500_v57, %v2842_v32  ;;  %1044 = vperm.xlu1 %2436, %v856_v30   ;;  %1039 = vperm.xlu0 %2435, %v855_v13   ;;  %v3530_v31 = vsel %vm67_vm14, %v3426_v53, %v3430_v20 }
  0x97   :  { %v3537_v32 = vsel %vm76_vm15, %v3426_v53, %v3430_v20  ;;  %v3544_v13 = vsel %vm73_vm13, %v3426_v53, %v3430_v20  ;;  %5818 = vst [vmem:[#allocation63_spill] sm:$0xff] %v3666_v45  ;;  %5824 = vst [vmem:[#allocation69_spill] sm:$0xff] %v3710_v22 }
  0x98   :  { %5825 = vst [vmem:[#allocation70_spill] sm:$0xff] %v3730_v25 }
  0x99   :  { %v3570_v30 = vpop.permute.xlu1 %582  ;;  %v3572_v56 = vpop.permute.xlu0 %577 }
  0x9a   :  { %v3594_v7 = vsub.f32 %v3570_v30, %v2856_v34  ;;  %v3598_v37 = vsub.f32 %v3572_v56, %v2863_v35  ;;  %v3610_v34 = vmul.f32 %v706_v14, %v706_v14  ;;  %v710_v35 = vsub.f32 %v3180_v50, %v2954_v61 }
  0x9b   :  { %v3636_v50 = vsel %vm5813_vm11, %v3426_v53, %v3430_v20  ;;  %v722_v14 = vsub.f32 %v3249_v9, %v2954_v61  ;;  %v717_v9 = vsub.f32 %v3251_v4, %v3244_v46 }
  0x9c   :  { %5814 = vst [vmem:[#allocation59_spill] sm:$0xff] %v3636_v50  ;;  %v3656_v50 = vmul.f32 %v709_v8, %v709_v8  ;;  %v3658_v1 = vmul.f32 %v710_v35, %v710_v35 }
  0x9d   :  { %v3620_v62 = vpop.permute.xlu1 %592  ;;  %v3622_v23 = vpop.permute.xlu0 %587  ;;  %v3678_v46 = vmul.f32 %v722_v14, %v722_v14  ;;  %v732_v14 = vsub.f32 %v3402_v2, %v3272_v59  ;;  %v3698_v5 = vmul.f32 %v717_v9, %v717_v9 }
  0x9e   :  { %v3644_v41 = vsub.f32 %v3620_v62, %v2881_v39  ;;  %v3648_v44 = vsub.f32 %v3622_v23, %v2890_v40  ;;  %v718_v39 = vsub.f32 %v3251_v4, %v3169_v47  ;;  %v719_v40 = vsub.f32 %v3251_v4, %v2954_v61 }
  0x9f   :  { %5820 = vst [vmem:[#allocation65_spill] sm:$0xff] %v3678_v46  ;;  %v723_v4 = vsub.f32 %v3315_v36, %v3265_v60  ;;  %v3708_v36 = vmul.f32 %v726_v38, %v726_v38  ;;  %v3728_v38 = vmul.f32 %v724_v3, %v724_v3  ;;  %v3732_v22 = vmul.f32 %v732_v14, %v732_v14 }
  0xa0   :  { %v3700_v60 = vmul.f32 %v718_v39, %v718_v39  ;;  %v3706_v45 = vmul.f32 %v719_v40, %v719_v40  ;;  %v3718_v39 = vmul.f32 %v728_v12, %v728_v12  ;;  %v3748_v3 = vmul.f32 %v3416_v54, %v3416_v54  ;;  %v5834_v54 = vld [vmem:[#allocation5_spill] sm:$0xff] }
  0xa1   :  { %v3674_v8 = vpop.permute.xlu1 %602  ;;  %v3676_v35 = vpop.permute.xlu0 %597  ;;  %5823 = vst [vmem:[#allocation68_spill] sm:$0xff] %v3708_v36  ;;  %5826 = vst [vmem:[#allocation71_spill] sm:$0xff] %v3732_v22  ;;  %v5827_v36 = vld [vmem:[#allocation43_spill] sm:$0xff]  ;;  %v736_v14 = vsub.f32 %v3500_v57, %v3169_v47  ;;  %vm5835_vm12 = vcmp.ge.s32.totalorder %v2779_v19, %v5834_v54 }
  0xa2   :  { %v3686_v28 = vsub.f32 %v3674_v8, %v3334_v24  ;;  %v3696_v46 = vsub.f32 %v3676_v35, %v3341_v27  ;;  %5821 = vst [vmem:[#allocation66_spill] sm:$0xff] %v3700_v60  ;;  %v733_v24 = vsub.f32 %v3402_v2, %v3169_v47  ;;  %5822 = vst [vmem:[#allocation67_spill] sm:$0xff] %v3706_v45 }
  0xa3   :  { %v730_v27 = vsub.f32 %v3404_v10, %v3169_v47  ;;  %v3720_v60 = vmul.f32 %v723_v4, %v723_v4  ;;  %v731_v2 = vsub.f32 %v3404_v10, %v2954_v61  ;;  %v3740_v4 = vmul.f32 %v734_v43, %v734_v43  ;;  %5830 = vst [vmem:[#allocation73_spill] sm:$0xff] %v3748_v3 }
  0xa4   :  { %v3738_v12 = vmul.f32 %v733_v24, %v733_v24  ;;  %v739_v10 = vsub.f32 %v3498_v11, %v3169_v47  ;;  %v737_v24 = vsub.f32 %v3500_v57, %v2954_v61  ;;  %v3774_v57 = vmul.f32 %v3512_v51, %v3512_v51 }
  0xa5   :  { %v3714_v59 = vpop.permute.xlu1 %612  ;;  %v3716_v9 = vpop.permute.xlu0 %607  ;;  %5829 = vst [vmem:[#allocation72_spill] sm:$0xff] %v3740_v4  ;;  %v3750_v49 = vmul.f32 %v730_v27, %v730_v27  ;;  %v3758_v4 = vmul.f32 %v731_v2, %v731_v2  ;;  %v3770_v27 = vsel %vm5835_vm12, %v3426_v53, %v3430_v20  ;;  %v746_v2 = vsub.f32 %v3570_v30, %v2954_v61 }
  0xa6   :  { %v3726_v40 = vsub.f32 %v3714_v59, %v3348_v26  ;;  %v3736_v45 = vsub.f32 %v3716_v9, %v5827_v36  ;;  %5828 = vst [vmem:[#allocation43_spill] sm:$0xff] %v3738_v12  ;;  %v740_v26 = vsub.f32 %v3498_v11, %v2954_v61  ;;  %v745_v11 = vsub.f32 %v3570_v30, %v3169_v47  ;;  %v5833_v12 = vld [vmem:[#allocation44_spill] sm:$0xff] }
  0xa7   :  { %5831 = vst [vmem:[#allocation74_spill] sm:$0xff] %v3750_v49  ;;  %5832 = vst [vmem:[#allocation75_spill] sm:$0xff] %v3758_v4  ;;  %v5838_v4 = vld [vmem:[#allocation45_spill] sm:$0xff]  ;;  %v3789_v54 = vmul.f32 %v739_v10, %v739_v10  ;;  %v742_v51 = vsub.f32 %v3572_v56, %v3169_v47  ;;  %v743_v30 = vsub.f32 %v3572_v56, %v2954_v61 }
  0xa8   :  { %5836 = vst [vmem:[#allocation44_spill] sm:$0xff] %v3770_v27  ;;  %5837 = vst [vmem:[#allocation5_spill] sm:$0xff] %v3774_v57  ;;  %v3791_v27 = vmul.f32 %v740_v26, %v740_v26  ;;  %v3801_v57 = vmul.f32 %v736_v14, %v736_v14  ;;  %v3803_v25 = vmul.f32 %v737_v24, %v737_v24 }
  0xa9   :  { %v623_v43 = vpop.permute.xlu1 %622  ;;  %v3756_v36 = vpop.permute.xlu0 %617  ;;  %5841 = vst [vmem:[#allocation45_spill] sm:$0xff] %v3789_v54  ;;  %v751_v10 = vsub.f32 %v3620_v62, %v3169_v47  ;;  %v3811_v54 = vmul.f32 %v745_v11, %v745_v11  ;;  %v752_v56 = vsub.f32 %v3620_v62, %v2954_v61  ;;  %v3818_v14 = vmul.f32 %v746_v2, %v746_v2 }
  0xaa   :  { %v3763_v22 = vsub.f32 %v623_v43, %v5833_v12  ;;  %v3780_v49 = vsub.f32 %v3756_v36, %v5838_v4  ;;  %v5839_v12 = vld [vmem:[#allocation6_spill] sm:$0xff]  ;;  %v3799_v4 = vmul.f32 %v3516_v48, %v3516_v48  ;;  %5844 = vst [vmem:[#allocation77_spill] sm:$0xff] %v3801_v57  ;;  %5845 = vst [vmem:[#allocation78_spill] sm:$0xff] %v3803_v25 }
  0xab   :  { %vm5840_vm13 = vcmp.ge.s32.totalorder %v2779_v19, %v5839_v12  ;;  %5842 = vst [vmem:[#allocation6_spill] sm:$0xff] %v3791_v27  ;;  %v3809_v27 = vmul.f32 %v3594_v7, %v3594_v7  ;;  %v5846_v48 = vld [vmem:[#allocation46_spill] sm:$0xff]  ;;  %v748_v24 = vsub.f32 %v3622_v23, %v3169_v47  ;;  %v749_v25 = vsub.f32 %v3622_v23, %v2954_v61 }
  0xac   :  { %v3787_v3 = vsel %vm5840_vm13, %v3426_v53, %v3430_v20  ;;  %5843 = vst [vmem:[#allocation76_spill] sm:$0xff] %v3799_v4  ;;  %5847 = vst [vmem:[#allocation46_spill] sm:$0xff] %v3818_v14  ;;  %v3829_v7 = vmul.f32 %v3598_v37, %v3598_v37  ;;  %v3831_v11 = vmul.f32 %v742_v51, %v742_v51 }
  0xad   :  { %v633_v12 = vpop.permute.xlu1 %632  ;;  %v628_v26 = vpop.permute.xlu0 %627  ;;  %v3833_v62 = vmul.f32 %v743_v30, %v743_v30  ;;  %v3839_v47 = vmul.f32 %v3644_v41, %v3644_v41  ;;  %v3841_v14 = vmul.f32 %v751_v10, %v751_v10  ;;  %v3851_v30 = vmul.f32 %v3648_v44, %v3648_v44 }
  0xae   :  { %v3816_v4 = vsub.f32 %v633_v12, %v5846_v48  ;;  %v3825_v57 = vsub.f32 %v628_v26, %v3423_v16  ;;  %5848 = vst [vmem:[#allocation79_spill] sm:$0xff] %v3831_v11  ;;  %v5849_v48 = vld [vmem:[#allocation9_spill] sm:$0xff]  ;;  %v758_v16 = vsub.f32 %v3674_v8, %v2954_v61  ;;  %v3847_v11 = vmul.f32 %v752_v56, %v752_v56 }
  0xaf   :  { %v756_v2 = vsub.f32 %v3674_v8, %v5849_v48  ;;  %5850 = vst [vmem:[#allocation9_spill] sm:$0xff] %v3839_v47  ;;  %5851 = vst [vmem:[#allocation80_spill] sm:$0xff] %v3841_v14  ;;  %v753_v37 = vsub.f32 %v3676_v35, %v5849_v48  ;;  %v755_v41 = vsub.f32 %v3676_v35, %v2954_v61  ;;  %v5858_v35 = vld [vmem:[#allocation7_spill] sm:$0xff] }
  0xb0   :  { %5852 = vst [vmem:[#allocation81_spill] sm:$0xff] %v3847_v11  ;;  %5853 = vst [vmem:[#allocation82_spill] sm:$0xff] %v3851_v30  ;;  %v3858_v14 = vmul.f32 %v748_v24, %v748_v24  ;;  %v3860_v8 = vmul.f32 %v749_v25, %v749_v25  ;;  %v762_v47 = vsub.f32 %v3714_v59, %v5849_v48 }
  0xb1   :  { %v643_v23 = vpop.permute.xlu1 %642  ;;  %v638_v51 = vpop.permute.xlu0 %637  ;;  %v3867_v11 = vmul.f32 %v756_v2, %v756_v2  ;;  %v3871_v44 = vmul.f32 %v3686_v28, %v3686_v28  ;;  %vm5859_vm14 = vcmp.ge.s32.totalorder %v2779_v19, %v5858_v35  ;;  %v3882_v24 = vmul.f32 %v758_v16, %v758_v16 }
  0xb2   :  { %v3856_v10 = vsub.f32 %v643_v23, %v3440_v52  ;;  %5854 = vst [vmem:[#allocation83_spill] sm:$0xff] %v3858_v14  ;;  %5855 = vst [vmem:[#allocation84_spill] sm:$0xff] %v3860_v8  ;;  %v3865_v56 = vsub.f32 %v638_v51, %v3447_v21  ;;  %v764_v52 = vsub.f32 %v3714_v59, %v2954_v61  ;;  %v5872_v14 = vld [vmem:[#allocation48_spill] sm:$0xff] }
  0xb3   :  { %5856 = vst [vmem:[#allocation85_spill] sm:$0xff] %v3867_v11  ;;  %5857 = vst [vmem:[#allocation86_spill] sm:$0xff] %v3871_v44  ;;  %v3880_v25 = vsel %vm5859_vm14, %v3426_v53, %v3430_v20  ;;  %v3884_v21 = vmul.f32 %v753_v37, %v753_v37  ;;  %v3888_v2 = vmul.f32 %v3696_v46, %v3696_v46 }
  0xb4   :  { %5860 = vst [vmem:[#allocation7_spill] sm:$0xff] %v3882_v24  ;;  %v759_v28 = vsub.f32 %v3716_v9, %v5849_v48  ;;  %v3892_v11 = vmul.f32 %v755_v41, %v755_v41  ;;  %v761_v35 = vsub.f32 %v3716_v9, %v2954_v61  ;;  %v768_v8 = vsub.f32 %v623_v43, %v5849_v48 }
  0xb5   :  { %5861 = vst [vmem:[#allocation87_spill] sm:$0xff] %v3884_v21  ;;  %5862 = vst [vmem:[#allocation88_spill] sm:$0xff] %v3888_v2  ;;  %v653_v44 = vpop.permute.xlu1 %652  ;;  %v648_v59 = vpop.permute.xlu0 %647  ;;  %v3898_v37 = vmul.f32 %v762_v47, %v762_v47  ;;  %v770_v21 = vsub.f32 %v623_v43, %v2954_v61  ;;  %v5865_v2 = vld [vmem:[#allocation8_spill] sm:$0xff]  ;;  %v3911_v9 = vmul.f32 %v3726_v40, %v3726_v40 }
  0xb6   :  { %5863 = vst [vmem:[#allocation89_spill] sm:$0xff] %v3892_v11  ;;  %v787_v16 = vsub.f32 %v653_v44, %v3454_v17  ;;  %v784_v46 = vsub.f32 %v648_v59, %v3461_v18  ;;  %vm5866_vm15 = vcmp.ge.s32.totalorder %v2779_v19, %v5865_v2  ;;  %v3913_v11 = vmul.f32 %v764_v52, %v764_v52 }
  0xb7   :  { %5864 = vst [vmem:[#allocation90_spill] sm:$0xff] %v3898_v37  ;;  %v3907_v41 = vsel %vm5866_vm15, %v3426_v53, %v3430_v20  ;;  %5867 = vst [vmem:[#allocation8_spill] sm:$0xff] %v3911_v9  ;;  %v765_v17 = vsub.f32 %v3756_v36, %v5849_v48  ;;  %v767_v43 = vsub.f32 %v3756_v36, %v2954_v61 }
  0xb8   :  { %5868 = vst [vmem:[#allocation91_spill] sm:$0xff] %v3913_v11  ;;  %v3919_v18 = vmul.f32 %v759_v28, %v759_v28  ;;  %v3923_v47 = vmul.f32 %v3736_v45, %v3736_v45  ;;  %v774_v2 = vsub.f32 %v633_v12, %v5849_v48  ;;  %v776_v37 = vsub.f32 %v633_v12, %v2954_v61 }
  0xb9   :  { %v663_v40 = vpop.permute.xlu1 %662  ;;  %v658_v9 = vpop.permute.xlu0 %657  ;;  %v3927_v52 = vmul.f32 %v761_v35, %v761_v35  ;;  %v3929_v11 = vmul.f32 %v768_v8, %v768_v8  ;;  %v771_v24 = vsub.f32 %v628_v26, %v5849_v48  ;;  %v3935_v28 = vmul.f32 %v3763_v22, %v3763_v22 }
  0xba   :  { %5869 = vst [vmem:[#allocation92_spill] sm:$0xff] %v3919_v18  ;;  %5870 = vst [vmem:[#allocation93_spill] sm:$0xff] %v3923_v47  ;;  %v793_v36 = vsub.f32 %v663_v40, %v5872_v14  ;;  %v3937_v45 = vmul.f32 %v770_v21, %v770_v21  ;;  %v773_v47 = vsub.f32 %v628_v26, %v2954_v61  ;;  %v5873_v18 = vld [vmem:[#allocation49_spill] sm:$0xff] }
  0xbb   :  { %5871 = vst [vmem:[#allocation94_spill] sm:$0xff] %v3929_v11  ;;  %v790_v12 = vsub.f32 %v658_v9, %v5873_v18  ;;  %v3941_v30 = vmul.f32 %v765_v17, %v765_v17  ;;  %v3945_v8 = vmul.f32 %v3780_v49, %v3780_v49  ;;  %v3947_v35 = vmul.f32 %v767_v43, %v767_v43 }
  0xbc   :  { %v780_v14 = vsub.f32 %v643_v23, %v5849_v48  ;;  %v3950_v11 = vmul.f32 %v774_v2, %v774_v2  ;;  %v3954_v22 = vmul.f32 %v3816_v4, %v3816_v4  ;;  %v3956_v21 = vmul.f32 %v776_v37, %v776_v37 }
  0xbd   :  { %5874 = vst [vmem:[#allocation48_spill] sm:$0xff] %v3941_v30  ;;  %5875 = vst [vmem:[#allocation49_spill] sm:$0xff] %v3945_v8  ;;  %v782_v26 = vsub.f32 %v643_v23, %v2954_v61  ;;  %v673_v17 = vpop.permute.xlu1 %672  ;;  %v668_v18 = vpop.permute.xlu0 %667  ;;  %v3959_v30 = vmul.f32 %v771_v24, %v771_v24  ;;  %v777_v49 = vsub.f32 %v638_v51, %v5849_v48 }
  0xbe   :  { %5876 = vst [vmem:[#allocation95_spill] sm:$0xff] %v3947_v35  ;;  %5877 = vst [vmem:[#allocation96_spill] sm:$0xff] %v3950_v11  ;;  %v779_v43 = vsub.f32 %v638_v51, %v2954_v61  ;;  %v5881_v35 = vld [vmem:[#allocation50_spill] sm:$0xff]  ;;  %v3966_v2 = vmul.f32 %v3825_v57, %v3825_v57  ;;  %v3968_v4 = vmul.f32 %v773_v47, %v773_v47 }
  0xbf   :  { %5878 = vst [vmem:[#allocation97_spill] sm:$0xff] %v3954_v22  ;;  %5879 = vst [vmem:[#allocation98_spill] sm:$0xff] %v3956_v21  ;;  %v799_v8 = vsub.f32 %v673_v17, %v5881_v35  ;;  %v786_v37 = vsub.f32 %v653_v44, %v5849_v48  ;;  %v796_v23 = vsub.f32 %v668_v18, %v3492_v0  ;;  %v5885_v51 = vld [vmem:[#allocation10_spill] sm:$0xff]  ;;  %v5891_v22 = vld [vmem:[#allocation16_spill] sm:$0xff] }
  0xc0   :  { %5880 = vst [vmem:[#allocation99_spill] sm:$0xff] %v3959_v30  ;;  %5882 = vst [vmem:[#allocation50_spill] sm:$0xff] %v3966_v2  ;;  %v3972_v21 = vmul.f32 %v780_v14, %v780_v14  ;;  %v788_v24 = vsub.f32 %v653_v44, %v2954_v61  ;;  %v783_v30 = vsub.f32 %v648_v59, %v5849_v48 }
  0xc1   :  { %5883 = vst [vmem:[#allocation100_spill] sm:$0xff] %v3968_v4  ;;  %vm5886_vm10 = vcmp.ge.s32.totalorder %v2779_v19, %v5885_v51  ;;  %v3985_v57 = vmul.f32 %v3856_v10, %v3856_v10  ;;  %v3987_v47 = vmul.f32 %v782_v26, %v782_v26  ;;  %v785_v0 = vsub.f32 %v648_v59, %v2954_v61  ;;  %v683_v44 = vpop.permute.xlu1 %682 }
  0xc2   :  { %5884 = vst [vmem:[#allocation101_spill] sm:$0xff] %v3972_v21  ;;  %v3981_v35 = vsel %vm5886_vm10, %v3426_v53, %v3430_v20  ;;  %v792_v14 = vsub.f32 %v663_v40, %v5849_v48  ;;  %v678_v21 = vpop.permute.xlu0 %677  ;;  %v3991_v4 = vmul.f32 %v777_v49, %v777_v49  ;;  %v3995_v2 = vmul.f32 %v3865_v56, %v3865_v56 }
  0xc3   :  { %5887 = vst [vmem:[#allocation10_spill] sm:$0xff] %v3985_v57  ;;  %5888 = vst [vmem:[#allocation102_spill] sm:$0xff] %v3987_v47  ;;  %v3997_v51 = vmul.f32 %v779_v43, %v779_v43  ;;  %v806_v11 = vsub.f32 %v683_v44, %v5891_v22  ;;  %v4000_v10 = vmul.f32 %v786_v37, %v786_v37  ;;  %v5893_v47 = vld [vmem:[#allocation17_spill] sm:$0xff]  ;;  %v5894_v57 = vld [vmem:[#allocation11_spill] sm:$0xff] }
  0xc4   :  { %5889 = vst [vmem:[#allocation103_spill] sm:$0xff] %v3991_v4  ;;  %v794_v26 = vsub.f32 %v663_v40, %v2954_v61  ;;  %v803_v59 = vsub.f32 %v678_v21, %v5893_v47  ;;  %vm5895_vm9 = vcmp.ge.s32.totalorder %v2779_v19, %v5894_v57  ;;  %v4011_v4 = vmul.f32 %v787_v16, %v787_v16 }
  0xc5   :  { %5890 = vst [vmem:[#allocation104_spill] sm:$0xff] %v3997_v51  ;;  %5892 = vst [vmem:[#allocation16_spill] sm:$0xff] %v4000_v10  ;;  %v4009_v49 = vsel %vm5895_vm9, %v3426_v53, %v3430_v20  ;;  %v4013_v56 = vmul.f32 %v788_v24, %v788_v24  ;;  %v4015_v43 = vmul.f32 %v783_v30, %v783_v30  ;;  %v693_v51 = vpop.permute.xlu1 %692  ;;  %v5902_v30 = vld [vmem:[#allocation20_spill] sm:$0xff] }
  0xc6   :  { %v789_v22 = vsub.f32 %v658_v9, %v5849_v48  ;;  %v4018_v37 = vmul.f32 %v784_v46, %v784_v46  ;;  %v4020_v40 = vmul.f32 %v785_v0, %v785_v0  ;;  %v4022_v47 = vmul.f32 %v792_v14, %v792_v14  ;;  %v688_v19 = vpop.permute.xlu0 %687  ;;  %v5904_v14 = vld [vmem:[#allocation21_spill] sm:$0xff] }
  0xc7   :  { %5896 = vst [vmem:[#allocation17_spill] sm:$0xff] %v4013_v56  ;;  %5897 = vst [vmem:[#allocation11_spill] sm:$0xff] %v4015_v43  ;;  %v791_v10 = vsub.f32 %v658_v9, %v2954_v61  ;;  %v4025_v53 = vmul.f32 %v793_v36, %v793_v36  ;;  %v798_v16 = vsub.f32 %v673_v17, %v5849_v48 }
  0xc8   :  { %5898 = vst [vmem:[#allocation105_spill] sm:$0xff] %v4018_v37  ;;  %5899 = vst [vmem:[#allocation106_spill] sm:$0xff] %v4020_v40  ;;  %v800_v24 = vsub.f32 %v673_v17, %v2954_v61  ;;  %v812_v57 = vsub.f32 %v693_v51, %v5902_v30  ;;  %v4030_v43 = vmul.f32 %v794_v26, %v794_v26 }
  0xc9   :  { %5900 = vst [vmem:[#allocation107_spill] sm:$0xff] %v4022_v47  ;;  %5901 = vst [vmem:[#allocation108_spill] sm:$0xff] %v4025_v53  ;;  %v795_v46 = vsub.f32 %v668_v18, %v5849_v48  ;;  %v797_v0 = vsub.f32 %v668_v18, %v2954_v61  ;;  %v809_v47 = vsub.f32 %v688_v19, %v5904_v14  ;;  %v5906_v53 = vld [vmem:[#allocation47_spill] sm:$0xff]  ;;  %v703_v18 = vpop.permute.xlu1 %702 }
  0xca   :  { %5903 = vst [vmem:[#allocation20_spill] sm:$0xff] %v4030_v43  ;;  %v4035_v40 = vmul.f32 %v789_v22, %v789_v22  ;;  %v804_v9 = vsub.f32 %v683_v44, %v5849_v48  ;;  %v805_v36 = vsub.f32 %v683_v44, %v3276_v58  ;;  %v4041_v37 = vrot.slane %v5906_v53, %v3138_v42  ;;  %v698_v14 = vpop.permute.xlu0 %697  ;;  %v5911_v44 = vld [vmem:[#allocation24_spill] sm:$0xff]  ;;  %v5915_v53 = vld [vmem:[#allocation25_spill] sm:$0xff] }
  0xcb   :  { %v4043_v17 = vmul.f32 %v790_v12, %v790_v12  ;;  %v4045_v26 = vmul.f32 %v791_v10, %v791_v10  ;;  %v801_v30 = vsub.f32 %v678_v21, %v5849_v48  ;;  %v802_v61 = vsub.f32 %v678_v21, %v3276_v58 }
  0xcc   :  { %5905 = vst [vmem:[#allocation21_spill] sm:$0xff] %v4035_v40  ;;  %v4049_v22 = vmul.f32 %v798_v16, %v798_v16  ;;  %v4051_v40 = vmul.f32 %v799_v8, %v799_v8  ;;  %v4053_v43 = vmul.f32 %v800_v24, %v800_v24  ;;  %v818_v56 = vsub.f32 %v703_v18, %v5911_v44  ;;  %v5919_v8 = vld [vmem:[#allocation26_spill] sm:$0xff]  ;;  %v5920_v16 = vld [vmem:[#allocation27_spill] sm:$0xff] }
  0xcd   :  { %5907 = vst [vmem:[#allocation47_spill] sm:$0xff] %v4043_v17  ;;  %5908 = vst [vmem:[#allocation109_spill] sm:$0xff] %v4045_v26  ;;  %v4056_v42 = vmul.f32 %v795_v46, %v795_v46  ;;  %v4058_v12 = vmul.f32 %v796_v23, %v796_v23  ;;  %v4060_v10 = vmul.f32 %v797_v0, %v797_v0  ;;  %v5922_v23 = vld [vmem:[#allocation28_spill] sm:$0xff] }
  0xce   :  { %5909 = vst [vmem:[#allocation110_spill] sm:$0xff] %v4051_v40  ;;  %5910 = vst [vmem:[#allocation111_spill] sm:$0xff] %v4053_v43  ;;  %v4063_v26 = vsub.f32 %v698_v14, %v5915_v53  ;;  %v4065_v21 = vmul.f32 %v804_v9, %v804_v9  ;;  %v4067_v17 = vmul.f32 %v805_v36, %v805_v36  ;;  %v865_v53 = vpop.permute.xlu1 %864 }
  0xcf   :  { %5912 = vst [vmem:[#allocation24_spill] sm:$0xff] %v4056_v42  ;;  %5913 = vst [vmem:[#allocation112_spill] sm:$0xff] %v4058_v12  ;;  %vm5921_vm11 = vcmp.ge.s32.totalorder %v5919_v8, %v5920_v16  ;;  %vm5923_vm12 = vcmp.ge.s32.totalorder %v5919_v8, %v5922_v23  ;;  %v4083_v0 = vmul.f32 %v806_v11, %v806_v11 }
  0xd0   :  { %5914 = vst [vmem:[#allocation113_spill] sm:$0xff] %v4060_v10  ;;  %5916 = vst [vmem:[#allocation25_spill] sm:$0xff] %v4063_v26  ;;  %v4074_v24 = vsel %vm5921_vm11, %v3506_v6, %v4041_v37  ;;  %v4081_v46 = vsel %vm5923_vm12, %v3506_v6, %v4041_v37  ;;  %v4085_v9 = vmul.f32 %v801_v30, %v801_v30  ;;  %v860_v26 = vpop.permute.xlu0 %859 }
  0xd1   :  { %5917 = vst [vmem:[#allocation114_spill] sm:$0xff] %v4065_v21  ;;  %5918 = vst [vmem:[#allocation115_spill] sm:$0xff] %v4067_v17  ;;  %v4087_v36 = vmul.f32 %v802_v61, %v802_v61  ;;  %v810_v44 = vsub.f32 %v693_v51, %v5849_v48  ;;  %v1050_v16 = vsub.f32 %v865_v53, %v3523_v55 }
  0xd2   :  { %5924 = vst [vmem:[#allocation26_spill] sm:$0xff] %v4083_v0  ;;  %5925 = vst [vmem:[#allocation27_spill] sm:$0xff] %v4085_v9  ;;  %v1051_v17 = vsub.f32 %v865_v53, %v3506_v6  ;;  %v1052_v21 = vsub.f32 %v865_v53, %v3503_v33  ;;  %v1047_v23 = vsub.f32 %v860_v26, %v3530_v31 }
  0xd3   :  { %5926 = vst [vmem:[#allocation28_spill] sm:$0xff] %v4087_v36  ;;  %v811_v10 = vsub.f32 %v693_v51, %v3276_v58  ;;  %v807_v11 = vsub.f32 %v688_v19, %v5849_v48  ;;  %v1048_v30 = vsub.f32 %v860_v26, %v3506_v6  ;;  %v1049_v61 = vsub.f32 %v860_v26, %v3503_v33 }
  0xd4   :  { %v1278_v36 = vmul.f32 %v1050_v16, %v1050_v16  ;;  %v1279_v9 = vmul.f32 %v1051_v17, %v1051_v17  ;;  %v1280_v0 = vmul.f32 %v1052_v21, %v1052_v21  ;;  %v1275_v12 = vmul.f32 %v1047_v23, %v1047_v23 }
  0xd5   :  { %v4098_v42 = vmul.f32 %v803_v59, %v803_v59  ;;  %v808_v55 = vsub.f32 %v688_v19, %v3276_v58  ;;  %v1276_v43 = vmul.f32 %v1048_v30, %v1048_v30  ;;  %v1277_v53 = vmul.f32 %v1049_v61, %v1049_v61 }
  0xd6   :  { %v4101_v40 = vmul.f32 %v810_v44, %v810_v44  ;;  %v4104_v31 = vadd.f32 %v1278_v36, %v3654_v15  ;;  %v4107_v51 = vadd.f32 %v1279_v9, %v3656_v50  ;;  %v4110_v26 = vadd.f32 %v1280_v0, %v3658_v1  ;;  %v875_v44 = vpop.permute.xlu1 %874 }
  0xd7   :  { %v4112_v17 = vmul.f32 %v811_v10, %v811_v10  ;;  %v816_v59 = vsub.f32 %v703_v18, %v5849_v48  ;;  %v817_v21 = vsub.f32 %v703_v18, %v3276_v58  ;;  %v4117_v19 = vadd.f32 %v1275_v12, %v3608_v29 }
  0xd8   :  { %v4119_v16 = vmul.f32 %v812_v57, %v812_v57  ;;  %v4121_v15 = vmul.f32 %v807_v11, %v807_v11  ;;  %2437 = vrsqrt.f32 %v4104_v31  ;;  %v4125_v50 = vadd.f32 %v1276_v43, %v3610_v34 }
  0xd9   :  { %v4127_v1 = vmul.f32 %v808_v55, %v808_v55  ;;  %v4129_v10 = vmul.f32 %v809_v47, %v809_v47  ;;  %2439 = vrsqrt.f32 %v4107_v51  ;;  %v4133_v18 = vadd.f32 %v1277_v53, %v3612_v63  ;;  %v5938_v55 = vld [vmem:[#allocation60_spill] sm:$0xff] }
  0xda   :  { %5927 = vst [vmem:[#allocation116_spill] sm:$0xff] %v4119_v16  ;;  %5928 = vst [vmem:[#allocation117_spill] sm:$0xff] %v4121_v15  ;;  %v4136_v29 = vsub.f32 %v698_v14, %v5849_v48  ;;  %2441 = vrsqrt.f32 %v4110_v26  ;;  %v1056_v57 = vsub.f32 %v875_v44, %v3537_v32  ;;  %v1057_v12 = vsub.f32 %v875_v44, %v3506_v6  ;;  %v870_v48 = vpop.permute.xlu0 %869  ;;  %v5936_v32 = vld [vmem:[#allocation29_spill] sm:$0xff] }
  0xdb   :  { %5929 = vst [vmem:[#allocation118_spill] sm:$0xff] %v4127_v1  ;;  %5930 = vst [vmem:[#allocation119_spill] sm:$0xff] %v4129_v10  ;;  %v4141_v34 = vmul.f32 %v816_v59, %v816_v59  ;;  %v4143_v43 = vmul.f32 %v817_v21, %v817_v21  ;;  %v4146_v47 = vsub.f32 %v698_v14, %v3276_v58  ;;  %2443 = vrsqrt.f32 %v4117_v19  ;;  %v5939_v59 = vld [vmem:[#allocation61_spill] sm:$0xff] }
  0xdc   :  { %5931 = vst [vmem:[#allocation120_spill] sm:$0xff] %v4136_v29  ;;  %v4149_v63 = vmul.f32 %v818_v56, %v818_v56  ;;  %vm1526_vm13 = vcmp.eq.f32.partialorder %v4104_v31, inf  ;;  %2445 = vrsqrt.f32 %v4125_v50  ;;  %vm5937_vm14 = vcmp.ge.s32.totalorder %v5919_v8, %v5936_v32 }
  0xdd   :  { %5932 = vst [vmem:[#allocation121_spill] sm:$0xff] %v4141_v34  ;;  %5933 = vst [vmem:[#allocation122_spill] sm:$0xff] %v4143_v43  ;;  %v4158_v0 = vsel %vm5937_vm14, %v3506_v6, %v4041_v37  ;;  %vm1528_vm15 = vcmp.eq.f32.partialorder %v4104_v31, 0.0  ;;  %v1529_v58 = vand.u32 2147483648, %v4104_v31  ;;  %vm1533_vm10 = vcmp.eq.f32.partialorder %v4107_v51, inf  ;;  %v5941_v43 = vld [vmem:[#allocation51_spill] sm:$0xff] }
  0xde   :  { %5934 = vst [vmem:[#allocation123_spill] sm:$0xff] %v4146_v47  ;;  %5935 = vst [vmem:[#allocation124_spill] sm:$0xff] %v4149_v63  ;;  %v1536_v56 = vand.u32 2147483648, %v4107_v51  ;;  %2447 = vrsqrt.f32 %v4133_v18  ;;  %vm1535_vm9 = vcmp.eq.f32.partialorder %v4107_v51, 0.0  ;;  %vm1540_vm11 = vcmp.eq.f32.partialorder %v4110_v26, inf }
  0xdf   :  { %v1058_v14 = vsub.f32 %v875_v44, %v3503_v33  ;;  %v1284_v9 = vmul.f32 %v1056_v57, %v1056_v57  ;;  %v1285_v36 = vmul.f32 %v1057_v12, %v1057_v12  ;;  %vm1542_vm12 = vcmp.eq.f32.partialorder %v4110_v26, 0.0 }
  0xe0   :  { %v1543_v23 = vand.u32 2147483648, %v4110_v26  ;;  %vm1505_vm14 = vcmp.eq.f32.partialorder %v4117_v19, inf  ;;  %v1508_v11 = vand.u32 2147483648, %v4117_v19  ;;  %v1053_v30 = vsub.f32 %v870_v48, %v3544_v13  ;;  %v885_v13 = vpop.permute.xlu1 %884 }
  0xe1   :  { %vm1507_vm8 = vcmp.eq.f32.partialorder %v4117_v19, 0.0  ;;  %v1286_v61 = vmul.f32 %v1058_v14, %v1058_v14  ;;  %v4175_v53 = vadd.f32 %v1284_v9, %v5938_v55  ;;  %v4178_v21 = vadd.f32 %v1285_v36, %v5939_v59  ;;  %v5940_v14 = vld [vmem:[#allocation62_spill] sm:$0xff] }
  0xe2   :  { %v1054_v44 = vsub.f32 %v870_v48, %v3506_v6  ;;  %vm1512_vm7 = vcmp.eq.f32.partialorder %v4125_v50, inf  ;;  %vm1514_vm6 = vcmp.eq.f32.partialorder %v4125_v50, 0.0  ;;  %v1515_v57 = vand.u32 2147483648, %v4125_v50  ;;  %v2438_v32 = vpop.eup %2437 }
  0xe3   :  { %v1055_v12 = vsub.f32 %v870_v48, %v3503_v33  ;;  %vm1519_vm5 = vcmp.eq.f32.partialorder %v4133_v18, inf  ;;  %vm1521_vm4 = vcmp.eq.f32.partialorder %v4133_v18, 0.0  ;;  %v4188_v9 = vadd.f32 %v1286_v61, %v5940_v14  ;;  %v2440_v36 = vpop.eup %2439 }
  0xe4   :  { %2449 = vrsqrt.f32 %v4175_v53  ;;  %v1525_v55 = vmul.f32 %v2438_v32, %v4104_v31  ;;  %v1522_v59 = vand.u32 2147483648, %v4133_v18  ;;  %v1281_v47 = vmul.f32 %v1053_v30, %v1053_v30  ;;  %v2442_v48 = vpop.eup %2441 }
  0xe5   :  { %2451 = vrsqrt.f32 %v4178_v21  ;;  %v1532_v29 = vmul.f32 %v2440_v36, %v4107_v51  ;;  %v1282_v63 = vmul.f32 %v1054_v44, %v1054_v44  ;;  %v1062_v34 = vsub.f32 %v885_v13, %v5941_v43  ;;  %v2444_v61 = vpop.eup %2443 }
  0xe6   :  { %2453 = vrsqrt.f32 %v4188_v9  ;;  %v1527_v14 = vsel %vm1526_vm13, %v4104_v31, %v1525_v55  ;;  %v1539_v32 = vmul.f32 %v2442_v48, %v4110_v26  ;;  %v1283_v10 = vmul.f32 %v1055_v12, %v1055_v12  ;;  %v2446_v15 = vpop.eup %2445 }
  0xe7   :  { %v1063_v1 = vsub.f32 %v885_v13, %v3506_v6  ;;  %v1530_v30 = vsel %vm1528_vm15, %v1529_v58, %v1527_v14  ;;  %v1534_v44 = vsel %vm1533_vm10, %v4107_v51, %v1532_v29  ;;  %v1504_v43 = vmul.f32 %v2444_v61, %v4117_v19  ;;  %v5942_v58 = vld [vmem:[#allocation53_spill] sm:$0xff] }
  0xe8   :  { %v1064_v36 = vsub.f32 %v885_v13, %v3503_v33  ;;  %v2448_v16 = vpop.eup %2447  ;;  %v1537_v55 = vsel %vm1535_vm9, %v1536_v56, %v1534_v44  ;;  %v1541_v12 = vsel %vm1540_vm11, %v4110_v26, %v1539_v32  ;;  %2304 = vst [vmem:[#allocation2 + $0x18] sm:$0xff] %v1530_v30  ;;  %v1511_v31 = vmul.f32 %v2446_v15, %v4125_v50  ;;  %v5943_v56 = vld [vmem:[#allocation54_spill] sm:$0xff]  ;;  %v5944_v26 = vld [vmem:[#allocation57_spill] sm:$0xff] }
  0xe9   :  { %v4216_v48 = vadd.f32 %v1281_v47, %v5942_v58  ;;  %v1544_v29 = vsel %vm1542_vm12, %v1543_v23, %v1541_v12  ;;  %2305 = vst [vmem:[#allocation2 + $0x20] sm:$0xff] %v1537_v55  ;;  %v1506_v13 = vsel %vm1505_vm14, %v4117_v19, %v1504_v43  ;;  %v1518_v51 = vmul.f32 %v2448_v16, %v4133_v18  ;;  %v5945_v43 = vld [vmem:[#allocation63_spill] sm:$0xff]  ;;  %v880_v12 = vpop.permute.xlu0 %879 }
  0xea   :  { %v4225_v61 = vadd.f32 %v1282_v63, %v5943_v56  ;;  %2306 = vst [vmem:[#allocation2 + $0x28] sm:$0xff] %v1544_v29  ;;  %v1509_v15 = vsel %vm1507_vm8, %v1508_v11, %v1506_v13  ;;  %v1513_v47 = vsel %vm1512_vm7, %v4125_v50, %v1511_v31  ;;  %v4233_v23 = vadd.f32 %v1283_v10, %v5944_v26  ;;  %v5946_v29 = vld [vmem:[#allocation64_spill] sm:$0xff] }
  0xeb   :  { %2455 = vrsqrt.f32 %v4216_v48  ;;  %v1516_v14 = vsel %vm1514_vm6, %v1515_v57, %v1513_v47  ;;  %v1520_v16 = vsel %vm1519_vm5, %v4133_v18, %v1518_v51  ;;  %2301 = vst [vmem:[#allocation2] sm:$0xff] %v1509_v15  ;;  %vm1568_vm13 = vcmp.eq.f32.partialorder %v4175_v53, inf  ;;  %v5947_v51 = vld [vmem:[#allocation65_spill] sm:$0xff]  ;;  %v5948_v26 = vld [vmem:[#allocation52_spill] sm:$0xff] }
  0xec   :  { %v1290_v19 = vmul.f32 %v1062_v34, %v1062_v34  ;;  %v1523_v63 = vsel %vm1521_vm4, %v1522_v59, %v1520_v16  ;;  %2302 = vst [vmem:[#allocation2 + $0x8] sm:$0xff] %v1516_v14  ;;  %vm1570_vm7 = vcmp.eq.f32.partialorder %v4175_v53, 0.0  ;;  %v1571_v10 = vand.u32 2147483648, %v4175_v53 }
  0xed   :  { %2457 = vrsqrt.f32 %v4225_v61  ;;  %2303 = vst [vmem:[#allocation2 + $0x10] sm:$0xff] %v1523_v63  ;;  %vm1575_vm6 = vcmp.eq.f32.partialorder %v4178_v21, inf  ;;  %vm1577_vm5 = vcmp.eq.f32.partialorder %v4178_v21, 0.0  ;;  %v1578_v11 = vand.u32 2147483648, %v4178_v21 }
  0xee   :  { %v2450_v50 = vpop.eup %2449  ;;  %2459 = vrsqrt.f32 %v4233_v23  ;;  %vm1582_vm4 = vcmp.eq.f32.partialorder %v4188_v9, inf  ;;  %vm1584_vm8 = vcmp.eq.f32.partialorder %v4188_v9, 0.0  ;;  %v1291_v57 = vmul.f32 %v1063_v1, %v1063_v1 }
  0xef   :  { %v2452_v34 = vpop.eup %2451  ;;  %v1567_v18 = vmul.f32 %v2450_v50, %v4175_v53  ;;  %v1585_v30 = vand.u32 2147483648, %v4188_v9  ;;  %v1292_v44 = vmul.f32 %v1064_v36, %v1064_v36  ;;  %v4257_v55 = vadd.f32 %v1290_v19, %v5945_v43 }
  0xf0   :  { %v2454_v59 = vpop.eup %2453  ;;  %v1574_v32 = vmul.f32 %v2452_v34, %v4178_v21  ;;  %vm1547_vm15 = vcmp.eq.f32.partialorder %v4216_v48, inf  ;;  %v4265_v1 = vadd.f32 %v1291_v57, %v5946_v29  ;;  %v1060_v14 = vsub.f32 %v880_v12, %v3506_v6 }
  0xf1   :  { %v1569_v31 = vsel %vm1568_vm13, %v4175_v53, %v1567_v18  ;;  %v1581_v58 = vmul.f32 %v2454_v59, %v4188_v9  ;;  %v4273_v56 = vadd.f32 %v1292_v44, %v5947_v51  ;;  %2461 = vrsqrt.f32 %v4257_v55  ;;  %v5949_v59 = vld [vmem:[#allocation55_spill] sm:$0xff] }
  0xf2   :  { %v1572_v13 = vsel %vm1570_vm7, %v1571_v10, %v1569_v31  ;;  %v1576_v36 = vsel %vm1575_vm6, %v4178_v21, %v1574_v32  ;;  %v1059_v53 = vsub.f32 %v880_v12, %v5948_v26  ;;  %vm1549_vm10 = vcmp.eq.f32.partialorder %v4216_v48, 0.0  ;;  %v895_v21 = vpop.permute.xlu1 %894 }
  0xf3   :  { %v1579_v15 = vsel %vm1577_vm5, %v1578_v11, %v1576_v36  ;;  %v1583_v47 = vsel %vm1582_vm4, %v4188_v9, %v1581_v58  ;;  %2310 = vst [vmem:[#allocation2 + $0x48] sm:$0xff] %v1572_v13  ;;  %v1550_v19 = vand.u32 2147483648, %v4216_v48  ;;  %2463 = vrsqrt.f32 %v4265_v1  ;;  %v5950_v36 = vld [vmem:[#allocation66_spill] sm:$0xff] }
  0xf4   :  { %v1586_v16 = vsel %vm1584_vm8, %v1585_v30, %v1583_v47  ;;  %2311 = vst [vmem:[#allocation2 + $0x50] sm:$0xff] %v1579_v15  ;;  %vm1554_vm9 = vcmp.eq.f32.partialorder %v4225_v61, inf  ;;  %vm1556_vm11 = vcmp.eq.f32.partialorder %v4225_v61, 0.0  ;;  %v1557_v10 = vand.u32 2147483648, %v4225_v61  ;;  %v5951_v47 = vld [vmem:[#allocation67_spill] sm:$0xff] }
  0xf5   :  { %v2456_v63 = vpop.eup %2455  ;;  %2312 = vst [vmem:[#allocation2 + $0x58] sm:$0xff] %v1586_v16  ;;  %2465 = vrsqrt.f32 %v4273_v56  ;;  %vm1561_vm12 = vcmp.eq.f32.partialorder %v4233_v23, inf  ;;  %vm1563_vm14 = vcmp.eq.f32.partialorder %v4233_v23, 0.0  ;;  %v1061_v50 = vsub.f32 %v880_v12, %v3503_v33 }
  0xf6   :  { %v1546_v9 = vmul.f32 %v2456_v63, %v4216_v48  ;;  %v1564_v34 = vand.u32 2147483648, %v4233_v23  ;;  %v1287_v18 = vmul.f32 %v1059_v53, %v1059_v53  ;;  %v1288_v57 = vmul.f32 %v1060_v14, %v1060_v14 }
  0xf7   :  { %v2458_v11 = vpop.eup %2457  ;;  %v1068_v32 = vsub.f32 %v895_v21, %v5949_v59  ;;  %v1289_v31 = vmul.f32 %v1061_v50, %v1061_v50  ;;  %v1069_v58 = vsub.f32 %v895_v21, %v3506_v6  ;;  %vm1610_vm13 = vcmp.eq.f32.partialorder %v4257_v55, inf }
  0xf8   :  { %v2460_v30 = vpop.eup %2459  ;;  %v1548_v44 = vsel %vm1547_vm15, %v4216_v48, %v1546_v9  ;;  %v1553_v43 = vmul.f32 %v2458_v11, %v4225_v61  ;;  %v4307_v13 = vadd.f32 %v1287_v18, %v3698_v5  ;;  %v4310_v51 = vadd.f32 %v1288_v57, %v5950_v36  ;;  %v5952_v57 = vld [vmem:[#allocation68_spill] sm:$0xff] }
  0xf9   :  { %v1551_v12 = vsel %vm1549_vm10, %v1550_v19, %v1548_v44  ;;  %v1560_v29 = vmul.f32 %v2460_v30, %v4233_v23  ;;  %v4317_v26 = vadd.f32 %v1289_v31, %v5951_v47  ;;  %v1070_v48 = vsub.f32 %v895_v21, %v3503_v33 }
  0xfa   :  { %v1555_v15 = vsel %vm1554_vm9, %v4225_v61, %v1553_v43  ;;  %2307 = vst [vmem:[#allocation2 + $0x30] sm:$0xff] %v1551_v12  ;;  %2467 = vrsqrt.f32 %v4307_v13  ;;  %v1296_v14 = vmul.f32 %v1068_v32, %v1068_v32  ;;  %vm1612_vm7 = vcmp.eq.f32.partialorder %v4257_v55, 0.0  ;;  %v5953_v43 = vld [vmem:[#allocation69_spill] sm:$0xff] }
  0xfb   :  { %v1558_v53 = vsel %vm1556_vm11, %v1557_v10, %v1555_v15  ;;  %v1562_v5 = vsel %vm1561_vm12, %v4233_v23, %v1560_v29  ;;  %v2462_v16 = vpop.eup %2461  ;;  %2469 = vrsqrt.f32 %v4310_v51  ;;  %v1297_v21 = vmul.f32 %v1069_v58, %v1069_v58  ;;  %v890_v23 = vpop.permute.xlu0 %889  ;;  %v5954_v29 = vld [vmem:[#allocation56_spill] sm:$0xff] }
  0xfc   :  { %v1565_v19 = vsel %vm1563_vm14, %v1564_v34, %v1562_v5  ;;  %2308 = vst [vmem:[#allocation2 + $0x38] sm:$0xff] %v1558_v53  ;;  %v1609_v61 = vmul.f32 %v2462_v16, %v4257_v55  ;;  %v1613_v63 = vand.u32 2147483648, %v4257_v55  ;;  %vm1617_vm6 = vcmp.eq.f32.partialorder %v4265_v1, inf }
  0xfd   :  { %2309 = vst [vmem:[#allocation2 + $0x40] sm:$0xff] %v1565_v19  ;;  %vm1619_vm5 = vcmp.eq.f32.partialorder %v4265_v1, 0.0  ;;  %v2464_v10 = vpop.eup %2463  ;;  %v1620_v9 = vand.u32 2147483648, %v4265_v1  ;;  %vm1624_vm4 = vcmp.eq.f32.partialorder %v4273_v56, inf  ;;  %vm1626_vm8 = vcmp.eq.f32.partialorder %v4273_v56, 0.0 }
  0xfe   :  { %2471 = vrsqrt.f32 %v4317_v26  ;;  %v1611_v11 = vsel %vm1610_vm13, %v4257_v55, %v1609_v61  ;;  %v1616_v34 = vmul.f32 %v2464_v10, %v4265_v1  ;;  %v1298_v18 = vmul.f32 %v1070_v48, %v1070_v48 }
  0xff   :  { %v2466_v50 = vpop.eup %2465  ;;  %v4343_v59 = vadd.f32 %v1296_v14, %v5952_v57  ;;  %v1614_v32 = vsel %vm1612_vm7, %v1613_v63, %v1611_v11  ;;  %v1627_v44 = vand.u32 2147483648, %v4273_v56  ;;  %v4350_v31 = vadd.f32 %v1297_v21, %v5953_v43  ;;  %v5955_v21 = vld [vmem:[#allocation58_spill] sm:$0xff] }
 0x100   :  { %v1623_v30 = vmul.f32 %v2466_v50, %v4273_v56  ;;  %v1618_v58 = vsel %vm1617_vm6, %v4265_v1, %v1616_v34  ;;  %2316 = vst [vmem:[#allocation2 + $0x78] sm:$0xff] %v1614_v32  ;;  %v4356_v12 = vadd.f32 %v1298_v18, %v3718_v39  ;;  %v1065_v55 = vsub.f32 %v890_v23, %v5954_v29  ;;  %v905_v1 = vpop.permute.xlu1 %904 }
 0x101   :  { %2473 = vrsqrt.f32 %v4343_v59  ;;  %v1621_v36 = vsel %vm1619_vm5, %v1620_v9, %v1618_v58  ;;  %vm1589_vm15 = vcmp.eq.f32.partialorder %v4307_v13, inf  ;;  %vm1591_vm10 = vcmp.eq.f32.partialorder %v4307_v13, 0.0  ;;  %v5956_v58 = vld [vmem:[#allocation70_spill] sm:$0xff] }
 0x102   :  { %v1625_v15 = vsel %vm1624_vm4, %v4273_v56, %v1623_v30  ;;  %2317 = vst [vmem:[#allocation2 + $0x80] sm:$0xff] %v1621_v36  ;;  %v1592_v39 = vand.u32 2147483648, %v4307_v13  ;;  %vm1596_vm9 = vcmp.eq.f32.partialorder %v4310_v51, inf  ;;  %2475 = vrsqrt.f32 %v4350_v31 }
 0x103   :  { %v1628_v47 = vsel %vm1626_vm8, %v1627_v44, %v1625_v15  ;;  %vm1598_vm11 = vcmp.eq.f32.partialorder %v4310_v51, 0.0  ;;  %v1599_v48 = vand.u32 2147483648, %v4310_v51  ;;  %vm1603_vm12 = vcmp.eq.f32.partialorder %v4317_v26, inf }
 0x104   :  { %2318 = vst [vmem:[#allocation2 + $0x88] sm:$0xff] %v1628_v47  ;;  %2477 = vrsqrt.f32 %v4356_v12  ;;  %v2468_v53 = vpop.eup %2467  ;;  %vm1605_vm14 = vcmp.eq.f32.partialorder %v4317_v26, 0.0  ;;  %v1066_v56 = vsub.f32 %v890_v23, %v3506_v6  ;;  %v1067_v5 = vsub.f32 %v890_v23, %v3503_v33 }
 0x105   :  { %v1293_v14 = vmul.f32 %v1065_v55, %v1065_v55  ;;  %v2470_v16 = vpop.eup %2469  ;;  %v1588_v19 = vmul.f32 %v2468_v53, %v4307_v13  ;;  %v1074_v61 = vsub.f32 %v905_v1, %v5955_v21  ;;  %v1075_v63 = vsub.f32 %v905_v1, %v3506_v6  ;;  %v5958_v21 = vld [vmem:[#allocation43_spill] sm:$0xff] }
 0x106   :  { %v1076_v10 = vsub.f32 %v905_v1, %v3503_v33  ;;  %v1595_v9 = vmul.f32 %v2470_v16, %v4310_v51  ;;  %v1294_v50 = vmul.f32 %v1066_v56, %v1066_v56  ;;  %v1295_v11 = vmul.f32 %v1067_v5, %v1067_v5  ;;  %v5957_v5 = vld [vmem:[#allocation71_spill] sm:$0xff] }
 0x107   :  { %v4385_v34 = vadd.f32 %v1293_v14, %v3720_v60  ;;  %v1590_v23 = vsel %vm1589_vm15, %v4307_v13, %v1588_v19  ;;  %v1606_v57 = vand.u32 2147483648, %v4317_v26  ;;  %vm1652_vm13 = vcmp.eq.f32.partialorder %v4343_v59, inf }
 0x108   :  { %v2472_v18 = vpop.eup %2471  ;;  %vm1654_vm7 = vcmp.eq.f32.partialorder %v4343_v59, 0.0  ;;  %v1593_v32 = vsel %vm1591_vm10, %v1592_v39, %v1590_v23  ;;  %v1597_v30 = vsel %vm1596_vm9, %v4310_v51, %v1595_v9  ;;  %v4400_v44 = vadd.f32 %v1294_v50, %v3728_v38  ;;  %v915_v23 = vpop.permute.xlu1 %914 }
 0x109   :  { %v1602_v60 = vmul.f32 %v2472_v18, %v4317_v26  ;;  %v1600_v43 = vsel %vm1598_vm11, %v1599_v48, %v1597_v30  ;;  %2313 = vst [vmem:[#allocation2 + $0x60] sm:$0xff] %v1593_v32  ;;  %v4405_v29 = vadd.f32 %v1295_v11, %v5956_v58  ;;  %2479 = vrsqrt.f32 %v4385_v34  ;;  %v900_v18 = vpop.permute.xlu0 %899 }
 0x10a   :  { %v1302_v13 = vmul.f32 %v1074_v61, %v1074_v61  ;;  %2314 = vst [vmem:[#allocation2 + $0x68] sm:$0xff] %v1600_v43  ;;  %2481 = vrsqrt.f32 %v4400_v44  ;;  %v1303_v38 = vmul.f32 %v1075_v63, %v1075_v63  ;;  %v1304_v15 = vmul.f32 %v1076_v10, %v1076_v10  ;;  %v5959_v63 = vld [vmem:[#allocation72_spill] sm:$0xff] }
 0x10b   :  { %v2474_v55 = vpop.eup %2473  ;;  %v1604_v36 = vsel %vm1603_vm12, %v4317_v26, %v1602_v60  ;;  %v1655_v39 = vand.u32 2147483648, %v4343_v59  ;;  %vm1659_vm6 = vcmp.eq.f32.partialorder %v4350_v31, inf  ;;  %vm1661_vm5 = vcmp.eq.f32.partialorder %v4350_v31, 0.0  ;;  %v5960_v60 = vld [vmem:[#allocation59_spill] sm:$0xff] }
 0x10c   :  { %v1607_v51 = vsel %vm1605_vm14, %v1606_v57, %v1604_v36  ;;  %v1651_v47 = vmul.f32 %v2474_v55, %v4343_v59  ;;  %v2476_v1 = vpop.eup %2475  ;;  %v1662_v48 = vand.u32 2147483648, %v4350_v31  ;;  %vm1666_vm4 = vcmp.eq.f32.partialorder %v4356_v12, inf }
 0x10d   :  { %2315 = vst [vmem:[#allocation2 + $0x70] sm:$0xff] %v1607_v51  ;;  %2483 = vrsqrt.f32 %v4405_v29  ;;  %v1658_v56 = vmul.f32 %v2476_v1, %v4350_v31  ;;  %vm1668_vm8 = vcmp.eq.f32.partialorder %v4356_v12, 0.0  ;;  %v4427_v14 = vadd.f32 %v1302_v13, %v5957_v5  ;;  %v5961_v13 = vld [vmem:[#allocation44_spill] sm:$0xff] }
 0x10e   :  { %v2478_v53 = vpop.eup %2477  ;;  %v1653_v26 = vsel %vm1652_vm13, %v4343_v59, %v1651_v47  ;;  %v4433_v61 = vadd.f32 %v1303_v38, %v5958_v21  ;;  %v4436_v10 = vadd.f32 %v1304_v15, %v5959_v63  ;;  %v1669_v50 = vand.u32 2147483648, %v4356_v12  ;;  %v5962_v63 = vld [vmem:[#allocation73_spill] sm:$0xff] }
 0x10f   :  { %v1656_v16 = vsel %vm1654_vm7, %v1655_v39, %v1653_v26  ;;  %v1665_v19 = vmul.f32 %v2478_v53, %v4356_v12  ;;  %v1660_v9 = vsel %vm1659_vm6, %v4350_v31, %v1658_v56  ;;  %vm1631_vm15 = vcmp.eq.f32.partialorder %v4385_v34, inf }
 0x110   :  { %2322 = vst [vmem:[#allocation2 + $0xa8] sm:$0xff] %v1656_v16  ;;  %2485 = vrsqrt.f32 %v4427_v14  ;;  %v1663_v59 = vsel %vm1661_vm5, %v1662_v48, %v1660_v9  ;;  %vm1633_vm10 = vcmp.eq.f32.partialorder %v4385_v34, 0.0  ;;  %v1634_v32 = vand.u32 2147483648, %v4385_v34 }
 0x111   :  { %v1667_v11 = vsel %vm1666_vm4, %v4356_v12, %v1665_v19  ;;  %2487 = vrsqrt.f32 %v4433_v61  ;;  %2323 = vst [vmem:[#allocation2 + $0xb0] sm:$0xff] %v1663_v59  ;;  %vm1638_vm9 = vcmp.eq.f32.partialorder %v4400_v44, inf  ;;  %vm1640_vm11 = vcmp.eq.f32.partialorder %v4400_v44, 0.0  ;;  %v5963_v59 = vld [vmem:[#allocation74_spill] sm:$0xff] }
 0x112   :  { %v1670_v57 = vsel %vm1668_vm8, %v1669_v50, %v1667_v11  ;;  %v1641_v31 = vand.u32 2147483648, %v4400_v44  ;;  %vm1645_vm12 = vcmp.eq.f32.partialorder %v4405_v29, inf  ;;  %vm1647_vm14 = vcmp.eq.f32.partialorder %v4405_v29, 0.0 }
 0x113   :  { %2324 = vst [vmem:[#allocation2 + $0xb8] sm:$0xff] %v1670_v57  ;;  %2489 = vrsqrt.f32 %v4436_v10  ;;  %v2480_v30 = vpop.eup %2479  ;;  %v1071_v12 = vsub.f32 %v900_v18, %v5960_v60  ;;  %v1072_v43 = vsub.f32 %v900_v18, %v3506_v6  ;;  %v1073_v58 = vsub.f32 %v900_v18, %v3503_v33  ;;  %v5964_v18 = vld [vmem:[#allocation75_spill] sm:$0xff] }
 0x114   :  { %v1080_v55 = vsub.f32 %v915_v23, %v5961_v13  ;;  %v2482_v36 = vpop.eup %2481  ;;  %v1630_v38 = vmul.f32 %v2480_v30, %v4385_v34  ;;  %v1648_v15 = vand.u32 2147483648, %v4405_v29  ;;  %vm1694_vm13 = vcmp.eq.f32.partialorder %v4427_v14, inf  ;;  %v910_v13 = vpop.permute.xlu0 %909 }
 0x115   :  { %v1081_v51 = vsub.f32 %v915_v23, %v3506_v6  ;;  %v1637_v47 = vmul.f32 %v2482_v36, %v4400_v44  ;;  %v1299_v39 = vmul.f32 %v1071_v12, %v1071_v12  ;;  %v1300_v1 = vmul.f32 %v1072_v43, %v1072_v43 }
 0x116   :  { %v1301_v48 = vmul.f32 %v1073_v58, %v1073_v58  ;;  %v1632_v26 = vsel %vm1631_vm15, %v4385_v34, %v1630_v38  ;;  %vm1696_vm7 = vcmp.eq.f32.partialorder %v4427_v14, 0.0  ;;  %v1082_v56 = vsub.f32 %v915_v23, %v3503_v33  ;;  %v5965_v34 = vld [vmem:[#allocation5_spill] sm:$0xff] }
 0x117   :  { %v2484_v53 = vpop.eup %2483  ;;  %v1308_v5 = vmul.f32 %v1080_v55, %v1080_v55  ;;  %v1635_v16 = vsel %vm1633_vm10, %v1634_v32, %v1632_v26  ;;  %v1639_v19 = vsel %vm1638_vm9, %v4400_v44, %v1637_v47  ;;  %v4481_v9 = vadd.f32 %v1299_v39, %v5962_v63 }
 0x118   :  { %v1644_v21 = vmul.f32 %v2484_v53, %v4405_v29  ;;  %v1642_v50 = vsel %vm1640_vm11, %v1641_v31, %v1639_v19  ;;  %2319 = vst [vmem:[#allocation2 + $0x90] sm:$0xff] %v1635_v16  ;;  %v4486_v11 = vadd.f32 %v1300_v1, %v5963_v59  ;;  %v4489_v23 = vadd.f32 %v1301_v48, %v5964_v18  ;;  %v5966_v53 = vld [vmem:[#allocation45_spill] sm:$0xff] }
 0x119   :  { %v4492_v57 = vadd.f32 %v1308_v5, %v5965_v34  ;;  %2320 = vst [vmem:[#allocation2 + $0x98] sm:$0xff] %v1642_v50  ;;  %v1697_v60 = vand.u32 2147483648, %v4427_v14  ;;  %2491 = vrsqrt.f32 %v4481_v9  ;;  %v1309_v44 = vmul.f32 %v1081_v51, %v1081_v51 }
 0x11a   :  { %v2486_v32 = vpop.eup %2485  ;;  %v1646_v30 = vsel %vm1645_vm12, %v4405_v29, %v1644_v21  ;;  %2493 = vrsqrt.f32 %v4486_v11  ;;  %v1310_v58 = vmul.f32 %v1082_v56, %v1082_v56  ;;  %vm1701_vm6 = vcmp.eq.f32.partialorder %v4433_v61, inf  ;;  %v5967_v56 = vld [vmem:[#allocation6_spill] sm:$0xff] }
 0x11b   :  { %v2488_v31 = vpop.eup %2487  ;;  %v1649_v12 = vsel %vm1647_vm14, %v1648_v15, %v1646_v30  ;;  %v1693_v43 = vmul.f32 %v2486_v32, %v4427_v14  ;;  %vm1703_vm5 = vcmp.eq.f32.partialorder %v4433_v61, 0.0  ;;  %v1704_v36 = vand.u32 2147483648, %v4433_v61 }
 0x11c   :  { %2321 = vst [vmem:[#allocation2 + $0xa0] sm:$0xff] %v1649_v12  ;;  %v1700_v55 = vmul.f32 %v2488_v31, %v4433_v61  ;;  %vm1708_vm4 = vcmp.eq.f32.partialorder %v4436_v10, inf  ;;  %v1711_v15 = vand.u32 2147483648, %v4436_v10  ;;  %2495 = vrsqrt.f32 %v4489_v23  ;;  %v5968_v31 = vld [vmem:[#allocation76_spill] sm:$0xff] }
 0x11d   :  { %v2490_v38 = vpop.eup %2489  ;;  %v1695_v29 = vsel %vm1694_vm13, %v4427_v14, %v1693_v43  ;;  %v1077_v1 = vsub.f32 %v910_v13, %v3787_v3  ;;  %v4519_v26 = vadd.f32 %v1309_v44, %v5966_v53  ;;  %v4522_v5 = vadd.f32 %v1310_v58, %v5967_v56 }
 0x11e   :  { %v1698_v51 = vsel %vm1696_vm7, %v1697_v60, %v1695_v29  ;;  %v1702_v47 = vsel %vm1701_vm6, %v4433_v61, %v1700_v55  ;;  %v1707_v39 = vmul.f32 %v2490_v38, %v4436_v10  ;;  %2497 = vrsqrt.f32 %v4492_v57  ;;  %v925_v61 = vpop.permute.xlu1 %924  ;;  %v5970_v29 = vld [vmem:[#allocation78_spill] sm:$0xff] }
 0x11f   :  { %v1705_v48 = vsel %vm1703_vm5, %v1704_v36, %v1702_v47  ;;  %2328 = vst [vmem:[#allocation2 + $0xd8] sm:$0xff] %v1698_v51  ;;  %vm1710_vm8 = vcmp.eq.f32.partialorder %v4436_v10, 0.0  ;;  %vm1673_vm15 = vcmp.eq.f32.partialorder %v4481_v9, inf  ;;  %vm1675_vm10 = vcmp.eq.f32.partialorder %v4481_v9, 0.0  ;;  %v5969_v36 = vld [vmem:[#allocation77_spill] sm:$0xff] }
 0x120   :  { %v1709_v16 = vsel %vm1708_vm4, %v4436_v10, %v1707_v39  ;;  %2329 = vst [vmem:[#allocation2 + $0xe0] sm:$0xff] %v1705_v48  ;;  %v1676_v14 = vand.u32 2147483648, %v4481_v9  ;;  %vm1680_vm9 = vcmp.eq.f32.partialorder %v4486_v11, inf  ;;  %2499 = vrsqrt.f32 %v4519_v26 }
 0x121   :  { %v1712_v3 = vsel %vm1710_vm8, %v1711_v15, %v1709_v16  ;;  %vm1682_vm11 = vcmp.eq.f32.partialorder %v4486_v11, 0.0  ;;  %v1683_v19 = vand.u32 2147483648, %v4486_v11  ;;  %vm1687_vm12 = vcmp.eq.f32.partialorder %v4489_v23, inf }
 0x122   :  { %2330 = vst [vmem:[#allocation2 + $0xe8] sm:$0xff] %v1712_v3  ;;  %2501 = vrsqrt.f32 %v4522_v5  ;;  %vm1689_vm14 = vcmp.eq.f32.partialorder %v4489_v23, 0.0  ;;  %v1078_v10 = vsub.f32 %v910_v13, %v3506_v6  ;;  %v1079_v21 = vsub.f32 %v910_v13, %v3503_v33 }
 0x123   :  { %v1305_v63 = vmul.f32 %v1077_v1, %v1077_v1  ;;  %v2492_v50 = vpop.eup %2491  ;;  %v1690_v59 = vand.u32 2147483648, %v4489_v23  ;;  %vm1736_vm13 = vcmp.eq.f32.partialorder %v4492_v57, inf  ;;  %v1086_v18 = vsub.f32 %v925_v61, %v3880_v25 }
 0x124   :  { %v1087_v34 = vsub.f32 %v925_v61, %v3506_v6  ;;  %v2494_v32 = vpop.eup %2493  ;;  %v1672_v30 = vmul.f32 %v2492_v50, %v4481_v9  ;;  %v1306_v60 = vmul.f32 %v1078_v10, %v1078_v10  ;;  %v1307_v44 = vmul.f32 %v1079_v21, %v1079_v21 }
 0x125   :  { %v4545_v12 = vadd.f32 %v1305_v63, %v5968_v31  ;;  %v1679_v43 = vmul.f32 %v2494_v32, %v4486_v11  ;;  %vm1738_vm7 = vcmp.eq.f32.partialorder %v4492_v57, 0.0  ;;  %v1739_v58 = vand.u32 2147483648, %v4492_v57 }
 0x126   :  { %v1088_v13 = vsub.f32 %v925_v61, %v3503_v33  ;;  %v2496_v55 = vpop.eup %2495  ;;  %v1674_v25 = vsel %vm1673_vm15, %v4481_v9, %v1672_v30  ;;  %v4555_v38 = vadd.f32 %v1306_v60, %v5969_v36  ;;  %v4558_v15 = vadd.f32 %v1307_v44, %v5970_v29  ;;  %v5971_v30 = vld [vmem:[#allocation46_spill] sm:$0xff] }
 0x127   :  { %2503 = vrsqrt.f32 %v4545_v12  ;;  %v1677_v51 = vsel %vm1675_vm10, %v1676_v14, %v1674_v25  ;;  %v1681_v47 = vsel %vm1680_vm9, %v4486_v11, %v1679_v43  ;;  %v1686_v39 = vmul.f32 %v2496_v55, %v4489_v23 }
 0x128   :  { %vm1743_vm6 = vcmp.eq.f32.partialorder %v4519_v26, inf  ;;  %v2498_v1 = vpop.eup %2497  ;;  %v1684_v48 = vsel %vm1682_vm11, %v1683_v19, %v1681_v47  ;;  %2325 = vst [vmem:[#allocation2 + $0xc0] sm:$0xff] %v1677_v51  ;;  %2505 = vrsqrt.f32 %v4555_v38  ;;  %v1314_v53 = vmul.f32 %v1086_v18, %v1086_v18  ;;  %v920_v19 = vpop.permute.xlu0 %919 }
 0x129   :  { %v1315_v56 = vmul.f32 %v1087_v34, %v1087_v34  ;;  %v1688_v9 = vsel %vm1687_vm12, %v4489_v23, %v1686_v39  ;;  %2326 = vst [vmem:[#allocation2 + $0xc8] sm:$0xff] %v1684_v48  ;;  %v1735_v16 = vmul.f32 %v2498_v1, %v4492_v57  ;;  %vm1745_vm5 = vcmp.eq.f32.partialorder %v4519_v26, 0.0 }
 0x12a   :  { %v1316_v3 = vmul.f32 %v1088_v13, %v1088_v13  ;;  %v2500_v14 = vpop.eup %2499  ;;  %v1691_v11 = vsel %vm1689_vm14, %v1690_v59, %v1688_v9  ;;  %v1746_v61 = vand.u32 2147483648, %v4519_v26  ;;  %vm1750_vm4 = vcmp.eq.f32.partialorder %v4522_v5, inf }
 0x12b   :  { %2507 = vrsqrt.f32 %v4558_v15  ;;  %2327 = vst [vmem:[#allocation2 + $0xd0] sm:$0xff] %v1691_v11  ;;  %v1737_v21 = vsel %vm1736_vm13, %v4492_v57, %v1735_v16  ;;  %v1742_v63 = vmul.f32 %v2500_v14, %v4519_v26  ;;  %vm1752_vm8 = vcmp.eq.f32.partialorder %v4522_v5, 0.0  ;;  %v5972_v16 = vld [vmem:[#allocation79_spill] sm:$0xff] }
 0x12c   :  { %v2502_v10 = vpop.eup %2501  ;;  %v1753_v23 = vand.u32 2147483648, %v4522_v5  ;;  %v1740_v50 = vsel %vm1738_vm7, %v1739_v58, %v1737_v21  ;;  %v4591_v18 = vadd.f32 %v1314_v53, %v3809_v27  ;;  %v4594_v34 = vadd.f32 %v1315_v56, %v3811_v54 }
 0x12d   :  { %v1749_v59 = vmul.f32 %v2502_v10, %v4522_v5  ;;  %v1744_v32 = vsel %vm1743_vm6, %v4519_v26, %v1742_v63  ;;  %2334 = vst [vmem:[#allocation2 + $0x108] sm:$0xff] %v1740_v50  ;;  %v4600_v60 = vadd.f32 %v1316_v3, %v5971_v30  ;;  %v1083_v44 = vsub.f32 %v920_v19, %v3907_v41  ;;  %v935_v41 = vpop.permute.xlu1 %934  ;;  %v930_v63 = vpop.permute.xlu0 %929 }
 0x12e   :  { %v1084_v57 = vsub.f32 %v920_v19, %v3506_v6  ;;  %v1747_v31 = vsel %vm1745_vm5, %v1746_v61, %v1744_v32  ;;  %2509 = vrsqrt.f32 %v4591_v18  ;;  %v1085_v54 = vsub.f32 %v920_v19, %v3503_v33 }
 0x12f   :  { %v1751_v27 = vsel %vm1750_vm4, %v4522_v5, %v1749_v59  ;;  %2335 = vst [vmem:[#allocation2 + $0x110] sm:$0xff] %v1747_v31  ;;  %vm1715_vm15 = vcmp.eq.f32.partialorder %v4545_v12, inf  ;;  %vm1717_vm10 = vcmp.eq.f32.partialorder %v4545_v12, 0.0  ;;  %2511 = vrsqrt.f32 %v4594_v34  ;;  %v5974_v31 = vld [vmem:[#allocation80_spill] sm:$0xff] }
 0x130   :  { %v1754_v43 = vsel %vm1752_vm8, %v1753_v23, %v1751_v27  ;;  %v1718_v26 = vand.u32 2147483648, %v4545_v12  ;;  %vm1722_vm9 = vcmp.eq.f32.partialorder %v4555_v38, inf  ;;  %vm1724_vm11 = vcmp.eq.f32.partialorder %v4555_v38, 0.0 }
 0x131   :  { %v2504_v58 = vpop.eup %2503  ;;  %2336 = vst [vmem:[#allocation2 + $0x118] sm:$0xff] %v1754_v43  ;;  %2513 = vrsqrt.f32 %v4600_v60  ;;  %v1725_v13 = vand.u32 2147483648, %v4555_v38  ;;  %vm1729_vm12 = vcmp.eq.f32.partialorder %v4558_v15, inf  ;;  %vm1731_vm14 = vcmp.eq.f32.partialorder %v4558_v15, 0.0 }
 0x132   :  { %v1714_v5 = vmul.f32 %v2504_v58, %v4545_v12  ;;  %v2506_v55 = vpop.eup %2505  ;;  %v1311_v25 = vmul.f32 %v1083_v44, %v1083_v44  ;;  %v1312_v36 = vmul.f32 %v1084_v57, %v1084_v57  ;;  %v1313_v29 = vmul.f32 %v1085_v54, %v1085_v54  ;;  %v5973_v44 = vld [vmem:[#allocation9_spill] sm:$0xff] }
 0x133   :  { %v1092_v51 = vsub.f32 %v935_v41, %v3981_v35  ;;  %v1721_v39 = vmul.f32 %v2506_v55, %v4555_v38  ;;  %v1732_v1 = vand.u32 2147483648, %v4558_v15  ;;  %v1093_v48 = vsub.f32 %v935_v41, %v3506_v6 }
 0x134   :  { %v1716_v47 = vsel %vm1715_vm15, %v4545_v12, %v1714_v5  ;;  %v4632_v9 = vadd.f32 %v1311_v25, %v3829_v7  ;;  %v4635_v3 = vadd.f32 %v1312_v36, %v5972_v16  ;;  %v4638_v35 = vadd.f32 %v1313_v29, %v3833_v62 }
 0x135   :  { %v2508_v53 = vpop.eup %2507  ;;  %v1719_v56 = vsel %vm1717_vm10, %v1718_v26, %v1716_v47  ;;  %v1723_v14 = vsel %vm1722_vm9, %v4555_v38, %v1721_v39  ;;  %vm1778_vm13 = vcmp.eq.f32.partialorder %v4591_v18, inf  ;;  %v1094_v12 = vsub.f32 %v935_v41, %v3503_v33 }
 0x136   :  { %v1728_v11 = vmul.f32 %v2508_v53, %v4558_v15  ;;  %2331 = vst [vmem:[#allocation2 + $0xf0] sm:$0xff] %v1719_v56  ;;  %v1726_v7 = vsel %vm1724_vm11, %v1725_v13, %v1723_v14  ;;  %2515 = vrsqrt.f32 %v4632_v9  ;;  %v1320_v61 = vmul.f32 %v1092_v51, %v1092_v51  ;;  %v5975_v13 = vld [vmem:[#allocation81_spill] sm:$0xff] }
 0x137   :  { %v1321_v19 = vmul.f32 %v1093_v48, %v1093_v48  ;;  %2332 = vst [vmem:[#allocation2 + $0xf8] sm:$0xff] %v1726_v7  ;;  %vm1780_vm7 = vcmp.eq.f32.partialorder %v4591_v18, 0.0  ;;  %v1781_v10 = vand.u32 2147483648, %v4591_v18  ;;  %2517 = vrsqrt.f32 %v4635_v3  ;;  %v5976_v7 = vld [vmem:[#allocation82_spill] sm:$0xff] }
 0x138   :  { %v1730_v62 = vsel %vm1729_vm12, %v4558_v15, %v1728_v11  ;;  %v2510_v21 = vpop.eup %2509  ;;  %vm1785_vm6 = vcmp.eq.f32.partialorder %v4594_v34, inf  ;;  %vm1787_vm5 = vcmp.eq.f32.partialorder %v4594_v34, 0.0  ;;  %2519 = vrsqrt.f32 %v4638_v35 }
 0x139   :  { %v1733_v38 = vsel %vm1731_vm14, %v1732_v1, %v1730_v62  ;;  %v2512_v23 = vpop.eup %2511  ;;  %v1777_v50 = vmul.f32 %v2510_v21, %v4591_v18  ;;  %v1788_v59 = vand.u32 2147483648, %v4594_v34  ;;  %vm1792_vm4 = vcmp.eq.f32.partialorder %v4600_v60, inf }
 0x13a   :  { %2333 = vst [vmem:[#allocation2 + $0x100] sm:$0xff] %v1733_v38  ;;  %vm1794_vm8 = vcmp.eq.f32.partialorder %v4600_v60, 0.0  ;;  %v1784_v15 = vmul.f32 %v2512_v23, %v4594_v34  ;;  %v1322_v30 = vmul.f32 %v1094_v12, %v1094_v12  ;;  %v4666_v57 = vadd.f32 %v1320_v61, %v5973_v44 }
 0x13b   :  { %v2514_v32 = vpop.eup %2513  ;;  %v4669_v27 = vadd.f32 %v1321_v19, %v5974_v31  ;;  %v1779_v54 = vsel %vm1778_vm13, %v4591_v18, %v1777_v50  ;;  %v1795_v41 = vand.u32 2147483648, %v4600_v60  ;;  %v1089_v58 = vsub.f32 %v930_v63, %v4009_v49  ;;  %v5978_v50 = vld [vmem:[#allocation84_spill] sm:$0xff] }
 0x13c   :  { %v1791_v43 = vmul.f32 %v2514_v32, %v4600_v60  ;;  %v1782_v26 = vsel %vm1780_vm7, %v1781_v10, %v1779_v54  ;;  %v1786_v5 = vsel %vm1785_vm6, %v4594_v34, %v1784_v15  ;;  %v4683_v55 = vadd.f32 %v1322_v30, %v5975_v13  ;;  %v945_v34 = vpop.permute.xlu1 %944  ;;  %v5977_v10 = vld [vmem:[#allocation83_spill] sm:$0xff]  ;;  %v5979_v13 = vld [vmem:[#allocation85_spill] sm:$0xff] }
 0x13d   :  { %2521 = vrsqrt.f32 %v4666_v57  ;;  %v1789_v25 = vsel %vm1787_vm5, %v1788_v59, %v1786_v5  ;;  %2340 = vst [vmem:[#allocation2 + $0x138] sm:$0xff] %v1782_v26  ;;  %vm1757_vm15 = vcmp.eq.f32.partialorder %v4632_v9, inf  ;;  %v1090_v49 = vsub.f32 %v930_v63, %v3506_v6 }
 0x13e   :  { %v1793_v36 = vsel %vm1792_vm4, %v4600_v60, %v1791_v43  ;;  %2341 = vst [vmem:[#allocation2 + $0x140] sm:$0xff] %v1789_v25  ;;  %vm1759_vm10 = vcmp.eq.f32.partialorder %v4632_v9, 0.0  ;;  %v1760_v29 = vand.u32 2147483648, %v4632_v9  ;;  %2523 = vrsqrt.f32 %v4669_v27 }
 0x13f   :  { %v1796_v18 = vsel %vm1794_vm8, %v1795_v41, %v1793_v36  ;;  %vm1764_vm9 = vcmp.eq.f32.partialorder %v4635_v3, inf  ;;  %vm1766_vm11 = vcmp.eq.f32.partialorder %v4635_v3, 0.0  ;;  %v1767_v51 = vand.u32 2147483648, %v4635_v3  ;;  %v940_v36 = vpop.permute.xlu0 %939 }
 0x140   :  { %2342 = vst [vmem:[#allocation2 + $0x148] sm:$0xff] %v1796_v18  ;;  %2525 = vrsqrt.f32 %v4683_v55  ;;  %v2516_v47 = vpop.eup %2515  ;;  %vm1771_vm12 = vcmp.eq.f32.partialorder %v4638_v35, inf  ;;  %vm1773_vm14 = vcmp.eq.f32.partialorder %v4638_v35, 0.0  ;;  %v1091_v60 = vsub.f32 %v930_v63, %v3503_v33 }
 0x141   :  { %v1317_v39 = vmul.f32 %v1089_v58, %v1089_v58  ;;  %v2518_v1 = vpop.eup %2517  ;;  %v1756_v48 = vmul.f32 %v2516_v47, %v4632_v9  ;;  %v1774_v53 = vand.u32 2147483648, %v4638_v35  ;;  %v1318_v56 = vmul.f32 %v1090_v49, %v1090_v49 }
 0x142   :  { %v1098_v16 = vsub.f32 %v945_v34, %v3430_v20  ;;  %v2520_v14 = vpop.eup %2519  ;;  %v1763_v11 = vmul.f32 %v2518_v1, %v4635_v3  ;;  %vm1820_vm13 = vcmp.eq.f32.partialorder %v4666_v57, inf  ;;  %v1319_v12 = vmul.f32 %v1091_v60, %v1091_v60  ;;  %v5981_v60 = vld [vmem:[#allocation7_spill] sm:$0xff] }
 0x143   :  { %v4711_v61 = vadd.f32 %v1317_v39, %v5976_v7  ;;  %v1758_v19 = vsel %vm1757_vm15, %v4632_v9, %v1756_v48  ;;  %v1770_v62 = vmul.f32 %v2520_v14, %v4638_v35  ;;  %v4718_v21 = vadd.f32 %v1318_v56, %v5977_v10 }
 0x144   :  { %v1099_v38 = vsub.f32 %v945_v34, %v4074_v24  ;;  %v1761_v63 = vsel %vm1759_vm10, %v1760_v29, %v1758_v19  ;;  %v1765_v23 = vsel %vm1764_vm9, %v4635_v3, %v1763_v11  ;;  %v4727_v59 = vadd.f32 %v1319_v12, %v5978_v50 }
 0x145   :  { %2527 = vrsqrt.f32 %v4711_v61  ;;  %v1768_v32 = vsel %vm1766_vm11, %v1767_v51, %v1765_v23  ;;  %v1772_v15 = vsel %vm1771_vm12, %v4638_v35, %v1770_v62  ;;  %2337 = vst [vmem:[#allocation2 + $0x120] sm:$0xff] %v1761_v63  ;;  %v1100_v24 = vsub.f32 %v945_v34, %v3503_v33  ;;  %v5980_v34 = vld [vmem:[#allocation86_spill] sm:$0xff] }
 0x146   :  { %v1326_v9 = vmul.f32 %v1098_v16, %v1098_v16  ;;  %v1775_v44 = vsel %vm1773_vm14, %v1774_v53, %v1772_v15  ;;  %2338 = vst [vmem:[#allocation2 + $0x128] sm:$0xff] %v1768_v32  ;;  %vm1822_vm7 = vcmp.eq.f32.partialorder %v4666_v57, 0.0  ;;  %v1823_v31 = vand.u32 2147483648, %v4666_v57 }
 0x147   :  { %v2522_v30 = vpop.eup %2521  ;;  %2529 = vrsqrt.f32 %v4718_v21  ;;  %2339 = vst [vmem:[#allocation2 + $0x130] sm:$0xff] %v1775_v44  ;;  %vm1827_vm6 = vcmp.eq.f32.partialorder %v4669_v27, inf  ;;  %vm1829_vm5 = vcmp.eq.f32.partialorder %v4669_v27, 0.0  ;;  %v1830_v35 = vand.u32 2147483648, %v4669_v27  ;;  %v5983_v44 = vld [vmem:[#allocation88_spill] sm:$0xff] }
 0x148   :  { %v1819_v3 = vmul.f32 %v2522_v30, %v4666_v57  ;;  %2531 = vrsqrt.f32 %v4727_v59  ;;  %v2524_v54 = vpop.eup %2523  ;;  %vm1834_vm4 = vcmp.eq.f32.partialorder %v4683_v55, inf  ;;  %vm1836_vm8 = vcmp.eq.f32.partialorder %v4683_v55, 0.0 }
 0x149   :  { %v1327_v43 = vmul.f32 %v1099_v38, %v1099_v38  ;;  %v1826_v26 = vmul.f32 %v2524_v54, %v4669_v27  ;;  %v1328_v5 = vmul.f32 %v1100_v24, %v1100_v24  ;;  %v4753_v25 = vadd.f32 %v1326_v9, %v5979_v13  ;;  %v5982_v9 = vld [vmem:[#allocation87_spill] sm:$0xff] }
 0x14a   :  { %v2526_v41 = vpop.eup %2525  ;;  %v1821_v58 = vsel %vm1820_vm13, %v4666_v57, %v1819_v3  ;;  %v1837_v29 = vand.u32 2147483648, %v4683_v55  ;;  %vm1799_vm15 = vcmp.eq.f32.partialorder %v4711_v61, inf  ;;  %vm1801_vm10 = vcmp.eq.f32.partialorder %v4711_v61, 0.0  ;;  %v5984_v3 = vld [vmem:[#allocation89_spill] sm:$0xff] }
 0x14b   :  { %v1824_v49 = vsel %vm1822_vm7, %v1823_v31, %v1821_v58  ;;  %v1833_v18 = vmul.f32 %v2526_v41, %v4683_v55  ;;  %v4760_v51 = vadd.f32 %v1327_v43, %v5980_v34  ;;  %v1828_v47 = vsel %vm1827_vm6, %v4669_v27, %v1826_v26  ;;  %v955_v27 = vpop.permute.xlu1 %954 }
 0x14c   :  { %2346 = vst [vmem:[#allocation2 + $0x168] sm:$0xff] %v1824_v49  ;;  %v4767_v39 = vadd.f32 %v1328_v5, %v5981_v60  ;;  %2533 = vrsqrt.f32 %v4753_v25  ;;  %v1831_v57 = vsel %vm1829_vm5, %v1830_v35, %v1828_v47  ;;  %v1095_v48 = vsub.f32 %v940_v36, %v3430_v20  ;;  %v5985_v47 = vld [vmem:[#allocation90_spill] sm:$0xff] }
 0x14d   :  { %v1835_v1 = vsel %vm1834_vm4, %v4683_v55, %v1833_v18  ;;  %2347 = vst [vmem:[#allocation2 + $0x170] sm:$0xff] %v1831_v57  ;;  %v1802_v56 = vand.u32 2147483648, %v4711_v61  ;;  %vm1806_vm9 = vcmp.eq.f32.partialorder %v4718_v21, inf  ;;  %2535 = vrsqrt.f32 %v4760_v51 }
 0x14e   :  { %v1838_v53 = vsel %vm1836_vm8, %v1837_v29, %v1835_v1  ;;  %vm1808_vm11 = vcmp.eq.f32.partialorder %v4718_v21, 0.0  ;;  %v1809_v14 = vand.u32 2147483648, %v4718_v21  ;;  %vm1813_vm12 = vcmp.eq.f32.partialorder %v4727_v59, inf }
 0x14f   :  { %v2528_v16 = vpop.eup %2527  ;;  %2348 = vst [vmem:[#allocation2 + $0x178] sm:$0xff] %v1838_v53  ;;  %2537 = vrsqrt.f32 %v4767_v39  ;;  %vm1815_vm14 = vcmp.eq.f32.partialorder %v4727_v59, 0.0  ;;  %v1096_v11 = vsub.f32 %v940_v36, %v4081_v46  ;;  %v1097_v12 = vsub.f32 %v940_v36, %v3503_v33  ;;  %v5986_v53 = vld [vmem:[#allocation8_spill] sm:$0xff] }
 0x150   :  { %v1798_v55 = vmul.f32 %v2528_v16, %v4711_v61  ;;  %v1816_v19 = vand.u32 2147483648, %v4727_v59  ;;  %v1323_v62 = vmul.f32 %v1095_v48, %v1095_v48  ;;  %v1104_v10 = vsub.f32 %v955_v27, %v3430_v20  ;;  %v5987_v16 = vld [vmem:[#allocation91_spill] sm:$0xff] }
 0x151   :  { %v2530_v7 = vpop.eup %2529  ;;  %v1105_v38 = vsub.f32 %v955_v27, %v4158_v0  ;;  %v1324_v32 = vmul.f32 %v1096_v11, %v1096_v11  ;;  %v1325_v15 = vmul.f32 %v1097_v12, %v1097_v12  ;;  %vm1862_vm13 = vcmp.eq.f32.partialorder %v4753_v25, inf  ;;  %v950_v11 = vpop.permute.xlu0 %949  ;;  %v5988_v12 = vld [vmem:[#allocation30_spill] sm:$0xff] }
 0x152   :  { %v2532_v63 = vpop.eup %2531  ;;  %v1800_v23 = vsel %vm1799_vm15, %v4711_v61, %v1798_v55  ;;  %v1805_v50 = vmul.f32 %v2530_v7, %v4718_v21  ;;  %v4802_v30 = vadd.f32 %v1323_v62, %v5982_v9  ;;  %v1106_v61 = vsub.f32 %v955_v27, %v3503_v33  ;;  %v965_v62 = vpop.permute.xlu1 %964 }
 0x153   :  { %v1803_v46 = vsel %vm1801_vm10, %v1802_v56, %v1800_v23  ;;  %v1812_v24 = vmul.f32 %v2532_v63, %v4727_v59  ;;  %v4808_v31 = vadd.f32 %v1324_v32, %v5983_v44  ;;  %v4811_v54 = vadd.f32 %v1325_v15, %v5984_v3  ;;  %v5990_v15 = vld [vmem:[#allocation31_spill] sm:$0xff] }
 0x154   :  { %v1807_v0 = vsel %vm1806_vm9, %v4718_v21, %v1805_v50  ;;  %2343 = vst [vmem:[#allocation2 + $0x150] sm:$0xff] %v1803_v46  ;;  %2539 = vrsqrt.f32 %v4802_v30  ;;  %v1332_v41 = vmul.f32 %v1104_v10, %v1104_v10  ;;  %vm1864_vm7 = vcmp.eq.f32.partialorder %v4753_v25, 0.0 }
 0x155   :  { %v1810_v35 = vsel %vm1808_vm11, %v1809_v14, %v1807_v0  ;;  %v1814_v43 = vsel %vm1813_vm12, %v4727_v59, %v1812_v24  ;;  %2541 = vrsqrt.f32 %v4808_v31  ;;  %v1333_v5 = vmul.f32 %v1105_v38, %v1105_v38 }
 0x156   :  { %v2534_v58 = vpop.eup %2533  ;;  %v1817_v26 = vsel %vm1815_vm14, %v1816_v19, %v1814_v43  ;;  %2344 = vst [vmem:[#allocation2 + $0x158] sm:$0xff] %v1810_v35  ;;  %v1865_v13 = vand.u32 2147483648, %v4753_v25  ;;  %vm1869_vm6 = vcmp.eq.f32.partialorder %v4760_v51, inf  ;;  %vm1871_vm5 = vcmp.eq.f32.partialorder %v4760_v51, 0.0 }
 0x157   :  { %2345 = vst [vmem:[#allocation2 + $0x160] sm:$0xff] %v1817_v26  ;;  %v1861_v21 = vmul.f32 %v2534_v58, %v4753_v25  ;;  %v2536_v36 = vpop.eup %2535  ;;  %v1872_v49 = vand.u32 2147483648, %v4760_v51  ;;  %vm1876_vm4 = vcmp.eq.f32.partialorder %v4767_v39, inf  ;;  %vm1878_vm8 = vcmp.eq.f32.partialorder %v4767_v39, 0.0 }
 0x158   :  { %2543 = vrsqrt.f32 %v4811_v54  ;;  %v1868_v29 = vmul.f32 %v2536_v36, %v4760_v51  ;;  %v1334_v34 = vmul.f32 %v1106_v61, %v1106_v61  ;;  %v4837_v60 = vadd.f32 %v1332_v41, %v5985_v47 }
 0x159   :  { %v2538_v59 = vpop.eup %2537  ;;  %v1863_v18 = vsel %vm1862_vm13, %v4753_v25, %v1861_v21  ;;  %v1879_v48 = vand.u32 2147483648, %v4767_v39  ;;  %v4844_v56 = vadd.f32 %v1333_v5, %v5986_v53  ;;  %vm1841_vm15 = vcmp.eq.f32.partialorder %v4802_v30, inf }
 0x15a   :  { %v1866_v57 = vsel %vm1864_vm7, %v1865_v13, %v1863_v18  ;;  %v1875_v1 = vmul.f32 %v2538_v59, %v4767_v39  ;;  %v1870_v27 = vsel %vm1869_vm6, %v4760_v51, %v1868_v29  ;;  %v4851_v14 = vadd.f32 %v1334_v34, %v5987_v16  ;;  %v5992_v13 = vld [vmem:[#allocation92_spill] sm:$0xff]  ;;  %v5993_v59 = vld [vmem:[#allocation93_spill] sm:$0xff] }
 0x15b   :  { %2352 = vst [vmem:[#allocation2 + $0x198] sm:$0xff] %v1866_v57  ;;  %2545 = vrsqrt.f32 %v4837_v60  ;;  %v1873_v25 = vsel %vm1871_vm5, %v1872_v49, %v1870_v27  ;;  %vm1843_vm10 = vcmp.eq.f32.partialorder %v4802_v30, 0.0  ;;  %vm5989_vm9 = vcmp.ge.s32.totalorder %v5919_v8, %v5988_v12  ;;  %v5994_v12 = vld [vmem:[#allocation94_spill] sm:$0xff] }
 0x15c   :  { %v1877_v55 = vsel %vm1876_vm4, %v4767_v39, %v1875_v1  ;;  %v418_v7 = vsel %vm5989_vm9, %v3506_v6, %v4041_v37  ;;  %2353 = vst [vmem:[#allocation2 + $0x1a0] sm:$0xff] %v1873_v25  ;;  %v1844_v51 = vand.u32 2147483648, %v4802_v30  ;;  %vm1848_vm11 = vcmp.eq.f32.partialorder %v4808_v31, inf }
 0x15d   :  { %v1880_v19 = vsel %vm1878_vm8, %v1879_v48, %v1877_v55  ;;  %2547 = vrsqrt.f32 %v4844_v56  ;;  %vm1850_vm12 = vcmp.eq.f32.partialorder %v4808_v31, 0.0  ;;  %v1851_v10 = vand.u32 2147483648, %v4808_v31 }
 0x15e   :  { %2354 = vst [vmem:[#allocation2 + $0x1a8] sm:$0xff] %v1880_v19  ;;  %vm1855_vm14 = vcmp.eq.f32.partialorder %v4811_v54, inf  ;;  %2549 = vrsqrt.f32 %v4851_v14  ;;  %v2540_v38 = vpop.eup %2539  ;;  %vm1857_vm13 = vcmp.eq.f32.partialorder %v4811_v54, 0.0  ;;  %v1101_v39 = vsub.f32 %v950_v11, %v3430_v20 }
 0x15f   :  { %v1102_v63 = vsub.f32 %v950_v11, %v418_v7  ;;  %v1103_v23 = vsub.f32 %v950_v11, %v3503_v33  ;;  %v2542_v50 = vpop.eup %2541  ;;  %v1840_v32 = vmul.f32 %v2540_v38, %v4802_v30  ;;  %vm5991_vm7 = vcmp.ge.s32.totalorder %v5919_v8, %v5990_v15 }
 0x160   :  { %v427_v46 = vsel %vm5991_vm7, %v3506_v6, %v4041_v37  ;;  %v1110_v24 = vsub.f32 %v965_v62, %v3430_v20  ;;  %v1112_v9 = vsub.f32 %v965_v62, %v3503_v33  ;;  %v1847_v0 = vmul.f32 %v2542_v50, %v4808_v31 }
 0x161   :  { %v1329_v44 = vmul.f32 %v1101_v39, %v1101_v39  ;;  %v1330_v3 = vmul.f32 %v1102_v63, %v1102_v63  ;;  %v1331_v61 = vmul.f32 %v1103_v23, %v1103_v23  ;;  %v1842_v43 = vsel %vm1841_vm15, %v4802_v30, %v1840_v32  ;;  %v960_v39 = vpop.permute.xlu0 %959 }
 0x162   :  { %v2544_v35 = vpop.eup %2543  ;;  %v1858_v41 = vand.u32 2147483648, %v4811_v54  ;;  %vm1904_vm6 = vcmp.eq.f32.partialorder %v4837_v60, inf  ;;  %v1111_v58 = vsub.f32 %v965_v62, %v427_v46  ;;  %v1845_v26 = vsel %vm1843_vm10, %v1844_v51, %v1842_v43 }
 0x163   :  { %v1849_v5 = vsel %vm1848_vm11, %v4808_v31, %v1847_v0  ;;  %v1854_v21 = vmul.f32 %v2544_v35, %v4811_v54  ;;  %v4898_v36 = vadd.f32 %v1329_v44, %v5992_v13  ;;  %2349 = vst [vmem:[#allocation2 + $0x180] sm:$0xff] %v1845_v26  ;;  %vm1906_vm5 = vcmp.eq.f32.partialorder %v4837_v60, 0.0 }
 0x164   :  { %v1852_v49 = vsel %vm1850_vm12, %v1851_v10, %v1849_v5  ;;  %v4904_v18 = vadd.f32 %v1330_v3, %v5993_v59  ;;  %v4907_v30 = vadd.f32 %v1331_v61, %v3927_v52  ;;  %v1338_v47 = vmul.f32 %v1110_v24, %v1110_v24 }
 0x165   :  { %v2546_v29 = vpop.eup %2545  ;;  %v1856_v34 = vsel %vm1855_vm14, %v4811_v54, %v1854_v21  ;;  %2350 = vst [vmem:[#allocation2 + $0x188] sm:$0xff] %v1852_v49  ;;  %2551 = vrsqrt.f32 %v4898_v36  ;;  %v1340_v31 = vmul.f32 %v1112_v9, %v1112_v9  ;;  %v1339_v48 = vmul.f32 %v1111_v58, %v1111_v58  ;;  %v5997_v9 = vld [vmem:[#allocation33_spill] sm:$0xff]  ;;  %v5999_v49 = vld [vmem:[#allocation48_spill] sm:$0xff] }
 0x166   :  { %v1859_v57 = vsel %vm1857_vm13, %v1858_v41, %v1856_v34  ;;  %v1903_v1 = vmul.f32 %v2546_v29, %v4837_v60  ;;  %2553 = vrsqrt.f32 %v4904_v18  ;;  %v1907_v53 = vand.u32 2147483648, %v4837_v60 }
 0x167   :  { %v2548_v52 = vpop.eup %2547  ;;  %2351 = vst [vmem:[#allocation2 + $0x190] sm:$0xff] %v1859_v57  ;;  %vm1911_vm4 = vcmp.eq.f32.partialorder %v4844_v56, inf  ;;  %vm1913_vm8 = vcmp.eq.f32.partialorder %v4844_v56, 0.0  ;;  %2555 = vrsqrt.f32 %v4907_v30  ;;  %v1914_v25 = vand.u32 2147483648, %v4844_v56  ;;  %v6001_v57 = vld [vmem:[#allocation95_spill] sm:$0xff] }
 0x168   :  { %v2550_v27 = vpop.eup %2549  ;;  %v1905_v54 = vsel %vm1904_vm6, %v4837_v60, %v1903_v1  ;;  %v1910_v16 = vmul.f32 %v2548_v52, %v4844_v56  ;;  %vm1918_vm15 = vcmp.eq.f32.partialorder %v4851_v14, inf  ;;  %vm1920_vm10 = vcmp.eq.f32.partialorder %v4851_v14, 0.0 }
 0x169   :  { %v1908_v55 = vsel %vm1906_vm5, %v1907_v53, %v1905_v54  ;;  %v1917_v11 = vmul.f32 %v2550_v27, %v4851_v14  ;;  %v4932_v7 = vadd.f32 %v1338_v47, %v5994_v12  ;;  %v1921_v51 = vand.u32 2147483648, %v4851_v14  ;;  %v6000_v47 = vld [vmem:[#allocation49_spill] sm:$0xff] }
 0x16a   :  { %v1912_v19 = vsel %vm1911_vm4, %v4844_v56, %v1910_v16  ;;  %2358 = vst [vmem:[#allocation2 + $0x1c8] sm:$0xff] %v1908_v55  ;;  %v4937_v62 = vadd.f32 %v1339_v48, %v3935_v28  ;;  %v4940_v10 = vadd.f32 %v1340_v31, %v3937_v45  ;;  %vm1883_vm9 = vcmp.eq.f32.partialorder %v4898_v36, inf  ;;  %v5995_v28 = vld [vmem:[#allocation32_spill] sm:$0xff] }
 0x16b   :  { %v1915_v60 = vsel %vm1913_vm8, %v1914_v25, %v1912_v19  ;;  %v1919_v38 = vsel %vm1918_vm15, %v4851_v14, %v1917_v11  ;;  %2557 = vrsqrt.f32 %v4932_v7  ;;  %vm1885_vm11 = vcmp.eq.f32.partialorder %v4898_v36, 0.0  ;;  %v975_v14 = vpop.permute.xlu1 %974 }
 0x16c   :  { %v1922_v63 = vsel %vm1920_vm10, %v1921_v51, %v1919_v38  ;;  %2359 = vst [vmem:[#allocation2 + $0x1d0] sm:$0xff] %v1915_v60  ;;  %2559 = vrsqrt.f32 %v4937_v62  ;;  %vm5996_vm12 = vcmp.ge.s32.totalorder %v5919_v8, %v5995_v28  ;;  %v1886_v56 = vand.u32 2147483648, %v4898_v36  ;;  %v6002_v28 = vld [vmem:[#allocation96_spill] sm:$0xff] }
 0x16d   :  { %v424_v45 = vsel %vm5996_vm12, %v3506_v6, %v4041_v37  ;;  %2360 = vst [vmem:[#allocation2 + $0x1d8] sm:$0xff] %v1922_v63  ;;  %vm1890_vm14 = vcmp.eq.f32.partialorder %v4904_v18, inf  ;;  %vm1892_vm13 = vcmp.eq.f32.partialorder %v4904_v18, 0.0  ;;  %2561 = vrsqrt.f32 %v4940_v10 }
 0x16e   :  { %v1893_v23 = vand.u32 2147483648, %v4904_v18  ;;  %vm1897_vm7 = vcmp.eq.f32.partialorder %v4907_v30, inf  ;;  %vm1899_vm6 = vcmp.eq.f32.partialorder %v4907_v30, 0.0  ;;  %v1107_v50 = vsub.f32 %v960_v39, %v3430_v20 }
 0x16f   :  { %v2552_v32 = vpop.eup %2551  ;;  %v1900_v15 = vand.u32 2147483648, %v4907_v30  ;;  %v1108_v46 = vsub.f32 %v960_v39, %v424_v45  ;;  %v1109_v24 = vsub.f32 %v960_v39, %v3503_v33  ;;  %vm5998_vm5 = vcmp.ge.s32.totalorder %v5919_v8, %v5997_v9  ;;  %v985_v9 = vpop.permute.xlu1 %984 }
 0x170   :  { %v433_v0 = vsel %vm5998_vm5, %v3506_v6, %v4041_v37  ;;  %v2554_v44 = vpop.eup %2553  ;;  %v1882_v3 = vmul.f32 %v2552_v32, %v4898_v36  ;;  %vm1946_vm4 = vcmp.eq.f32.partialorder %v4932_v7, inf  ;;  %v1335_v61 = vmul.f32 %v1107_v50, %v1107_v50  ;;  %v6004_v32 = vld [vmem:[#allocation98_spill] sm:$0xff] }
 0x171   :  { %v1116_v35 = vsub.f32 %v975_v14, %v3430_v20  ;;  %v2556_v43 = vpop.eup %2555  ;;  %v1889_v41 = vmul.f32 %v2554_v44, %v4904_v18  ;;  %v1336_v58 = vmul.f32 %v1108_v46, %v1108_v46  ;;  %v1337_v26 = vmul.f32 %v1109_v24, %v1109_v24 }
 0x172   :  { %v1117_v5 = vsub.f32 %v975_v14, %v433_v0  ;;  %v1884_v21 = vsel %vm1883_vm9, %v4898_v36, %v1882_v3  ;;  %v1896_v13 = vmul.f32 %v2556_v43, %v4907_v30  ;;  %vm1948_vm8 = vcmp.eq.f32.partialorder %v4932_v7, 0.0 }
 0x173   :  { %v4979_v59 = vadd.f32 %v1335_v61, %v5999_v49  ;;  %v1887_v29 = vsel %vm1885_vm11, %v1886_v56, %v1884_v21  ;;  %v1891_v34 = vsel %vm1890_vm14, %v4904_v18, %v1889_v41  ;;  %v4987_v31 = vadd.f32 %v1336_v58, %v6000_v47  ;;  %v6003_v56 = vld [vmem:[#allocation97_spill] sm:$0xff] }
 0x174   :  { %v4990_v1 = vadd.f32 %v1337_v26, %v6001_v57  ;;  %v1894_v48 = vsel %vm1892_vm13, %v1893_v23, %v1891_v34  ;;  %v1898_v52 = vsel %vm1897_vm7, %v4907_v30, %v1896_v13  ;;  %2355 = vst [vmem:[#allocation2 + $0x1b0] sm:$0xff] %v1887_v29  ;;  %v1118_v36 = vsub.f32 %v975_v14, %v3503_v33 }
 0x175   :  { %2563 = vrsqrt.f32 %v4979_v59  ;;  %v2558_v53 = vpop.eup %2557  ;;  %v1901_v27 = vsel %vm1899_vm6, %v1900_v15, %v1898_v52  ;;  %2356 = vst [vmem:[#allocation2 + $0x1b8] sm:$0xff] %v1894_v48  ;;  %v1344_v54 = vmul.f32 %v1116_v35, %v1116_v35  ;;  %v1345_v16 = vmul.f32 %v1117_v5, %v1117_v5 }
 0x176   :  { %2565 = vrsqrt.f32 %v4987_v31  ;;  %v2560_v18 = vpop.eup %2559  ;;  %2357 = vst [vmem:[#allocation2 + $0x1c0] sm:$0xff] %v1901_v27  ;;  %v1945_v25 = vmul.f32 %v2558_v53, %v4932_v7  ;;  %v1949_v55 = vand.u32 2147483648, %v4932_v7  ;;  %vm1953_vm15 = vcmp.eq.f32.partialorder %v4937_v62, inf }
 0x177   :  { %vm1955_vm10 = vcmp.eq.f32.partialorder %v4937_v62, 0.0  ;;  %v2562_v11 = vpop.eup %2561  ;;  %v1952_v12 = vmul.f32 %v2560_v18, %v4937_v62  ;;  %v1956_v30 = vand.u32 2147483648, %v4937_v62  ;;  %vm1960_vm9 = vcmp.eq.f32.partialorder %v4940_v10, inf }
 0x178   :  { %2567 = vrsqrt.f32 %v4990_v1  ;;  %v1947_v19 = vsel %vm1946_vm4, %v4932_v7, %v1945_v25  ;;  %v1959_v51 = vmul.f32 %v2562_v11, %v4940_v10  ;;  %v1963_v60 = vand.u32 2147483648, %v4940_v10  ;;  %v970_v7 = vpop.permute.xlu0 %969  ;;  %v6008_v25 = vld [vmem:[#allocation50_spill] sm:$0xff] }
 0x179   :  { %v1346_v38 = vmul.f32 %v1118_v36, %v1118_v36  ;;  %v1950_v39 = vsel %vm1948_vm8, %v1949_v55, %v1947_v19  ;;  %v1954_v63 = vsel %vm1953_vm15, %v4937_v62, %v1952_v12  ;;  %v5019_v45 = vadd.f32 %v1344_v54, %v6002_v28  ;;  %v6007_v54 = vld [vmem:[#allocation99_spill] sm:$0xff] }
 0x17a   :  { %v5022_v14 = vadd.f32 %v1345_v16, %v6003_v56  ;;  %v1957_v23 = vsel %vm1955_vm10, %v1956_v30, %v1954_v63  ;;  %v1961_v50 = vsel %vm1960_vm9, %v4940_v10, %v1959_v51  ;;  %vm1962_vm11 = vcmp.eq.f32.partialorder %v4940_v10, 0.0  ;;  %2364 = vst [vmem:[#allocation2 + $0x1f8] sm:$0xff] %v1950_v39 }
 0x17b   :  { %v5027_v15 = vadd.f32 %v1346_v38, %v6004_v32  ;;  %v1964_v46 = vsel %vm1962_vm11, %v1963_v60, %v1961_v50  ;;  %2365 = vst [vmem:[#allocation2 + $0x200] sm:$0xff] %v1957_v23  ;;  %vm1925_vm12 = vcmp.eq.f32.partialorder %v4979_v59, inf  ;;  %2569 = vrsqrt.f32 %v5019_v45  ;;  %v6010_v32 = vld [vmem:[#allocation101_spill] sm:$0xff] }
 0x17c   :  { %v430_v24 = vsel %vm134_vm3, %v3506_v6, %v4041_v37  ;;  %2366 = vst [vmem:[#allocation2 + $0x208] sm:$0xff] %v1964_v46  ;;  %vm1927_vm14 = vcmp.eq.f32.partialorder %v4979_v59, 0.0  ;;  %v1928_v10 = vand.u32 2147483648, %v4979_v59  ;;  %vm1932_vm13 = vcmp.eq.f32.partialorder %v4987_v31, inf }
 0x17d   :  { %2571 = vrsqrt.f32 %v5022_v14  ;;  %vm1934_vm7 = vcmp.eq.f32.partialorder %v4987_v31, 0.0  ;;  %v1935_v0 = vand.u32 2147483648, %v4987_v31  ;;  %vm1939_vm6 = vcmp.eq.f32.partialorder %v4990_v1, inf }
 0x17e   :  { %2573 = vrsqrt.f32 %v5027_v15  ;;  %vm1941_vm3 = vcmp.eq.f32.partialorder %v4990_v1, 0.0  ;;  %v1113_v3 = vsub.f32 %v970_v7, %v3430_v20  ;;  %v1114_v61 = vsub.f32 %v970_v7, %v430_v24 }
 0x17f   :  { %v2564_v44 = vpop.eup %2563  ;;  %v1115_v35 = vsub.f32 %v970_v7, %v3503_v33  ;;  %v1942_v58 = vand.u32 2147483648, %v4990_v1  ;;  %v439_v5 = vsel %vm143_vm0, %v3506_v6, %v4041_v37  ;;  %v1122_v21 = vsub.f32 %v985_v9, %v3430_v20  ;;  %v6011_v7 = vld [vmem:[#allocation10_spill] sm:$0xff] }
 0x180   :  { %v2566_v43 = vpop.eup %2565  ;;  %v1924_v41 = vmul.f32 %v2564_v44, %v4979_v59  ;;  %v1341_v49 = vmul.f32 %v1113_v3, %v1113_v3  ;;  %v1342_v29 = vmul.f32 %v1114_v61, %v1114_v61  ;;  %vm1988_vm5 = vcmp.eq.f32.partialorder %v5019_v45, inf }
 0x181   :  { %v1931_v13 = vmul.f32 %v2566_v43, %v4987_v31  ;;  %v1343_v34 = vmul.f32 %v1115_v35, %v1115_v35  ;;  %v1123_v48 = vsub.f32 %v985_v9, %v439_v5  ;;  %v1124_v52 = vsub.f32 %v985_v9, %v3503_v33  ;;  %v980_v35 = vpop.permute.xlu0 %979 }
 0x182   :  { %v2568_v47 = vpop.eup %2567  ;;  %v1926_v57 = vsel %vm1925_vm12, %v4979_v59, %v1924_v41  ;;  %v5068_v16 = vadd.f32 %v1341_v49, %v6007_v54  ;;  %vm1990_vm0 = vcmp.eq.f32.partialorder %v5019_v45, 0.0  ;;  %v5074_v55 = vadd.f32 %v1342_v29, %v6008_v25  ;;  %v6009_v59 = vld [vmem:[#allocation100_spill] sm:$0xff]  ;;  %v995_v41 = vpop.permute.xlu1 %994 }
 0x183   :  { %v1929_v36 = vsel %vm1927_vm14, %v1928_v10, %v1926_v57  ;;  %v1933_v53 = vsel %vm1932_vm13, %v4987_v31, %v1931_v13  ;;  %v1938_v27 = vmul.f32 %v2568_v47, %v4990_v1  ;;  %v5077_v11 = vadd.f32 %v1343_v34, %v6009_v59 }
 0x184   :  { %v1936_v18 = vsel %vm1934_vm7, %v1935_v0, %v1933_v53  ;;  %2361 = vst [vmem:[#allocation2 + $0x1e0] sm:$0xff] %v1929_v36  ;;  %2575 = vrsqrt.f32 %v5068_v16  ;;  %v1350_v30 = vmul.f32 %v1122_v21, %v1122_v21  ;;  %v1351_v19 = vmul.f32 %v1123_v48, %v1123_v48  ;;  %v6012_v0 = vld [vmem:[#allocation102_spill] sm:$0xff] }
 0x185   :  { %v1940_v12 = vsel %vm1939_vm6, %v4990_v1, %v1938_v27  ;;  %2362 = vst [vmem:[#allocation2 + $0x1e8] sm:$0xff] %v1936_v18  ;;  %v2570_v31 = vpop.eup %2569  ;;  %v1991_v60 = vand.u32 2147483648, %v5019_v45  ;;  %2577 = vrsqrt.f32 %v5074_v55  ;;  %v1352_v38 = vmul.f32 %v1124_v52, %v1124_v52 }
 0x186   :  { %v1943_v51 = vsel %vm1941_vm3, %v1942_v58, %v1940_v12  ;;  %v1987_v63 = vmul.f32 %v2570_v31, %v5019_v45  ;;  %vm1995_vm4 = vcmp.eq.f32.partialorder %v5022_v14, inf  ;;  %vm1997_vm8 = vcmp.eq.f32.partialorder %v5022_v14, 0.0  ;;  %v6015_v12 = vld [vmem:[#allocation103_spill] sm:$0xff] }
 0x187   :  { %v2572_v39 = vpop.eup %2571  ;;  %2363 = vst [vmem:[#allocation2 + $0x1f0] sm:$0xff] %v1943_v51  ;;  %2579 = vrsqrt.f32 %v5077_v11  ;;  %v1998_v1 = vand.u32 2147483648, %v5022_v14  ;;  %vm2002_vm15 = vcmp.eq.f32.partialorder %v5027_v15, inf  ;;  %vm2004_vm10 = vcmp.eq.f32.partialorder %v5027_v15, 0.0 }
 0x188   :  { %v2574_v28 = vpop.eup %2573  ;;  %v1994_v56 = vmul.f32 %v2572_v39, %v5022_v14  ;;  %v1989_v23 = vsel %vm1988_vm5, %v5019_v45, %v1987_v63  ;;  %v5100_v46 = vadd.f32 %v1350_v30, %v6010_v32  ;;  %v5103_v62 = vadd.f32 %v1351_v19, %v6011_v7 }
 0x189   :  { %v2001_v50 = vmul.f32 %v2574_v28, %v5027_v15  ;;  %v1992_v24 = vsel %vm1990_vm0, %v1991_v60, %v1989_v23  ;;  %v2005_v9 = vand.u32 2147483648, %v5027_v15  ;;  %v5110_v44 = vadd.f32 %v1352_v38, %v6012_v0  ;;  %v6016_v60 = vld [vmem:[#allocation104_spill] sm:$0xff] }
 0x18a   :  { %v1996_v10 = vsel %vm1995_vm4, %v5022_v14, %v1994_v56  ;;  %2370 = vst [vmem:[#allocation2 + $0x228] sm:$0xff] %v1992_v24  ;;  %vm1967_vm9 = vcmp.eq.f32.partialorder %v5068_v16, inf  ;;  %2581 = vrsqrt.f32 %v5100_v46  ;;  %vm1969_vm11 = vcmp.eq.f32.partialorder %v5068_v16, 0.0 }
 0x18b   :  { %v1999_v3 = vsel %vm1997_vm8, %v1998_v1, %v1996_v10  ;;  %v2003_v61 = vsel %vm2002_vm15, %v5027_v15, %v2001_v50  ;;  %2583 = vrsqrt.f32 %v5103_v62  ;;  %v436_v14 = vsel %vm140_vm1, %v3506_v6, %v4041_v37 }
 0x18c   :  { %v2006_v43 = vsel %vm2004_vm10, %v2005_v9, %v2003_v61  ;;  %2371 = vst [vmem:[#allocation2 + $0x230] sm:$0xff] %v1999_v3  ;;  %v1970_v15 = vand.u32 2147483648, %v5068_v16  ;;  %vm1974_vm12 = vcmp.eq.f32.partialorder %v5074_v55, inf  ;;  %vm1976_vm14 = vcmp.eq.f32.partialorder %v5074_v55, 0.0 }
 0x18d   :  { %2372 = vst [vmem:[#allocation2 + $0x238] sm:$0xff] %v2006_v43  ;;  %2585 = vrsqrt.f32 %v5110_v44  ;;  %v1977_v58 = vand.u32 2147483648, %v5074_v55  ;;  %vm1981_vm13 = vcmp.eq.f32.partialorder %v5077_v11, inf  ;;  %vm1983_vm7 = vcmp.eq.f32.partialorder %v5077_v11, 0.0 }
 0x18e   :  { %v1119_v26 = vsub.f32 %v980_v35, %v3430_v20  ;;  %v2576_v5 = vpop.eup %2575  ;;  %v1984_v21 = vand.u32 2147483648, %v5077_v11  ;;  %v1120_v13 = vsub.f32 %v980_v35, %v436_v14  ;;  %v1121_v49 = vsub.f32 %v980_v35, %v3503_v33  ;;  %v6017_v35 = vld [vmem:[#allocation16_spill] sm:$0xff] }
 0x18f   :  { %v445_v34 = vsel %vm149_vm2, %v3506_v6, %v4041_v37  ;;  %v2578_v47 = vpop.eup %2577  ;;  %v1966_v57 = vmul.f32 %v2576_v5, %v5068_v16  ;;  %vm2030_vm1 = vcmp.eq.f32.partialorder %v5100_v46, inf  ;;  %v1128_v52 = vsub.f32 %v995_v41, %v3430_v20  ;;  %v1005_v5 = vpop.permute.xlu1 %1004 }
 0x190   :  { %v1347_v48 = vmul.f32 %v1119_v26, %v1119_v26  ;;  %v1973_v53 = vmul.f32 %v2578_v47, %v5074_v55  ;;  %v1348_v27 = vmul.f32 %v1120_v13, %v1120_v13  ;;  %v1349_v54 = vmul.f32 %v1121_v49, %v1121_v49 }
 0x191   :  { %v2580_v36 = vpop.eup %2579  ;;  %v1129_v18 = vsub.f32 %v995_v41, %v445_v34  ;;  %v1968_v25 = vsel %vm1967_vm9, %v5068_v16, %v1966_v57  ;;  %vm2032_vm2 = vcmp.eq.f32.partialorder %v5100_v46, 0.0  ;;  %v1130_v16 = vsub.f32 %v995_v41, %v3503_v33  ;;  %v6018_v41 = vld [vmem:[#allocation17_spill] sm:$0xff] }
 0x192   :  { %v1980_v59 = vmul.f32 %v2580_v36, %v5077_v11  ;;  %v5147_v30 = vadd.f32 %v1347_v48, %v6015_v12  ;;  %v1971_v19 = vsel %vm1969_vm11, %v1970_v15, %v1968_v25  ;;  %v1975_v31 = vsel %vm1974_vm12, %v5074_v55, %v1973_v53 }
 0x193   :  { %v5155_v51 = vadd.f32 %v1348_v27, %v3995_v2  ;;  %v5158_v38 = vadd.f32 %v1349_v54, %v6016_v60  ;;  %v1978_v39 = vsel %vm1976_vm14, %v1977_v58, %v1975_v31  ;;  %2367 = vst [vmem:[#allocation2 + $0x210] sm:$0xff] %v1971_v19  ;;  %v1356_v56 = vmul.f32 %v1128_v52, %v1128_v52  ;;  %v6021_v52 = vld [vmem:[#allocation39_spill] sm:$0xff] }
 0x194   :  { %v1982_v63 = vsel %vm1981_vm13, %v5077_v11, %v1980_v59  ;;  %2587 = vrsqrt.f32 %v5147_v30  ;;  %v2582_v28 = vpop.eup %2581  ;;  %2368 = vst [vmem:[#allocation2 + $0x218] sm:$0xff] %v1978_v39  ;;  %v1357_v1 = vmul.f32 %v1129_v18, %v1129_v18  ;;  %v2033_v50 = vand.u32 2147483648, %v5100_v46 }
 0x195   :  { %v1985_v2 = vsel %vm1983_vm7, %v1984_v21, %v1982_v63  ;;  %2589 = vrsqrt.f32 %v5155_v51  ;;  %v2584_v55 = vpop.eup %2583  ;;  %v2029_v23 = vmul.f32 %v2582_v28, %v5100_v46  ;;  %vm2037_vm6 = vcmp.eq.f32.partialorder %v5103_v62, inf }
 0x196   :  { %2369 = vst [vmem:[#allocation2 + $0x220] sm:$0xff] %v1985_v2  ;;  %vm2039_vm3 = vcmp.eq.f32.partialorder %v5103_v62, 0.0  ;;  %v2036_v7 = vmul.f32 %v2584_v55, %v5103_v62  ;;  %v2040_v11 = vand.u32 2147483648, %v5103_v62  ;;  %vm2044_vm5 = vcmp.eq.f32.partialorder %v5110_v44, inf }
 0x197   :  { %v2586_v32 = vpop.eup %2585  ;;  %2591 = vrsqrt.f32 %v5158_v38  ;;  %v2031_v24 = vsel %vm2030_vm1, %v5100_v46, %v2029_v23  ;;  %v2047_v9 = vand.u32 2147483648, %v5110_v44  ;;  %v1358_v0 = vmul.f32 %v1130_v16, %v1130_v16  ;;  %v990_v46 = vpop.permute.xlu0 %989  ;;  %v6023_v16 = vld [vmem:[#allocation11_spill] sm:$0xff] }
 0x198   :  { %v2043_v10 = vmul.f32 %v2586_v32, %v5110_v44  ;;  %v2034_v3 = vsel %vm2032_vm2, %v2033_v50, %v2031_v24  ;;  %v2038_v61 = vsel %vm2037_vm6, %v5103_v62, %v2036_v7  ;;  %v5187_v43 = vadd.f32 %v1356_v56, %v6017_v35  ;;  %v6024_v56 = vld [vmem:[#allocation105_spill] sm:$0xff] }
 0x199   :  { %v5190_v45 = vadd.f32 %v1357_v1, %v4011_v4  ;;  %v2041_v14 = vsel %vm2039_vm3, %v2040_v11, %v2038_v61  ;;  %vm2046_vm0 = vcmp.eq.f32.partialorder %v5110_v44, 0.0  ;;  %2376 = vst [vmem:[#allocation2 + $0x258] sm:$0xff] %v2034_v3  ;;  %v5195_v58 = vadd.f32 %v1358_v0, %v6018_v41  ;;  %v6019_v4 = vld [vmem:[#allocation38_spill] sm:$0xff]  ;;  %v6027_v41 = vld [vmem:[#allocation108_spill] sm:$0xff] }
 0x19a   :  { %v2045_v15 = vsel %vm2044_vm5, %v5110_v44, %v2043_v10  ;;  %2377 = vst [vmem:[#allocation2 + $0x260] sm:$0xff] %v2041_v14  ;;  %vm2009_vm4 = vcmp.eq.f32.partialorder %v5147_v30, inf  ;;  %2593 = vrsqrt.f32 %v5187_v43  ;;  %vm6020_vm8 = vcmp.ge.s32.totalorder %v5919_v8, %v6019_v4  ;;  %v6026_v14 = vld [vmem:[#allocation107_spill] sm:$0xff] }
 0x19b   :  { %v2048_v26 = vsel %vm2046_vm0, %v2047_v9, %v2045_v15  ;;  %v442_v62 = vsel %vm6020_vm8, %v3506_v6, %v4041_v37  ;;  %vm2011_vm15 = vcmp.eq.f32.partialorder %v5147_v30, 0.0  ;;  %v2012_v44 = vand.u32 2147483648, %v5147_v30 }
 0x19c   :  { %2378 = vst [vmem:[#allocation2 + $0x268] sm:$0xff] %v2048_v26  ;;  %vm2016_vm10 = vcmp.eq.f32.partialorder %v5155_v51, inf  ;;  %2595 = vrsqrt.f32 %v5190_v45  ;;  %vm2018_vm9 = vcmp.eq.f32.partialorder %v5155_v51, 0.0  ;;  %v2019_v21 = vand.u32 2147483648, %v5155_v51 }
 0x19d   :  { %vm2023_vm11 = vcmp.eq.f32.partialorder %v5158_v38, inf  ;;  %2597 = vrsqrt.f32 %v5195_v58  ;;  %vm2025_vm12 = vcmp.eq.f32.partialorder %v5158_v38, 0.0  ;;  %v1125_v49 = vsub.f32 %v990_v46, %v3430_v20 }
 0x19e   :  { %v2588_v13 = vpop.eup %2587  ;;  %v1126_v29 = vsub.f32 %v990_v46, %v442_v62  ;;  %v1127_v34 = vsub.f32 %v990_v46, %v3503_v33  ;;  %v2026_v48 = vand.u32 2147483648, %v5158_v38  ;;  %vm6022_vm14 = vcmp.ge.s32.totalorder %v5919_v8, %v6021_v52 }
 0x19f   :  { %v2590_v47 = vpop.eup %2589  ;;  %v2008_v57 = vmul.f32 %v2588_v13, %v5147_v30  ;;  %v451_v36 = vsel %vm6022_vm14, %v3506_v6, %v4041_v37  ;;  %v1134_v53 = vsub.f32 %v1005_v5, %v3430_v20  ;;  %v1353_v54 = vmul.f32 %v1125_v49, %v1125_v49  ;;  %v1000_v49 = vpop.permute.xlu0 %999 }
 0x1a0   :  { %v2015_v27 = vmul.f32 %v2590_v47, %v5155_v51  ;;  %v1354_v18 = vmul.f32 %v1126_v29, %v1126_v29  ;;  %v1355_v25 = vmul.f32 %v1127_v34, %v1127_v34  ;;  %vm2072_vm13 = vcmp.eq.f32.partialorder %v5187_v43, inf  ;;  %v1015_v34 = vpop.permute.xlu1 %1014 }
 0x1a1   :  { %v2592_v59 = vpop.eup %2591  ;;  %v2010_v12 = vsel %vm2009_vm4, %v5147_v30, %v2008_v57  ;;  %v1135_v19 = vsub.f32 %v1005_v5, %v451_v36  ;;  %v1136_v31 = vsub.f32 %v1005_v5, %v3503_v33  ;;  %v5236_v28 = vadd.f32 %v1353_v54, %v6023_v16  ;;  %v6025_v30 = vld [vmem:[#allocation106_spill] sm:$0xff] }
 0x1a2   :  { %v2013_v60 = vsel %vm2011_vm15, %v2012_v44, %v2010_v12  ;;  %v2017_v39 = vsel %vm2016_vm10, %v5155_v51, %v2015_v27  ;;  %v2022_v63 = vmul.f32 %v2592_v59, %v5158_v38  ;;  %vm2074_vm7 = vcmp.eq.f32.partialorder %v5187_v43, 0.0  ;;  %v6028_v44 = vld [vmem:[#allocation20_spill] sm:$0xff]  ;;  %v6031_v27 = vld [vmem:[#allocation41_spill] sm:$0xff] }
 0x1a3   :  { %v2020_v2 = vsel %vm2018_vm9, %v2019_v21, %v2017_v39  ;;  %2373 = vst [vmem:[#allocation2 + $0x240] sm:$0xff] %v2013_v60  ;;  %v5242_v1 = vadd.f32 %v1354_v18, %v6024_v56  ;;  %v5245_v55 = vadd.f32 %v1355_v25, %v6025_v30  ;;  %2599 = vrsqrt.f32 %v5236_v28  ;;  %v6033_v56 = vld [vmem:[#allocation21_spill] sm:$0xff] }
 0x1a4   :  { %v2024_v23 = vsel %vm2023_vm11, %v5158_v38, %v2022_v63  ;;  %2374 = vst [vmem:[#allocation2 + $0x248] sm:$0xff] %v2020_v2  ;;  %v1362_v50 = vmul.f32 %v1134_v53, %v1134_v53  ;;  %v1363_v32 = vmul.f32 %v1135_v19, %v1135_v19  ;;  %v2594_v51 = vpop.eup %2593  ;;  %v2075_v11 = vand.u32 2147483648, %v5187_v43 }
 0x1a5   :  { %v2027_v7 = vsel %vm2025_vm12, %v2026_v48, %v2024_v23  ;;  %2601 = vrsqrt.f32 %v5242_v1  ;;  %v1364_v24 = vmul.f32 %v1136_v31, %v1136_v31  ;;  %v2071_v9 = vmul.f32 %v2594_v51, %v5187_v43 }
 0x1a6   :  { %v2596_v10 = vpop.eup %2595  ;;  %2375 = vst [vmem:[#allocation2 + $0x250] sm:$0xff] %v2027_v7  ;;  %vm2079_vm1 = vcmp.eq.f32.partialorder %v5190_v45, inf  ;;  %vm2081_vm2 = vcmp.eq.f32.partialorder %v5190_v45, 0.0  ;;  %2603 = vrsqrt.f32 %v5245_v55  ;;  %v2082_v38 = vand.u32 2147483648, %v5190_v45  ;;  %v6035_v7 = vld [vmem:[#allocation109_spill] sm:$0xff] }
 0x1a7   :  { %v2598_v0 = vpop.eup %2597  ;;  %v2078_v3 = vmul.f32 %v2596_v10, %v5190_v45  ;;  %vm2086_vm6 = vcmp.eq.f32.partialorder %v5195_v58, inf  ;;  %vm2088_vm3 = vcmp.eq.f32.partialorder %v5195_v58, 0.0  ;;  %v2073_v61 = vsel %vm2072_vm13, %v5187_v43, %v2071_v9  ;;  %v6029_v43 = vld [vmem:[#allocation40_spill] sm:$0xff] }
 0x1a8   :  { %v2085_v35 = vmul.f32 %v2598_v0, %v5195_v58  ;;  %v5268_v15 = vadd.f32 %v1362_v50, %v6026_v14  ;;  %v5271_v26 = vadd.f32 %v1363_v32, %v6027_v41  ;;  %v2076_v46 = vsel %vm2074_vm7, %v2075_v11, %v2073_v61  ;;  %v6034_v32 = vld [vmem:[#allocation47_spill] sm:$0xff] }
 0x1a9   :  { %v2080_v4 = vsel %vm2079_vm1, %v5190_v45, %v2078_v3  ;;  %v2089_v62 = vand.u32 2147483648, %v5195_v58  ;;  %v5278_v5 = vadd.f32 %v1364_v24, %v6028_v44  ;;  %2382 = vst [vmem:[#allocation2 + $0x288] sm:$0xff] %v2076_v46  ;;  %vm2051_vm5 = vcmp.eq.f32.partialorder %v5236_v28, inf }
 0x1aa   :  { %v2083_v21 = vsel %vm2081_vm2, %v2082_v38, %v2080_v4  ;;  %v2087_v13 = vsel %vm2086_vm6, %v5195_v58, %v2085_v35  ;;  %2605 = vrsqrt.f32 %v5268_v15  ;;  %vm2053_vm0 = vcmp.eq.f32.partialorder %v5236_v28, 0.0 }
 0x1ab   :  { %v2090_v29 = vsel %vm2088_vm3, %v2089_v62, %v2087_v13  ;;  %2383 = vst [vmem:[#allocation2 + $0x290] sm:$0xff] %v2083_v21  ;;  %2607 = vrsqrt.f32 %v5271_v26  ;;  %vm6030_vm4 = vcmp.ge.s32.totalorder %v5919_v8, %v6029_v43  ;;  %v2054_v58 = vand.u32 2147483648, %v5236_v28 }
 0x1ac   :  { %v448_v45 = vsel %vm6030_vm4, %v3506_v6, %v4041_v37  ;;  %2384 = vst [vmem:[#allocation2 + $0x298] sm:$0xff] %v2090_v29  ;;  %vm2058_vm8 = vcmp.eq.f32.partialorder %v5242_v1, inf  ;;  %vm2060_vm15 = vcmp.eq.f32.partialorder %v5242_v1, 0.0  ;;  %2609 = vrsqrt.f32 %v5278_v5  ;;  %v6036_v29 = vld [vmem:[#allocation110_spill] sm:$0xff] }
 0x1ad   :  { %v2061_v47 = vand.u32 2147483648, %v5242_v1  ;;  %vm2065_vm10 = vcmp.eq.f32.partialorder %v5245_v55, inf  ;;  %vm2067_vm9 = vcmp.eq.f32.partialorder %v5245_v55, 0.0  ;;  %v1131_v57 = vsub.f32 %v1000_v49, %v3430_v20  ;;  %v2600_v48 = vpop.eup %2599 }
 0x1ae   :  { %v2068_v52 = vand.u32 2147483648, %v5245_v55  ;;  %v1132_v36 = vsub.f32 %v1000_v49, %v448_v45  ;;  %v1133_v53 = vsub.f32 %v1000_v49, %v3503_v33  ;;  %vm6032_vm11 = vcmp.ge.s32.totalorder %v5919_v8, %v6031_v27 }
 0x1af   :  { %v457_v54 = vsel %vm6032_vm11, %v3506_v6, %v4041_v37  ;;  %v2602_v18 = vpop.eup %2601  ;;  %v2050_v25 = vmul.f32 %v2600_v48, %v5236_v28  ;;  %vm2114_vm12 = vcmp.eq.f32.partialorder %v5268_v15, inf  ;;  %v1359_v59 = vmul.f32 %v1131_v57, %v1131_v57  ;;  %v1025_v48 = vpop.permute.xlu1 %1024 }
 0x1b0   :  { %v1140_v12 = vsub.f32 %v1015_v34, %v3430_v20  ;;  %v2604_v19 = vpop.eup %2603  ;;  %v2057_v31 = vmul.f32 %v2602_v18, %v5242_v1  ;;  %v1360_v60 = vmul.f32 %v1132_v36, %v1132_v36  ;;  %v1361_v39 = vmul.f32 %v1133_v53, %v1133_v53 }
 0x1b1   :  { %v1141_v63 = vsub.f32 %v1015_v34, %v457_v54  ;;  %v2052_v16 = vsel %vm2051_vm5, %v5236_v28, %v2050_v25  ;;  %v2064_v2 = vmul.f32 %v2604_v19, %v5245_v55  ;;  %vm2116_vm14 = vcmp.eq.f32.partialorder %v5268_v15, 0.0  ;;  %v2665_v25 = vld [vmem:[%s5690_s3] sm:$0x7]  ;;  %s2691_s3 = smov [#allocation2]  }
 0x1b2   :  { %v5315_v30 = vadd.f32 %v1359_v59, %v6033_v56  ;;  %v2055_v23 = vsel %vm2053_vm0, %v2054_v58, %v2052_v16  ;;  %v2059_v50 = vsel %vm2058_vm8, %v5242_v1, %v2057_v31  ;;  %v5323_v51 = vadd.f32 %v1360_v60, %v6034_v32  ;;  %v6040_v59 = vld [vmem:[#allocation12_spill] sm:$0xff]  ;;  %v6041_v56 = vld [vmem:[#allocation13_spill] sm:$0xff]  ;;  %s2420_s24 = sshll.u32 %s2691_s3, 4  ;;  %s2421_s24 = int_to_ptr.vmem [resolvable:$true] %s2420_s24 }
 0x1b3   :  { %v5326_v11 = vadd.f32 %v1361_v39, %v6035_v7  ;;  %v2062_v24 = vsel %vm2060_vm15, %v2061_v47, %v2059_v50  ;;  %v2066_v10 = vsel %vm2065_vm10, %v5245_v55, %v2064_v2  ;;  %2379 = vst [vmem:[#allocation2 + $0x270] sm:$0xff] %v2055_v23  ;;  %v1142_v28 = vsub.f32 %v1015_v34, %v3503_v33  ;;  %v6037_v34 = vld [vmem:[#allocation111_spill] sm:$0xff]  ;;  %v6042_v23 = vld [vmem:[#allocation14_spill] sm:$0xff]  ;;  %s2666_s0 = scalar_lea.vmem %s2421_s24, 14592  ;;  %p2671_p1 = scmp.lt.s32.totalorder %s2421_s24, %s2421_s24 }
 0x1b4   :  { %2611 = vrsqrt.f32 %v5315_v30  ;;  %v2606_v9 = vpop.eup %2605  ;;  %v2069_v0 = vsel %vm2067_vm9, %v2068_v52, %v2066_v10  ;;  %2380 = vst [vmem:[#allocation2 + $0x278] sm:$0xff] %v2062_v24  ;;  %v1368_v3 = vmul.f32 %v1140_v12, %v1140_v12  ;;  %v1369_v38 = vmul.f32 %v1141_v63, %v1141_v63  ;;  %p2667_p0 = scmp.ne.s32.totalorder %s2421_s24, %s2666_s0  ;;  %p2672_p2 = scmp.lt.s32.totalorder %s2666_s0, %s2666_s0 }
 0x1b5   :  { %2613 = vrsqrt.f32 %v5323_v51  ;;  %v2608_v1 = vpop.eup %2607  ;;  %2381 = vst [vmem:[#allocation2 + $0x280] sm:$0xff] %v2069_v0  ;;  %v2113_v61 = vmul.f32 %v2606_v9, %v5268_v15  ;;  %v2117_v35 = vand.u32 2147483648, %v5268_v15  ;;  %vm2121_vm13 = vcmp.eq.f32.partialorder %v5271_v26, inf }
 0x1b6   :  { %vm2123_vm7 = vcmp.eq.f32.partialorder %v5271_v26, 0.0  ;;  %v2610_v14 = vpop.eup %2609  ;;  %v2120_v41 = vmul.f32 %v2608_v1, %v5271_v26  ;;  %v2124_v55 = vand.u32 2147483648, %v5271_v26  ;;  %vm2128_vm1 = vcmp.eq.f32.partialorder %v5278_v5, inf  ;;  %p2673_p3 = por %p2672_p2, %p2671_p1 }
 0x1b7   :  { %2615 = vrsqrt.f32 %v5326_v11  ;;  %v2115_v46 = vsel %vm2114_vm12, %v5268_v15, %v2113_v61  ;;  %v2127_v4 = vmul.f32 %v2610_v14, %v5278_v5  ;;  %v2131_v62 = vand.u32 2147483648, %v5278_v5  ;;  %v6038_v15 = vld [vmem:[#allocation42_spill] sm:$0xff] }
 0x1b8   :  { %v1370_v44 = vmul.f32 %v1142_v28, %v1142_v28  ;;  %v2118_v21 = vsel %vm2116_vm14, %v2117_v35, %v2115_v46  ;;  %v2122_v13 = vsel %vm2121_vm13, %v5271_v26, %v2120_v41  ;;  %v5355_v49 = vadd.f32 %v1368_v3, %v4049_v22  ;;  %v1010_v22 = vpop.permute.xlu0 %1009  ;;  %v6044_v28 = vld [vmem:[#allocation24_spill] sm:$0xff]  ;;  %p2674_p4 = pnand %p2673_p3, %p2667_p0 }
 0x1b9   :  { %v5358_v43 = vadd.f32 %v1369_v38, %v6036_v29  ;;  %v2125_v45 = vsel %vm2123_vm7, %v2124_v55, %v2122_v13  ;;  %v2129_v58 = vsel %vm2128_vm1, %v5278_v5, %v2127_v4  ;;  %vm2130_vm2 = vcmp.eq.f32.partialorder %v5278_v5, 0.0  ;;  %2388 = vst [vmem:[#allocation2 + $0x2b8] sm:$0xff] %v2118_v21  ;;  %v6045_v3 = vld [vmem:[#allocation112_spill] sm:$0xff] }
 0x1ba   :  { %v5363_v47 = vadd.f32 %v1370_v44, %v6037_v34  ;;  %v2132_v57 = vsel %vm2130_vm2, %v2131_v62, %v2129_v58  ;;  %2389 = vst [vmem:[#allocation2 + $0x2c0] sm:$0xff] %v2125_v45  ;;  %vm2093_vm6 = vcmp.eq.f32.partialorder %v5315_v30, inf  ;;  %2617 = vrsqrt.f32 %v5355_v49  ;;  %v6047_v58 = vld [vmem:[#allocation114_spill] sm:$0xff] }
 0x1bb   :  { %vm6039_vm3 = vcmp.ge.s32.totalorder %v5919_v8, %v6038_v15  ;;  %2390 = vst [vmem:[#allocation2 + $0x2c8] sm:$0xff] %v2132_v57  ;;  %vm2095_vm5 = vcmp.eq.f32.partialorder %v5315_v30, 0.0  ;;  %v2096_v5 = vand.u32 2147483648, %v5315_v30  ;;  %vm2100_vm0 = vcmp.eq.f32.partialorder %v5323_v51, inf }
 0x1bc   :  { %v454_v26 = vsel %vm6039_vm3, %v3506_v6, %v4041_v37  ;;  %2619 = vrsqrt.f32 %v5358_v43  ;;  %vm2102_vm4 = vcmp.eq.f32.partialorder %v5323_v51, 0.0  ;;  %v2103_v52 = vand.u32 2147483648, %v5323_v51 }
 0x1bd   :  { %vm2107_vm8 = vcmp.eq.f32.partialorder %v5326_v11, inf  ;;  %2621 = vrsqrt.f32 %v5363_v47  ;;  %vm2109_vm15 = vcmp.eq.f32.partialorder %v5326_v11, 0.0  ;;  %v1137_v6 = vsub.f32 %v1010_v22, %v3430_v20 }
 0x1be   :  { %v2612_v8 = vpop.eup %2611  ;;  %v1138_v36 = vsub.f32 %v1010_v22, %v454_v26  ;;  %v1139_v53 = vsub.f32 %v1010_v22, %v3503_v33  ;;  %v2110_v18 = vand.u32 2147483648, %v5326_v11  ;;  %v5389_v12 = vrot.slane %v2665_v25, %v6040_v59  ;;  %v6048_v26 = vld [vmem:[#allocation115_spill] sm:$0xff] }
 0x1bf   :  { %v2614_v27 = vpop.eup %2613  ;;  %v2092_v54 = vmul.f32 %v2612_v8, %v5315_v30  ;;  %v1146_v19 = vsub.f32 %v1025_v48, %v3430_v20  ;;  %v1365_v60 = vmul.f32 %v1137_v6, %v1137_v6  ;;  %vm2156_vm10 = vcmp.eq.f32.partialorder %v5355_v49, inf  ;;  %v6049_v8 = vld [vmem:[#allocation26_spill] sm:$0xff] }
 0x1c0   :  { %v2099_v31 = vmul.f32 %v2614_v27, %v5323_v51  ;;  %v1366_v39 = vmul.f32 %v1138_v36, %v1138_v36  ;;  %v1367_v63 = vmul.f32 %v1139_v53, %v1139_v53  ;;  %vm6043_vm9 = vcmp.ge.s32.totalorder %v6041_v56, %v6042_v23  ;;  %v1035_v27 = vpop.permute.xlu1 %1034 }
 0x1c1   :  { %v2616_v16 = vpop.eup %2615  ;;  %v2094_v2 = vsel %vm2093_vm6, %v5315_v30, %v2092_v54  ;;  %v464_v50 = vsel %vm6043_vm9, %v3503_v33, %v5389_v12  ;;  %v1147_v32 = vsub.f32 %v1025_v48, %v4041_v37  ;;  %v5410_v9 = vadd.f32 %v1365_v60, %v6044_v28  ;;  %v6046_v30 = vld [vmem:[#allocation113_spill] sm:$0xff] }
 0x1c2   :  { %v2097_v7 = vsel %vm2095_vm5, %v2096_v5, %v2094_v2  ;;  %v2101_v24 = vsel %vm2100_vm0, %v5323_v51, %v2099_v31  ;;  %v2106_v10 = vmul.f32 %v2616_v16, %v5326_v11  ;;  %vm2158_vm11 = vcmp.eq.f32.partialorder %v5355_v49, 0.0  ;;  %v6052_v31 = vld [vmem:[#allocation18_spill] sm:$0xff] }
 0x1c3   :  { %v2104_v0 = vsel %vm2102_vm4, %v2103_v52, %v2101_v24  ;;  %2385 = vst [vmem:[#allocation2 + $0x2a0] sm:$0xff] %v2097_v7  ;;  %v5416_v38 = vadd.f32 %v1366_v39, %v6045_v3  ;;  %v5419_v1 = vadd.f32 %v1367_v63, %v6046_v30  ;;  %2623 = vrsqrt.f32 %v5410_v9 }
 0x1c4   :  { %v2108_v61 = vsel %vm2107_vm8, %v5326_v11, %v2106_v10  ;;  %2386 = vst [vmem:[#allocation2 + $0x2a8] sm:$0xff] %v2104_v0  ;;  %v1148_v35 = vsub.f32 %v1025_v48, %v464_v50  ;;  %v1374_v14 = vmul.f32 %v1146_v19, %v1146_v19  ;;  %v2618_v51 = vpop.eup %2617  ;;  %v2159_v55 = vand.u32 2147483648, %v5355_v49 }
 0x1c5   :  { %v2111_v41 = vsel %vm2109_vm15, %v2110_v18, %v2108_v61  ;;  %2625 = vrsqrt.f32 %v5416_v38  ;;  %v1375_v46 = vmul.f32 %v1147_v32, %v1147_v32  ;;  %v2155_v62 = vmul.f32 %v2618_v51, %v5355_v49  ;;  %v6055_v51 = vld [vmem:[#allocation28_spill] sm:$0xff] }
 0x1c6   :  { %v2620_v4 = vpop.eup %2619  ;;  %2387 = vst [vmem:[#allocation2 + $0x2b0] sm:$0xff] %v2111_v41  ;;  %vm2163_vm12 = vcmp.eq.f32.partialorder %v5358_v43, inf  ;;  %vm2165_vm14 = vcmp.eq.f32.partialorder %v5358_v43, 0.0  ;;  %2627 = vrsqrt.f32 %v5419_v1  ;;  %v2166_v11 = vand.u32 2147483648, %v5358_v43 }
 0x1c7   :  { %v2622_v44 = vpop.eup %2621  ;;  %v2162_v21 = vmul.f32 %v2620_v4, %v5358_v43  ;;  %vm2170_vm13 = vcmp.eq.f32.partialorder %v5363_v47, inf  ;;  %vm2172_vm7 = vcmp.eq.f32.partialorder %v5363_v47, 0.0  ;;  %v2157_v13 = vsel %vm2156_vm10, %v5355_v49, %v2155_v62  ;;  %v1020_v49 = vpop.permute.xlu0 %1019 }
 0x1c8   :  { %v2169_v29 = vmul.f32 %v2622_v44, %v5363_v47  ;;  %v1376_v45 = vmul.f32 %v1148_v35, %v1148_v35  ;;  %v5442_v34 = vadd.f32 %v1374_v14, %v6047_v58  ;;  %v2160_v57 = vsel %vm2158_vm11, %v2159_v55, %v2157_v13  ;;  %v6054_v35 = vld [vmem:[#allocation27_spill] sm:$0xff] }
 0x1c9   :  { %v2164_v22 = vsel %vm2163_vm12, %v5358_v43, %v2162_v21  ;;  %v2173_v15 = vand.u32 2147483648, %v5363_v47  ;;  %v5449_v5 = vadd.f32 %v1375_v46, %v6048_v26  ;;  %2394 = vst [vmem:[#allocation2 + $0x2e8] sm:$0xff] %v2160_v57  ;;  %vm2135_vm1 = vcmp.eq.f32.partialorder %v5410_v9, inf  ;;  %v6050_v43 = vld [vmem:[#allocation15_spill] sm:$0xff] }
 0x1ca   :  { %v2167_v48 = vsel %vm2165_vm14, %v2166_v11, %v2164_v22  ;;  %v2171_v52 = vsel %vm2170_vm13, %v5363_v47, %v2169_v29  ;;  %v5453_v6 = vadd.f32 %v1376_v45, %v6049_v8  ;;  %2629 = vrsqrt.f32 %v5442_v34 }
 0x1cb   :  { %v2174_v36 = vsel %vm2172_vm7, %v2173_v15, %v2171_v52  ;;  %2395 = vst [vmem:[#allocation2 + $0x2f0] sm:$0xff] %v2167_v48  ;;  %vm2137_vm2 = vcmp.eq.f32.partialorder %v5410_v9, 0.0  ;;  %vm6051_vm6 = vcmp.ge.s32.totalorder %v6041_v56, %v6050_v43  ;;  %v2138_v47 = vand.u32 2147483648, %v5410_v9  ;;  %v1030_v57 = vpop.permute.xlu0 %1029 }
 0x1cc   :  { %v461_v53 = vsel %vm6051_vm6, %v3503_v33, %v5389_v12  ;;  %2396 = vst [vmem:[#allocation2 + $0x2f8] sm:$0xff] %v2174_v36  ;;  %vm2142_vm3 = vcmp.eq.f32.partialorder %v5416_v38, inf  ;;  %vm2144_vm5 = vcmp.eq.f32.partialorder %v5416_v38, 0.0  ;;  %2631 = vrsqrt.f32 %v5449_v5  ;;  %v6056_v36 = vld [vmem:[#allocation116_spill] sm:$0xff] }
 0x1cd   :  { %v2145_v54 = vand.u32 2147483648, %v5416_v38  ;;  %vm2149_vm0 = vcmp.eq.f32.partialorder %v5419_v1, inf  ;;  %vm2151_vm4 = vcmp.eq.f32.partialorder %v5419_v1, 0.0  ;;  %2633 = vrsqrt.f32 %v5453_v6  ;;  %v2624_v18 = vpop.eup %2623 }
 0x1ce   :  { %v1143_v25 = vsub.f32 %v1020_v49, %v3430_v20  ;;  %v1144_v59 = vsub.f32 %v1020_v49, %v4041_v37  ;;  %v1145_v19 = vsub.f32 %v1020_v49, %v461_v53  ;;  %vm6053_vm8 = vcmp.ge.s32.totalorder %v6041_v56, %v6052_v31  ;;  %v6057_v53 = vld [vmem:[#allocation19_spill] sm:$0xff] }
 0x1cf   :  { %v470_v60 = vsel %vm6053_vm8, %v3503_v33, %v5389_v12  ;;  %v2626_v39 = vpop.eup %2625  ;;  %v2134_v63 = vmul.f32 %v2624_v18, %v5410_v9  ;;  %v2152_v16 = vand.u32 2147483648, %v5419_v1  ;;  %v1152_v2 = vsub.f32 %v1035_v27, %v3430_v20 }
 0x1d0   :  { %v1153_v23 = vsub.f32 %v1035_v27, %v4041_v37  ;;  %v2628_v50 = vpop.eup %2627  ;;  %v2141_v32 = vmul.f32 %v2626_v39, %v5416_v38  ;;  %v1371_v7 = vmul.f32 %v1143_v25, %v1143_v25  ;;  %v1372_v24 = vmul.f32 %v1144_v59, %v1144_v59 }
 0x1d1   :  { %v1373_v10 = vmul.f32 %v1145_v19, %v1145_v19  ;;  %v2136_v28 = vsel %vm2135_vm1, %v5410_v9, %v2134_v63  ;;  %v2148_v0 = vmul.f32 %v2628_v50, %v5419_v1  ;;  %vm2198_vm15 = vcmp.eq.f32.partialorder %v5442_v34, inf  ;;  %v6059_v63 = vld [vmem:[#allocation22_spill] sm:$0xff] }
 0x1d2   :  { %v1154_v3 = vsub.f32 %v1035_v27, %v470_v60  ;;  %v2139_v30 = vsel %vm2137_vm2, %v2138_v47, %v2136_v28  ;;  %v2143_v61 = vsel %vm2142_vm3, %v5416_v38, %v2141_v32  ;;  %v5494_v14 = vadd.f32 %v1371_v7, %v6054_v35  ;;  %v6061_v7 = vld [vmem:[#allocation117_spill] sm:$0xff] }
 0x1d3   :  { %v5497_v41 = vadd.f32 %v1372_v24, %v6055_v51  ;;  %v2146_v55 = vsel %vm2144_vm5, %v2145_v54, %v2143_v61  ;;  %v2150_v46 = vsel %vm2149_vm0, %v5419_v1, %v2148_v0  ;;  %2391 = vst [vmem:[#allocation2 + $0x2d0] sm:$0xff] %v2139_v30  ;;  %vm2200_vm10 = vcmp.eq.f32.partialorder %v5442_v34, 0.0  ;;  %v6063_v51 = vld [vmem:[#allocation119_spill] sm:$0xff] }
 0x1d4   :  { %v5506_v9 = vadd.f32 %v1373_v10, %v4098_v42  ;;  %v2630_v4 = vpop.eup %2629  ;;  %v2153_v62 = vsel %vm2151_vm4, %v2152_v16, %v2150_v46  ;;  %2392 = vst [vmem:[#allocation2 + $0x2d8] sm:$0xff] %v2146_v55  ;;  %2635 = vrsqrt.f32 %v5494_v14  ;;  %v1380_v44 = vmul.f32 %v1152_v2, %v1152_v2 }
 0x1d5   :  { %v1381_v38 = vmul.f32 %v1153_v23, %v1153_v23  ;;  %2393 = vst [vmem:[#allocation2 + $0x2e0] sm:$0xff] %v2153_v62  ;;  %v2197_v21 = vmul.f32 %v2630_v4, %v5442_v34  ;;  %v2201_v11 = vand.u32 2147483648, %v5442_v34  ;;  %2637 = vrsqrt.f32 %v5497_v41 }
 0x1d6   :  { %v1382_v13 = vmul.f32 %v1154_v3, %v1154_v3  ;;  %v2632_v29 = vpop.eup %2631  ;;  %vm2205_vm9 = vcmp.eq.f32.partialorder %v5449_v5, inf  ;;  %vm2207_vm11 = vcmp.eq.f32.partialorder %v5449_v5, 0.0  ;;  %v2208_v42 = vand.u32 2147483648, %v5449_v5  ;;  %v6062_v3 = vld [vmem:[#allocation118_spill] sm:$0xff] }
 0x1d7   :  { %2639 = vrsqrt.f32 %v5506_v9  ;;  %v2634_v1 = vpop.eup %2633  ;;  %v2199_v45 = vsel %vm2198_vm15, %v5442_v34, %v2197_v21  ;;  %v2204_v58 = vmul.f32 %v2632_v29, %v5449_v5  ;;  %vm2212_vm12 = vcmp.eq.f32.partialorder %v5453_v6, inf }
 0x1d8   :  { %vm2214_vm14 = vcmp.eq.f32.partialorder %v5453_v6, 0.0  ;;  %v2202_v22 = vsel %vm2200_vm10, %v2201_v11, %v2199_v45  ;;  %v2211_v15 = vmul.f32 %v2634_v1, %v5453_v6  ;;  %v5528_v26 = vadd.f32 %v1380_v44, %v4101_v40 }
 0x1d9   :  { %v5531_v48 = vadd.f32 %v1381_v38, %v4112_v17  ;;  %v2206_v52 = vsel %vm2205_vm9, %v5449_v5, %v2204_v58  ;;  %v2215_v8 = vand.u32 2147483648, %v5453_v6  ;;  %2400 = vst [vmem:[#allocation2 + $0x318] sm:$0xff] %v2202_v22  ;;  %vm2177_vm13 = vcmp.eq.f32.partialorder %v5494_v14, inf }
 0x1da   :  { %v5537_v49 = vadd.f32 %v1382_v13, %v6056_v36  ;;  %v2209_v34 = vsel %vm2207_vm11, %v2208_v42, %v2206_v52  ;;  %v2213_v43 = vsel %vm2212_vm12, %v5453_v6, %v2211_v15  ;;  %2641 = vrsqrt.f32 %v5528_v26  ;;  %v1045_v6 = vpop.permute.xlu1 %1044  ;;  %v6065_v36 = vld [vmem:[#allocation122_spill] sm:$0xff] }
 0x1db   :  { %v1149_v40 = vsub.f32 %v1030_v57, %v3430_v20  ;;  %v2216_v17 = vsel %vm2214_vm14, %v2215_v8, %v2213_v43  ;;  %2401 = vst [vmem:[#allocation2 + $0x320] sm:$0xff] %v2209_v34  ;;  %vm2179_vm7 = vcmp.eq.f32.partialorder %v5494_v14, 0.0  ;;  %2643 = vrsqrt.f32 %v5531_v48 }
 0x1dc   :  { %vm6058_vm1 = vcmp.ge.s32.totalorder %v6041_v56, %v6057_v53  ;;  %2402 = vst [vmem:[#allocation2 + $0x328] sm:$0xff] %v2216_v17  ;;  %v2180_v5 = vand.u32 2147483648, %v5494_v14  ;;  %vm2184_vm2 = vcmp.eq.f32.partialorder %v5497_v41, inf  ;;  %vm2186_vm6 = vcmp.eq.f32.partialorder %v5497_v41, 0.0  ;;  %v6066_v17 = vld [vmem:[#allocation124_spill] sm:$0xff] }
 0x1dd   :  { %v467_v47 = vsel %vm6058_vm1, %v3503_v33, %v5389_v12  ;;  %2645 = vrsqrt.f32 %v5537_v49  ;;  %v2187_v27 = vand.u32 2147483648, %v5497_v41  ;;  %vm2191_vm3 = vcmp.eq.f32.partialorder %v5506_v9, inf }
 0x1de   :  { %vm2193_vm5 = vcmp.eq.f32.partialorder %v5506_v9, 0.0  ;;  %v1150_v54 = vsub.f32 %v1030_v57, %v4041_v37  ;;  %v2636_v18 = vpop.eup %2635  ;;  %v2194_v25 = vand.u32 2147483648, %v5506_v9  ;;  %vm2240_vm0 = vcmp.eq.f32.partialorder %v5528_v26, inf }
 0x1df   :  { %v1151_v59 = vsub.f32 %v1030_v57, %v467_v47  ;;  %v1377_v19 = vmul.f32 %v1149_v40, %v1149_v40  ;;  %v2638_v31 = vpop.eup %2637  ;;  %v2176_v60 = vmul.f32 %v2636_v18, %v5494_v14  ;;  %vm6060_vm4 = vcmp.ge.s32.totalorder %v6041_v56, %v6059_v63  ;;  %v6064_v57 = vld [vmem:[#allocation121_spill] sm:$0xff] }
 0x1e0   :  { %v1378_v39 = vmul.f32 %v1150_v54, %v1150_v54  ;;  %v476_v16 = vsel %vm6060_vm4, %v3503_v33, %v5389_v12  ;;  %v1158_v2 = vsub.f32 %v1045_v6, %v3430_v20  ;;  %v2183_v50 = vmul.f32 %v2638_v31, %v5497_v41  ;;  %v6070_v54 = vld [vmem:[#allocation123_spill] sm:$0xff] }
 0x1e1   :  { %v2640_v23 = vpop.eup %2639  ;;  %v1379_v32 = vmul.f32 %v1151_v59, %v1151_v59  ;;  %v5570_v24 = vadd.f32 %v1377_v19, %v6061_v7  ;;  %v1159_v10 = vsub.f32 %v1045_v6, %v4041_v37  ;;  %v2178_v28 = vsel %vm2177_vm13, %v5494_v14, %v2176_v60 }
 0x1e2   :  { %v2190_v0 = vmul.f32 %v2640_v23, %v5506_v9  ;;  %vm2242_vm8 = vcmp.eq.f32.partialorder %v5528_v26, 0.0  ;;  %v5579_v30 = vadd.f32 %v1378_v39, %v6062_v3  ;;  %v2181_v61 = vsel %vm2179_vm7, %v2180_v5, %v2178_v28 }
 0x1e3   :  { %v2185_v35 = vsel %vm2184_vm2, %v5497_v41, %v2183_v50  ;;  %v5587_v55 = vadd.f32 %v1379_v32, %v6063_v51  ;;  %2647 = vrsqrt.f32 %v5570_v24  ;;  %2397 = vst [vmem:[#allocation2 + $0x300] sm:$0xff] %v2181_v61  ;;  %v1160_v62 = vsub.f32 %v1045_v6, %v476_v16  ;;  %v6069_v6 = vld [vmem:[#allocation120_spill] sm:$0xff] }
 0x1e4   :  { %v2188_v46 = vsel %vm2186_vm6, %v2187_v27, %v2185_v35  ;;  %v2192_v4 = vsel %vm2191_vm3, %v5506_v9, %v2190_v0  ;;  %v1386_v14 = vmul.f32 %v1158_v2, %v1158_v2  ;;  %v2642_v44 = vpop.eup %2641  ;;  %v2243_v21 = vand.u32 2147483648, %v5528_v26 }
 0x1e5   :  { %v2195_v38 = vsel %vm2193_vm5, %v2194_v25, %v2192_v4  ;;  %2398 = vst [vmem:[#allocation2 + $0x308] sm:$0xff] %v2188_v46  ;;  %2649 = vrsqrt.f32 %v5579_v30  ;;  %v1387_v11 = vmul.f32 %v1159_v10, %v1159_v10  ;;  %v2644_v13 = vpop.eup %2643  ;;  %v2239_v41 = vmul.f32 %v2642_v44, %v5528_v26  ;;  %v6071_v25 = vld [vmem:[#allocation25_spill] sm:$0xff] }
 0x1e6   :  { %2399 = vst [vmem:[#allocation2 + $0x310] sm:$0xff] %v2195_v38  ;;  %vm2247_vm15 = vcmp.eq.f32.partialorder %v5531_v48, inf  ;;  %vm2249_vm10 = vcmp.eq.f32.partialorder %v5531_v48, 0.0  ;;  %2651 = vrsqrt.f32 %v5587_v55  ;;  %v2246_v9 = vmul.f32 %v2644_v13, %v5531_v48 }
 0x1e7   :  { %v2646_v29 = vpop.eup %2645  ;;  %v2250_v42 = vand.u32 2147483648, %v5531_v48  ;;  %vm2254_vm9 = vcmp.eq.f32.partialorder %v5537_v49, inf  ;;  %vm2256_vm11 = vcmp.eq.f32.partialorder %v5537_v49, 0.0  ;;  %v2241_v1 = vsel %vm2240_vm0, %v5528_v26, %v2239_v41  ;;  %v1040_v26 = vpop.permute.xlu0 %1039 }
 0x1e8   :  { %v2253_v45 = vmul.f32 %v2646_v29, %v5537_v49  ;;  %v1388_v58 = vmul.f32 %v1160_v62, %v1160_v62  ;;  %v5612_v22 = vadd.f32 %v1386_v14, %v6064_v57  ;;  %v2244_v15 = vsel %vm2242_vm8, %v2243_v21, %v2241_v1 }
 0x1e9   :  { %v2248_v52 = vsel %vm2247_vm15, %v5531_v48, %v2246_v9  ;;  %v2257_v8 = vand.u32 2147483648, %v5537_v49  ;;  %v5619_v34 = vadd.f32 %v1387_v11, %v6065_v36  ;;  %2406 = vst [vmem:[#allocation2 + $0x348] sm:$0xff] %v2244_v15  ;;  %v6067_v48 = vld [vmem:[#allocation23_spill] sm:$0xff]  ;;  %v1269_v27 = vmul.f32 %v6069_v6, %v6069_v6 }
 0x1ea   :  { %v2251_v43 = vsel %vm2249_vm10, %v2250_v42, %v2248_v52  ;;  %v2255_v40 = vsel %vm2254_vm9, %v5537_v49, %v2253_v45  ;;  %v5623_v53 = vadd.f32 %v1388_v58, %v6066_v17  ;;  %2653 = vrsqrt.f32 %v5612_v22 }
 0x1eb   :  { %v2258_v47 = vsel %vm2256_vm11, %v2257_v8, %v2255_v40  ;;  %2407 = vst [vmem:[#allocation2 + $0x350] sm:$0xff] %v2251_v43  ;;  %vm6068_vm12 = vcmp.ge.s32.totalorder %v6041_v56, %v6067_v48  ;;  %v1270_v49 = vmul.f32 %v6070_v54, %v6070_v54  ;;  %2655 = vrsqrt.f32 %v5619_v34 }
 0x1ec   :  { %v473_v5 = vsel %vm6068_vm12, %v3503_v33, %v5389_v12  ;;  %2408 = vst [vmem:[#allocation2 + $0x358] sm:$0xff] %v2258_v47  ;;  %v1271_v59 = vmul.f32 %v6071_v25, %v6071_v25  ;;  %vm2219_vm14 = vcmp.eq.f32.partialorder %v5570_v24, inf  ;;  %vm2221_vm13 = vcmp.eq.f32.partialorder %v5570_v24, 0.0 }
 0x1ed   :  { %v2648_v18 = vpop.eup %2647  ;;  %2657 = vrsqrt.f32 %v5623_v53  ;;  %v1155_v12 = vsub.f32 %v1040_v26, %v3430_v20  ;;  %v1156_v56 = vsub.f32 %v1040_v26, %v4041_v37  ;;  %v1157_v19 = vsub.f32 %v1040_v26, %v473_v5 }
 0x1ee   :  { %v2218_v33 = vmul.f32 %v2648_v18, %v5570_v24  ;;  %v2222_v60 = vand.u32 2147483648, %v5570_v24  ;;  %vm2226_vm7 = vcmp.eq.f32.partialorder %v5579_v30, inf  ;;  %vm2228_vm1 = vcmp.eq.f32.partialorder %v5579_v30, 0.0 }
 0x1ef   :  { %v2650_v31 = vpop.eup %2649  ;;  %v2229_v39 = vand.u32 2147483648, %v5579_v30  ;;  %v1383_v23 = vmul.f32 %v1155_v12, %v1155_v12  ;;  %v1384_v50 = vmul.f32 %v1156_v56, %v1156_v56  ;;  %vm2233_vm2 = vcmp.eq.f32.partialorder %v5587_v55, inf }
 0x1f0   :  { %v2652_v63 = vpop.eup %2651  ;;  %v2220_v16 = vsel %vm2219_vm14, %v5570_v24, %v2218_v33  ;;  %v2225_v2 = vmul.f32 %v2650_v31, %v5579_v30  ;;  %v1385_v32 = vmul.f32 %v1157_v19, %v1157_v19  ;;  %v2236_v10 = vand.u32 2147483648, %v5587_v55 }
 0x1f1   :  { %v2223_v20 = vsel %vm2221_vm13, %v2222_v60, %v2220_v16  ;;  %v2232_v37 = vmul.f32 %v2652_v63, %v5587_v55  ;;  %v1497_v28 = vadd.f32 %v1383_v23, %v1269_v27  ;;  %v1498_v0 = vadd.f32 %v1384_v50, %v1270_v49 }
 0x1f2   :  { %v2227_v7 = vsel %vm2226_vm7, %v5579_v30, %v2225_v2  ;;  %2403 = vst [vmem:[#allocation2 + $0x330] sm:$0xff] %v2223_v20  ;;  %vm2235_vm6 = vcmp.eq.f32.partialorder %v5587_v55, 0.0  ;;  %v1499_v24 = vadd.f32 %v1385_v32, %v1271_v59  ;;  %vm2282_vm3 = vcmp.eq.f32.partialorder %v5612_v22, inf }
 0x1f3   :  { %v2230_v3 = vsel %vm2228_vm1, %v2229_v39, %v2227_v7  ;;  %v2234_v61 = vsel %vm2233_vm2, %v5587_v55, %v2232_v37  ;;  %2659 = vrsqrt.f32 %v1497_v28  ;;  %v2285_v62 = vand.u32 2147483648, %v5612_v22 }
 0x1f4   :  { %v2654_v35 = vpop.eup %2653  ;;  %v2237_v51 = vsel %vm2235_vm6, %v2236_v10, %v2234_v61  ;;  %2404 = vst [vmem:[#allocation2 + $0x338] sm:$0xff] %v2230_v3  ;;  %2661 = vrsqrt.f32 %v1498_v0  ;;  %vm2284_vm5 = vcmp.eq.f32.partialorder %v5612_v22, 0.0  ;;  %vm2289_vm0 = vcmp.eq.f32.partialorder %v5619_v34, inf }
 0x1f5   :  { %2405 = vst [vmem:[#allocation2 + $0x340] sm:$0xff] %v2237_v51  ;;  %v2281_v46 = vmul.f32 %v2654_v35, %v5612_v22  ;;  %v2656_v4 = vpop.eup %2655  ;;  %2663 = vrsqrt.f32 %v1499_v24  ;;  %v2292_v38 = vand.u32 2147483648, %v5619_v34  ;;  %vm2291_vm4 = vcmp.eq.f32.partialorder %v5619_v34, 0.0 }
 0x1f6   :  { %v2288_v55 = vmul.f32 %v2656_v4, %v5619_v34  ;;  %vm2296_vm8 = vcmp.eq.f32.partialorder %v5623_v53, inf  ;;  %v2299_v13 = vand.u32 2147483648, %v5623_v53  ;;  %vm2298_vm15 = vcmp.eq.f32.partialorder %v5623_v53, 0.0 }
 0x1f7   :  { %v2658_v30 = vpop.eup %2657  ;;  %v2283_v14 = vsel %vm2282_vm3, %v5612_v22, %v2281_v46  ;;  %vm2261_vm10 = vcmp.eq.f32.partialorder %v1497_v28, inf  ;;  %vm2263_vm9 = vcmp.eq.f32.partialorder %v1497_v28, 0.0  ;;  %v2264_v57 = vand.u32 2147483648, %v1497_v28 }
 0x1f8   :  { %v2286_v44 = vsel %vm2284_vm5, %v2285_v62, %v2283_v14  ;;  %v2295_v21 = vmul.f32 %v2658_v30, %v5623_v53  ;;  %v2290_v11 = vsel %vm2289_vm0, %v5619_v34, %v2288_v55  ;;  %vm2268_vm11 = vcmp.eq.f32.partialorder %v1498_v0, inf }
 0x1f9   :  { %2412 = vst [vmem:[#allocation2 + $0x378] sm:$0xff] %v2286_v44  ;;  %v2293_v41 = vsel %vm2291_vm4, %v2292_v38, %v2290_v11  ;;  %vm2270_vm12 = vcmp.eq.f32.partialorder %v1498_v0, 0.0  ;;  %v2271_v52 = vand.u32 2147483648, %v1498_v0  ;;  %vm2275_vm14 = vcmp.eq.f32.partialorder %v1499_v24, inf }
 0x1fa   :  { %v2297_v29 = vsel %vm2296_vm8, %v5623_v53, %v2295_v21  ;;  %2413 = vst [vmem:[#allocation2 + $0x380] sm:$0xff] %v2293_v41  ;;  %v2278_v43 = vand.u32 2147483648, %v1499_v24  ;;  %vm2277_vm13 = vcmp.eq.f32.partialorder %v1499_v24, 0.0 }
 0x1fb   :  { %v2300_v9 = vsel %vm2298_vm15, %v2299_v13, %v2297_v29 }
 0x1fc   :  { %2414 = vst [vmem:[#allocation2 + $0x388] sm:$0xff] %v2300_v9 }
 0x1fd   :  { %v2660_v42 = vpop.eup %2659 }
 0x1fe   :  { %v2662_v1 = vpop.eup %2661  ;;  %v2260_v45 = vmul.f32 %v2660_v42, %v1497_v28 }
 0x1ff   :  { %v2664_v58 = vpop.eup %2663  ;;  %v2267_v22 = vmul.f32 %v2662_v1, %v1498_v0 }
 0x200   :  { %v2262_v15 = vsel %vm2261_vm10, %v1497_v28, %v2260_v45  ;;  %v2274_v8 = vmul.f32 %v2664_v58, %v1499_v24 }
 0x201   :  { %v2265_v36 = vsel %vm2263_vm9, %v2264_v57, %v2262_v15  ;;  %v2269_v34 = vsel %vm2268_vm11, %v1498_v0, %v2267_v22 }
 0x202   :  { %v2272_v40 = vsel %vm2270_vm12, %v2271_v52, %v2269_v34  ;;  %v2276_v17 = vsel %vm2275_vm14, %v1499_v24, %v2274_v8  ;;  %2409 = vst [vmem:[#allocation2 + $0x360] sm:$0xff] %v2265_v36 }
 0x203   :  { %v2279_v53 = vsel %vm2277_vm13, %v2278_v43, %v2276_v17  ;;  %2410 = vst [vmem:[#allocation2 + $0x368] sm:$0xff] %v2272_v40 }
 0x204   :  { %2411 = vst [vmem:[#allocation2 + $0x370] sm:$0xff] %v2279_v53 }
 0x205   :  { %2677 = shalt.err (!%p2674_p4)
}
 0x206   :  { %s2678_s27 = scalar_lea.hbm %s5693_s6, 14592 }
 0x207   :  { %p2679_p5 = scmp.ne.s32.totalorder %s5693_s6, %s2678_s27  ;;  %p2682_p6 = scmp.lt.u32.totalorder %s2678_s27, %s5693_s6 }
 0x209   :  { %p2684_p7 = pnand %p2682_p6, %p2679_p5 }
 0x20b   :  { %2687 = shalt.err (!%p2684_p7)
}
 0x20c   :  { %s2692_s30 = smov 384   ;;  %s2693_s7 = smov 24  }
 0x20d   :  { %2426 = dma.vmem_to_hbm [thread:$0]  %s2421_s24, 14592, %s5693_s6, [#allocation3], %s2692_s30, %s2692_s30, %s2693_s7  }
 0x20e   :  { %2688 = dma.done.wait [#allocation3], 14592  }
 0x20f   :  { %2689 = vsyncadd [#allocation3], 4294952704 }
 0x210   :  { %2430 = vsyncpa [#allocation3], 1 }

</bundles_post_ra>
